<compile_context>
chip_gen: v5e
topology: v5e:2x2
jax: 0.10.0
libtpu: 0.0.40
codegen_flags: <defaults>
</compile_context>

<pallas_src>
import functools

import jax
import jax.numpy as jnp
import numpy as np
from jax import lax
from jax.experimental import pallas as pl
from jax.experimental.pallas import tpu as pltpu


# ---------------------------------------------------------------------------
# In-kernel helpers (all operate on values in the (C, H*W) "CM" layout)
# ---------------------------------------------------------------------------
def _shift_lanes(x, delta):
    """out[:, p] = x[:, p + delta], zero-filled outside [0, H*W)."""
    if delta == 0:
        return x
    c, m = x.shape
    zeros = jnp.zeros((c, abs(delta)), x.dtype)
    if delta > 0:
        return jnp.concatenate([x[:, delta:], zeros], axis=1)
    return jnp.concatenate([zeros, x[:, : m + delta]], axis=1)


def _col_masks(h, w):
    """Masks for pixels whose left / right neighbour lies outside the image."""
    col = lax.broadcasted_iota(jnp.int32, (1, h * w), 1) % w
    return (col >= 1, col <= w - 2)


def _conv3x3_cm(x, tap_w, cout, h, w, col_masks):
    """3x3 stride-1 'SAME' convolution in the CM layout.

    x       : (Cin, H*W) f32 (input activation already applied by the caller).
    tap_w(k): returns the (Cout, Cin) weight of tap k = ky*3 + kx.
    Returns (Cout, H*W) f32.
    """
    hw = h * w
    m_left, m_right = col_masks
    acc = jnp.zeros((cout, hw), jnp.float32)
    k = 0
    for dy in (-1, 0, 1):
        for dx in (-1, 0, 1):
            shifted = _shift_lanes(x, dy * w + dx)
            if dx == -1:
                shifted = jnp.where(m_left, shifted, 0.0)
            elif dx == 1:
                shifted = jnp.where(m_right, shifted, 0.0)
            acc = acc + jnp.dot(tap_w(k), shifted,
                                preferred_element_type=jnp.float32)
            k += 1
    return acc


# ---------------------------------------------------------------------------
# Kernels
# ---------------------------------------------------------------------------
def _conv3x3_kernel(x_ref, w_ref, o_ref, *, h, w, input_relu):
    """Standalone 3x3 conv (one image per grid step), optional ReLU on input.

    x_ref: (1, Cin, H*W)   w_ref: (9, Cout, Cin)   o_ref: (1, Cout, H*W)
    """
    x = x_ref[0]
    if input_relu:
        x = jnp.maximum(x, 0.0)
    cout = o_ref.shape[1]
    o_ref[0] = _conv3x3_cm(x, lambda k: w_ref[k], cout, h, w, _col_masks(h, w))


def _group_rdb_kernel(x_ref, w1_ref, w2_ref, wf_ref, wg_ref, o_ref, feat_ref,
                      *, h, w, c0, growth, n_layers, n_blocks):
    """Fused GroupOfResidualDenseBlock (relu2 + B residual dense blocks +
    group 1x1 conv + residual), one image per grid step.

    x_ref  : (1, C0, H*W)                group input (pre-relu2)
    w1_ref : (B*L, BG, Cmax)             1x1 bottleneck weights, Cin zero-padded
    w2_ref : (B*L*9, G, BG)              3x3 weights, tap-major (k = ky*3+kx)
    wf_ref : (B, C0, Cmax)               per-block final 1x1 weights
    wg_ref : (B, C0, C0)                 group 1x1 weight split per block
    o_ref  : (1, C0, H*W)
    feat_ref (scratch): (Cmax, H*W)      growing `features` concat in VMEM
    """
    hw = h * w
    masks = _col_masks(h, w)
    x0 = jnp.maximum(x_ref[0], 0.0)            # 'relu2' on the group input
    cur = x0                                   # running RDB-chain features
    acc = jnp.zeros((c0, hw), jnp.float32)     # accumulates the group 1x1 conv
    for b in range(n_blocks):
        # ---- one _ResidualDenseBlock; features kept in VMEM scratch ----
        feat_ref[0:c0, :] = cur
        for i in range(n_layers):
            nch = c0 + i * growth
            li = b * n_layers + i
            cat = jnp.maximum(feat_ref[0:nch, :], 0.0)          # relu1(cat)
            bott = jnp.maximum(                                  # relu2(conv1)
                jnp.dot(w1_ref[li][:, 0:nch], cat,
                        preferred_element_type=jnp.float32), 0.0)
            new = _conv3x3_cm(bott, lambda k, li=li: w2_ref[li * 9 + k],
                              growth, h, w, masks)               # conv2
            feat_ref[nch:nch + growth, :] = new
        rdb_out = jnp.dot(wf_ref[b], feat_ref[...],
                          preferred_element_type=jnp.float32) + cur
        # group 1x1 conv over cat(rdb outputs), folded into per-block matmuls
        acc = acc + jnp.dot(wg_ref[b], rdb_out,
                            preferred_element_type=jnp.float32)
        cur = rdb_out
    o_ref[0] = x0 + acc


# ---------------------------------------------------------------------------
# Pallas wrappers
# ---------------------------------------------------------------------------
def conv3x3(x_ncm, w_taps, h, w, input_relu):
    """(N, Cin, H*W) x (9, Cout, Cin) -> (N, Cout, H*W), 'SAME', no bias."""
    n, cin, hw = x_ncm.shape
    cout = w_taps.shape[1]
    return pl.pallas_call(
        functools.partial(_conv3x3_kernel, h=h, w=w, input_relu=input_relu),
        out_shape=jax.ShapeDtypeStruct((n, cout, hw), jnp.float32),
        grid=(n,),
        in_specs=[
            pl.BlockSpec((1, cin, hw), lambda i: (i, 0, 0)),
            pl.BlockSpec((9, cout, cin), lambda i: (0, 0, 0)),
        ],
        out_specs=pl.BlockSpec((1, cout, hw), lambda i: (i, 0, 0)),
        compiler_params=pltpu.CompilerParams(
            dimension_semantics=("parallel",)),
    )(x_ncm, w_taps)


def group_of_rdb(x_ncm, gparams, h, w):
    """Fused relu2 + GroupOfResidualDenseBlock, one pallas_call."""
    n, c0, hw = x_ncm.shape
    w1_all, w2_all, wf_all, wg_all = gparams
    n_blocks = wf_all.shape[0]
    n_layers = w1_all.shape[0] // n_blocks
    growth = w2_all.shape[1]
    c_max = c0 + n_layers * growth
    assert w1_all.shape[2] == c_max and wf_all.shape[2] == c_max
    kern = functools.partial(_group_rdb_kernel, h=h, w=w, c0=c0,
                             growth=growth, n_layers=n_layers,
                             n_blocks=n_blocks)
    return pl.pallas_call(
        kern,
        out_shape=jax.ShapeDtypeStruct((n, c0, hw), jnp.float32),
        grid=(n,),
        in_specs=[
            pl.BlockSpec((1, c0, hw), lambda i: (i, 0, 0)),
            pl.BlockSpec(w1_all.shape, lambda i: (0, 0, 0)),
            pl.BlockSpec(w2_all.shape, lambda i: (0, 0, 0)),
            pl.BlockSpec(wf_all.shape, lambda i: (0, 0, 0)),
            pl.BlockSpec(wg_all.shape, lambda i: (0, 0, 0)),
        ],
        out_specs=pl.BlockSpec((1, c0, hw), lambda i: (i, 0, 0)),
        scratch_shapes=[pltpu.VMEM((c_max, hw), jnp.float32)],
        compiler_params=pltpu.CompilerParams(
            dimension_semantics=("parallel",)),
    )(x_ncm, w1_all, w2_all, wf_all, wg_all)


# ---------------------------------------------------------------------------
# Full forward pass (NCHW in / NCHW out)
# ---------------------------------------------------------------------------
def pix2pix_rdn_forward(x_nchw, params):
    n, cin, h, w = x_nchw.shape
    x = x_nchw.reshape(n, cin, h * w).astype(jnp.float32)
    y = conv3x3(x, params["conv0"], h, w, input_relu=False)   # conv0
    y = conv3x3(y, params["conv1"], h, w, input_relu=True)    # relu0 -> conv1
    y = conv3x3(y, params["conv2"], h, w, input_relu=False)   # conv2
    y = group_of_rdb(y, params["group"], h, w)                # relu2 + Group
    y = conv3x3(y, params["final"], h, w, input_relu=False)   # Finalconv
    return y.reshape(n, -1, h, w)


# ---------------------------------------------------------------------------
# Parameter construction (PyTorch layout -> kernel layout)
# ---------------------------------------------------------------------------
def _kaiming(key, cout, cin, kh, kw):
    std = float(np.sqrt(2.0 / (cout * kh * kw)))   # kaiming_normal_, fan_out
    return std * jax.random.normal(key, (cout, cin, kh, kw), jnp.float32)


def _taps(w_pt):
    """(Cout, Cin, 3, 3) PyTorch weight -> (9, Cout, Cin), tap k = ky*3+kx."""
    cout, cin = w_pt.shape[0], w_pt.shape[1]
    return jnp.transpose(w_pt, (2, 3, 0, 1)).reshape(9, cout, cin)


def init_params(key, cfg):
    c_in = cfg["num_input_channel"]
    c_out = cfg["num_output_channel"]
    c_mid = cfg["middle_output_channel"]
    c_add = cfg["additional_vector_channels"]
    g = cfg["growth_rate"]
    bg = cfg["bn_size"] * g
    blocks = cfg["block_config"]
    n_blocks = len(blocks)
    n_layers = blocks[0]
    assert all(b == n_layers for b in blocks), "uniform block_config only"
    # sublane-aligned channel counts keep every scratch slice on 8-row bounds
    assert c_mid % 8 == 0 and g % 8 == 0 and bg % 8 == 0
    c_max = c_mid + n_layers * g

    key, k0, k1, k2, kf = jax.random.split(key, 5)
    pt = {
        "conv0": _kaiming(k0, c_mid, c_in, 3, 3),
        "conv1": _kaiming(k1, c_add, c_mid, 3, 3),
        "conv2": _kaiming(k2, c_mid, c_add, 3, 3),
        "final": _kaiming(kf, c_out, c_mid, 3, 3),
        "blocks": [],
    }
    w1_list, w2_list, wf_list = [], [], []
    for _ in range(n_blocks):
        layers = []
        nch = c_mid
        for _ in range(n_layers):
            key, ka, kb = jax.random.split(key, 3)
            w1 = _kaiming(ka, bg, nch, 1, 1)
            w2 = _kaiming(kb, g, bg, 3, 3)
            layers.append((w1, w2))
            w1_list.append(jnp.pad(w1[:, :, 0, 0],
                                   ((0, 0), (0, c_max - nch))))
            w2_list.append(_taps(w2))
            nch += g
        key, kc = jax.random.split(key)
        wf = _kaiming(kc, c_mid, c_max, 1, 1)
        pt["blocks"].append({"layers": layers, "final": wf})
        wf_list.append(wf[:, :, 0, 0])
    key, kg = jax.random.split(key)
    wg = _kaiming(kg, c_mid, n_blocks * c_mid, 1, 1)
    pt["group_conv"] = wg
    wg_split = jnp.transpose(
        wg[:, :, 0, 0].reshape(c_mid, n_blocks, c_mid), (1, 0, 2))

    params = {
        "conv0": _taps(pt["conv0"]),
        "conv1": _taps(pt["conv1"]),
        "conv2": _taps(pt["conv2"]),
        "final": _taps(pt["final"]),
        "group": (
            jnp.stack(w1_list),                                      # (B*L,BG,Cmax)
            jnp.stack(w2_list).reshape(n_blocks * n_layers * 9, g, bg),
            jnp.stack(wf_list),                                      # (B,Cmid,Cmax)
            wg_split,                                                # (B,Cmid,Cmid)
        ),
    }
    return pt, params


# ---------------------------------------------------------------------------
# Pure-JAX reference (independent path, for a silent correctness check)
# ---------------------------------------------------------------------------
def _ref_conv(x, w_pt, padding):
    return lax.conv_general_dilated(
        x, w_pt, window_strides=(1, 1), padding=padding,
        dimension_numbers=("NCHW", "OIHW", "NCHW"),
        precision=lax.Precision.HIGHEST)


def _ref_forward(x, pt):
    y = _ref_conv(x, pt["conv0"], "SAME")
    y = jnp.maximum(y, 0.0)                       # relu0
    y = _ref_conv(y, pt["conv1"], "SAME")         # (duplicate relu0 dropped)
    y = _ref_conv(y, pt["conv2"], "SAME")
    y = jnp.maximum(y, 0.0)                       # relu2
    init = y
    cur = y
    feats = []
    for blk in pt["blocks"]:
        fs = [cur]
        for (w1, w2) in blk["layers"]:
            cat = jnp.concatenate(fs, axis=1)
            bott = _ref_conv(jnp.maximum(cat, 0.0), w1, "VALID")
            fs.append(_ref_conv(jnp.maximum(bott, 0.0), w2, "SAME"))
        cat = jnp.concatenate(fs, axis=1)
        cur = _ref_conv(cat, blk["final"], "VALID") + cur
        feats.append(cur)
    y = init + _ref_conv(jnp.concatenate(feats, axis=1),
                         pt["group_conv"], "VALID")
    return _ref_conv(y, pt["final"], "SAME")


# ---------------------------------------------------------------------------
if __name__ == "__main__":
    # Small but structurally faithful hyper-parameters.
    cfg = dict(
        num_input_channel=3, num_output_channel=1,
        bn_size=2, growth_rate=8,
        middle_output_channel=16, additional_vector_channels=32,
        block_config=(2, 2),
    )
    batch, height, width = 2, 16, 16

    key = jax.random.PRNGKey(0)
    kx, kp = jax.random.split(key)
    x = jax.random.normal(
        kx, (batch, cfg["num_input_channel"], height, width), jnp.float32)
    pt, params = init_params(kp, cfg)

    fwd = jax.jit(pix2pix_rdn_forward)
    out = jax.block_until_ready(fwd(x, params))

    # Silent sanity check against an independent pure-JAX reference.
    ref = jax.block_until_ready(_ref_forward(x, pt))
    np.testing.assert_allclose(np.asarray(out), np.asarray(ref),
                               rtol=5e-3, atol=5e-3)
    assert out.shape == (batch, cfg["num_output_channel"], height, width)

    print("KERNEL_OK")
</pallas_src>

<mosaic_0001>
module attributes {stable_mosaic.version = 11 : i64} {
  func.func @_conv3x3_kernel(%arg0: i32, %arg1: memref<1x16x256xf32, #tpu.memory_space<vmem>>, %arg2: memref<9x32x16xf32, #tpu.memory_space<vmem>>, %arg3: memref<1x32x256xf32, #tpu.memory_space<vmem>>) attributes {dimension_semantics = [#tpu.dimension_semantics<parallel>], iteration_bounds = array<i64: 2>, scalar_prefetch = 0 : i64, scratch_operands = 0 : i64, tpu.core_type = #tpu.core_type<tc>, window_params = [{transform_indices = @transform_0, window_bounds = array<i64: 1, 16, 256>}, {pipeline_mode = #tpu.pipeline_mode<synchronous>, transform_indices = @transform_1, window_bounds = array<i64: 9, 32, 16>}, {transform_indices = @transform_2, window_bounds = array<i64: 1, 32, 256>}]} {
    %c0 = arith.constant 0 : index
    %c0_0 = arith.constant 0 : index
    %c0_1 = arith.constant 0 : index
    %0 = vector.load %arg1[%c0, %c0_0, %c0_1] : memref<1x16x256xf32, #tpu.memory_space<vmem>>, vector<1x16x256xf32>
    %1 = vector.shape_cast %0 : vector<1x16x256xf32> to vector<16x256xf32>
    %cst = arith.constant 0.000000e+00 : f32
    %2 = vector.broadcast %cst : f32 to vector<16x256xf32>
    %3 = arith.maximumf %1, %2 : vector<16x256xf32>
    %4 = tpu.iota {dimensions = array<i32: 1>} : vector<1x256xi32>
    %c16_i32 = arith.constant 16 : i32
    %c0_i32 = arith.constant 0 : i32
    %5 = arith.cmpi eq, %c16_i32, %c0_i32 : i32
    %c1_i32 = arith.constant 1 : i32
    %6 = arith.select %5, %c1_i32, %c16_i32 : i32
    %7 = vector.broadcast %6 : i32 to vector<1x256xi32>
    %8 = arith.remsi %4, %7 : vector<1x256xi32>
    %c0_i32_2 = arith.constant 0 : i32
    %9 = vector.broadcast %c0_i32_2 : i32 to vector<1x256xi32>
    %10 = arith.cmpi ne, %8, %9 : vector<1x256xi32>
    %c0_i32_3 = arith.constant 0 : i32
    %11 = vector.broadcast %c0_i32_3 : i32 to vector<1x256xi32>
    %12 = arith.cmpi slt, %8, %11 : vector<1x256xi32>
    %c0_i32_4 = arith.constant 0 : i32
    %13 = arith.cmpi slt, %6, %c0_i32_4 : i32
    %14 = vector.broadcast %13 : i1 to vector<1x256xi1>
    %15 = vector.broadcast %14 : vector<1x256xi1> to vector<1x256xi1>
    %16 = arith.xori %12, %15 : vector<1x256xi1>
    %17 = arith.andi %16, %10 : vector<1x256xi1>
    %18 = vector.broadcast %6 : i32 to vector<1x256xi32>
    %19 = arith.addi %8, %18 : vector<1x256xi32>
    %20 = arith.select %17, %19, %8 : vector<1x256xi1>, vector<1x256xi32>
    %c1_i32_5 = arith.constant 1 : i32
    %21 = vector.broadcast %c1_i32_5 : i32 to vector<1x256xi32>
    %22 = arith.cmpi sge, %20, %21 : vector<1x256xi32>
    %c14_i32 = arith.constant 14 : i32
    %23 = vector.broadcast %c14_i32 : i32 to vector<1x256xi32>
    %24 = arith.cmpi sle, %20, %23 : vector<1x256xi32>
    %cst_6 = arith.constant 0.000000e+00 : f32
    %25 = vector.broadcast %cst_6 : f32 to vector<32x256xf32>
    %cst_7 = arith.constant 0.000000e+00 : f32
    %26 = vector.broadcast %cst_7 : f32 to vector<16x17xf32>
    %27 = vector.extract_strided_slice %3 {offsets = [0, 0], sizes = [16, 239], strides = [1, 1]} : vector<16x256xf32> to vector<16x239xf32>
    %28 = tpu.concatenate %26, %27 in 1 : vector<16x17xf32>, vector<16x239xf32> -> vector<16x256xf32>
    %cst_8 = arith.constant 0.000000e+00 : f32
    %29 = vector.shape_cast %22 : vector<1x256xi1> to vector<1x256xi1>
    %30 = vector.broadcast %29 : vector<1x256xi1> to vector<16x256xi1>
    %31 = vector.broadcast %cst_8 : f32 to vector<16x256xf32>
    %32 = arith.select %30, %28, %31 : vector<16x256xi1>, vector<16x256xf32>
    %c0_9 = arith.constant 0 : index
    %c0_10 = arith.constant 0 : index
    %c0_11 = arith.constant 0 : index
    %33 = vector.load %arg2[%c0_9, %c0_10, %c0_11] : memref<9x32x16xf32, #tpu.memory_space<vmem>>, vector<1x32x16xf32>
    %34 = vector.shape_cast %33 : vector<1x32x16xf32> to vector<32x16xf32>
    %cst_12 = arith.constant dense<0.000000e+00> : vector<32x256xf32>
    %35 = tpu.matmul %34, %32, %cst_12 {dimension_numbers = #tpu.dot_dimension_numbers<[1], [0], [0], [1], [0, 0, 1, 1], [], []>} : vector<32x16xf32>, vector<16x256xf32>, vector<32x256xf32> -> vector<32x256xf32>
    %36 = arith.addf %25, %35 : vector<32x256xf32>
    %cst_13 = arith.constant 0.000000e+00 : f32
    %37 = vector.broadcast %cst_13 : f32 to vector<16x16xf32>
    %38 = vector.extract_strided_slice %3 {offsets = [0, 0], sizes = [16, 240], strides = [1, 1]} : vector<16x256xf32> to vector<16x240xf32>
    %39 = tpu.concatenate %37, %38 in 1 : vector<16x16xf32>, vector<16x240xf32> -> vector<16x256xf32>
    %c1 = arith.constant 1 : index
    %c0_14 = arith.constant 0 : index
    %c0_15 = arith.constant 0 : index
    %40 = vector.load %arg2[%c1, %c0_14, %c0_15] : memref<9x32x16xf32, #tpu.memory_space<vmem>>, vector<1x32x16xf32>
    %41 = vector.shape_cast %40 : vector<1x32x16xf32> to vector<32x16xf32>
    %cst_16 = arith.constant dense<0.000000e+00> : vector<32x256xf32>
    %42 = tpu.matmul %41, %39, %cst_16 {dimension_numbers = #tpu.dot_dimension_numbers<[1], [0], [0], [1], [0, 0, 1, 1], [], []>} : vector<32x16xf32>, vector<16x256xf32>, vector<32x256xf32> -> vector<32x256xf32>
    %43 = arith.addf %36, %42 : vector<32x256xf32>
    %cst_17 = arith.constant 0.000000e+00 : f32
    %44 = vector.broadcast %cst_17 : f32 to vector<16x15xf32>
    %45 = vector.extract_strided_slice %3 {offsets = [0, 0], sizes = [16, 241], strides = [1, 1]} : vector<16x256xf32> to vector<16x241xf32>
    %46 = tpu.concatenate %44, %45 in 1 : vector<16x15xf32>, vector<16x241xf32> -> vector<16x256xf32>
    %cst_18 = arith.constant 0.000000e+00 : f32
    %47 = vector.shape_cast %24 : vector<1x256xi1> to vector<1x256xi1>
    %48 = vector.broadcast %47 : vector<1x256xi1> to vector<16x256xi1>
    %49 = vector.broadcast %cst_18 : f32 to vector<16x256xf32>
    %50 = arith.select %48, %46, %49 : vector<16x256xi1>, vector<16x256xf32>
    %c2 = arith.constant 2 : index
    %c0_19 = arith.constant 0 : index
    %c0_20 = arith.constant 0 : index
    %51 = vector.load %arg2[%c2, %c0_19, %c0_20] : memref<9x32x16xf32, #tpu.memory_space<vmem>>, vector<1x32x16xf32>
    %52 = vector.shape_cast %51 : vector<1x32x16xf32> to vector<32x16xf32>
    %cst_21 = arith.constant dense<0.000000e+00> : vector<32x256xf32>
    %53 = tpu.matmul %52, %50, %cst_21 {dimension_numbers = #tpu.dot_dimension_numbers<[1], [0], [0], [1], [0, 0, 1, 1], [], []>} : vector<32x16xf32>, vector<16x256xf32>, vector<32x256xf32> -> vector<32x256xf32>
    %54 = arith.addf %43, %53 : vector<32x256xf32>
    %cst_22 = arith.constant 0.000000e+00 : f32
    %55 = vector.broadcast %cst_22 : f32 to vector<16x1xf32>
    %56 = vector.extract_strided_slice %3 {offsets = [0, 0], sizes = [16, 255], strides = [1, 1]} : vector<16x256xf32> to vector<16x255xf32>
    %57 = tpu.concatenate %55, %56 in 1 : vector<16x1xf32>, vector<16x255xf32> -> vector<16x256xf32>
    %cst_23 = arith.constant 0.000000e+00 : f32
    %58 = vector.shape_cast %22 : vector<1x256xi1> to vector<1x256xi1>
    %59 = vector.broadcast %58 : vector<1x256xi1> to vector<16x256xi1>
    %60 = vector.broadcast %cst_23 : f32 to vector<16x256xf32>
    %61 = arith.select %59, %57, %60 : vector<16x256xi1>, vector<16x256xf32>
    %c3 = arith.constant 3 : index
    %c0_24 = arith.constant 0 : index
    %c0_25 = arith.constant 0 : index
    %62 = vector.load %arg2[%c3, %c0_24, %c0_25] : memref<9x32x16xf32, #tpu.memory_space<vmem>>, vector<1x32x16xf32>
    %63 = vector.shape_cast %62 : vector<1x32x16xf32> to vector<32x16xf32>
    %cst_26 = arith.constant dense<0.000000e+00> : vector<32x256xf32>
    %64 = tpu.matmul %63, %61, %cst_26 {dimension_numbers = #tpu.dot_dimension_numbers<[1], [0], [0], [1], [0, 0, 1, 1], [], []>} : vector<32x16xf32>, vector<16x256xf32>, vector<32x256xf32> -> vector<32x256xf32>
    %65 = arith.addf %54, %64 : vector<32x256xf32>
    %c4 = arith.constant 4 : index
    %c0_27 = arith.constant 0 : index
    %c0_28 = arith.constant 0 : index
    %66 = vector.load %arg2[%c4, %c0_27, %c0_28] : memref<9x32x16xf32, #tpu.memory_space<vmem>>, vector<1x32x16xf32>
    %67 = vector.shape_cast %66 : vector<1x32x16xf32> to vector<32x16xf32>
    %cst_29 = arith.constant dense<0.000000e+00> : vector<32x256xf32>
    %68 = tpu.matmul %67, %3, %cst_29 {dimension_numbers = #tpu.dot_dimension_numbers<[1], [0], [0], [1], [0, 0, 1, 1], [], []>} : vector<32x16xf32>, vector<16x256xf32>, vector<32x256xf32> -> vector<32x256xf32>
    %69 = arith.addf %65, %68 : vector<32x256xf32>
    %cst_30 = arith.constant 0.000000e+00 : f32
    %70 = vector.broadcast %cst_30 : f32 to vector<16x1xf32>
    %71 = vector.extract_strided_slice %3 {offsets = [0, 1], sizes = [16, 255], strides = [1, 1]} : vector<16x256xf32> to vector<16x255xf32>
    %72 = tpu.concatenate %71, %70 in 1 : vector<16x255xf32>, vector<16x1xf32> -> vector<16x256xf32>
    %cst_31 = arith.constant 0.000000e+00 : f32
    %73 = vector.shape_cast %24 : vector<1x256xi1> to vector<1x256xi1>
    %74 = vector.broadcast %73 : vector<1x256xi1> to vector<16x256xi1>
    %75 = vector.broadcast %cst_31 : f32 to vector<16x256xf32>
    %76 = arith.select %74, %72, %75 : vector<16x256xi1>, vector<16x256xf32>
    %c5 = arith.constant 5 : index
    %c0_32 = arith.constant 0 : index
    %c0_33 = arith.constant 0 : index
    %77 = vector.load %arg2[%c5, %c0_32, %c0_33] : memref<9x32x16xf32, #tpu.memory_space<vmem>>, vector<1x32x16xf32>
    %78 = vector.shape_cast %77 : vector<1x32x16xf32> to vector<32x16xf32>
    %cst_34 = arith.constant dense<0.000000e+00> : vector<32x256xf32>
    %79 = tpu.matmul %78, %76, %cst_34 {dimension_numbers = #tpu.dot_dimension_numbers<[1], [0], [0], [1], [0, 0, 1, 1], [], []>} : vector<32x16xf32>, vector<16x256xf32>, vector<32x256xf32> -> vector<32x256xf32>
    %80 = arith.addf %69, %79 : vector<32x256xf32>
    %cst_35 = arith.constant 0.000000e+00 : f32
    %81 = vector.broadcast %cst_35 : f32 to vector<16x15xf32>
    %82 = vector.extract_strided_slice %3 {offsets = [0, 15], sizes = [16, 241], strides = [1, 1]} : vector<16x256xf32> to vector<16x241xf32>
    %83 = tpu.concatenate %82, %81 in 1 : vector<16x241xf32>, vector<16x15xf32> -> vector<16x256xf32>
    %cst_36 = arith.constant 0.000000e+00 : f32
    %84 = vector.shape_cast %22 : vector<1x256xi1> to vector<1x256xi1>
    %85 = vector.broadcast %84 : vector<1x256xi1> to vector<16x256xi1>
    %86 = vector.broadcast %cst_36 : f32 to vector<16x256xf32>
    %87 = arith.select %85, %83, %86 : vector<16x256xi1>, vector<16x256xf32>
    %c6 = arith.constant 6 : index
    %c0_37 = arith.constant 0 : index
    %c0_38 = arith.constant 0 : index
    %88 = vector.load %arg2[%c6, %c0_37, %c0_38] : memref<9x32x16xf32, #tpu.memory_space<vmem>>, vector<1x32x16xf32>
    %89 = vector.shape_cast %88 : vector<1x32x16xf32> to vector<32x16xf32>
    %cst_39 = arith.constant dense<0.000000e+00> : vector<32x256xf32>
    %90 = tpu.matmul %89, %87, %cst_39 {dimension_numbers = #tpu.dot_dimension_numbers<[1], [0], [0], [1], [0, 0, 1, 1], [], []>} : vector<32x16xf32>, vector<16x256xf32>, vector<32x256xf32> -> vector<32x256xf32>
    %91 = arith.addf %80, %90 : vector<32x256xf32>
    %cst_40 = arith.constant 0.000000e+00 : f32
    %92 = vector.broadcast %cst_40 : f32 to vector<16x16xf32>
    %93 = vector.extract_strided_slice %3 {offsets = [0, 16], sizes = [16, 240], strides = [1, 1]} : vector<16x256xf32> to vector<16x240xf32>
    %94 = tpu.concatenate %93, %92 in 1 : vector<16x240xf32>, vector<16x16xf32> -> vector<16x256xf32>
    %c7 = arith.constant 7 : index
    %c0_41 = arith.constant 0 : index
    %c0_42 = arith.constant 0 : index
    %95 = vector.load %arg2[%c7, %c0_41, %c0_42] : memref<9x32x16xf32, #tpu.memory_space<vmem>>, vector<1x32x16xf32>
    %96 = vector.shape_cast %95 : vector<1x32x16xf32> to vector<32x16xf32>
    %cst_43 = arith.constant dense<0.000000e+00> : vector<32x256xf32>
    %97 = tpu.matmul %96, %94, %cst_43 {dimension_numbers = #tpu.dot_dimension_numbers<[1], [0], [0], [1], [0, 0, 1, 1], [], []>} : vector<32x16xf32>, vector<16x256xf32>, vector<32x256xf32> -> vector<32x256xf32>
    %98 = arith.addf %91, %97 : vector<32x256xf32>
    %cst_44 = arith.constant 0.000000e+00 : f32
    %99 = vector.broadcast %cst_44 : f32 to vector<16x17xf32>
    %100 = vector.extract_strided_slice %3 {offsets = [0, 17], sizes = [16, 239], strides = [1, 1]} : vector<16x256xf32> to vector<16x239xf32>
    %101 = tpu.concatenate %100, %99 in 1 : vector<16x239xf32>, vector<16x17xf32> -> vector<16x256xf32>
    %cst_45 = arith.constant 0.000000e+00 : f32
    %102 = vector.shape_cast %24 : vector<1x256xi1> to vector<1x256xi1>
    %103 = vector.broadcast %102 : vector<1x256xi1> to vector<16x256xi1>
    %104 = vector.broadcast %cst_45 : f32 to vector<16x256xf32>
    %105 = arith.select %103, %101, %104 : vector<16x256xi1>, vector<16x256xf32>
    %c8 = arith.constant 8 : index
    %c0_46 = arith.constant 0 : index
    %c0_47 = arith.constant 0 : index
    %106 = vector.load %arg2[%c8, %c0_46, %c0_47] : memref<9x32x16xf32, #tpu.memory_space<vmem>>, vector<1x32x16xf32>
    %107 = vector.shape_cast %106 : vector<1x32x16xf32> to vector<32x16xf32>
    %cst_48 = arith.constant dense<0.000000e+00> : vector<32x256xf32>
    %108 = tpu.matmul %107, %105, %cst_48 {dimension_numbers = #tpu.dot_dimension_numbers<[1], [0], [0], [1], [0, 0, 1, 1], [], []>} : vector<32x16xf32>, vector<16x256xf32>, vector<32x256xf32> -> vector<32x256xf32>
    %109 = arith.addf %98, %108 : vector<32x256xf32>
    %c0_49 = arith.constant 0 : index
    %c0_50 = arith.constant 0 : index
    %c0_51 = arith.constant 0 : index
    %110 = vector.load %arg3[%c0_49, %c0_50, %c0_51] : memref<1x32x256xf32, #tpu.memory_space<vmem>>, vector<1x32x256xf32>
    %111 = vector.shape_cast %110 : vector<1x32x256xf32> to vector<32x256xf32>
    %112 = vector.shape_cast %109 : vector<32x256xf32> to vector<1x32x256xf32>
    tpu.vector_store %arg3[%c0_49, %c0_50, %c0_51], %112 {strides = array<i32>} : memref<1x32x256xf32, #tpu.memory_space<vmem>>, vector<1x32x256xf32>,
    return
  }
  func.func @transform_0(%arg0: i32) -> (i32, i32, i32) {
    %c0_i32 = arith.constant 0 : i32
    %c0_i32_0 = arith.constant 0 : i32
    %c0_i32_1 = arith.constant 0 : i32
    return %arg0, %c0_i32, %c0_i32_0 : i32, i32, i32
  }
  func.func @transform_1(%arg0: i32) -> (i32, i32, i32) {
    %c0_i32 = arith.constant 0 : i32
    %c0_i32_0 = arith.constant 0 : i32
    %c0_i32_1 = arith.constant 0 : i32
    %c0_i32_2 = arith.constant 0 : i32
    return %c0_i32, %c0_i32_0, %c0_i32_1 : i32, i32, i32
  }
  func.func @transform_2(%arg0: i32) -> (i32, i32, i32) {
    %c0_i32 = arith.constant 0 : i32
    %c0_i32_0 = arith.constant 0 : i32
    %c0_i32_1 = arith.constant 0 : i32
    return %arg0, %c0_i32, %c0_i32_0 : i32, i32, i32
  }
}

module attributes {stable_mosaic.version = 11 : i64} {
  func.func @_conv3x3_kernel(%arg0: i32, %arg1: memref<1x3x256xf32, #tpu.memory_space<vmem>>, %arg2: memref<9x16x3xf32, #tpu.memory_space<vmem>>, %arg3: memref<1x16x256xf32, #tpu.memory_space<vmem>>) attributes {dimension_semantics = [#tpu.dimension_semantics<parallel>], iteration_bounds = array<i64: 2>, scalar_prefetch = 0 : i64, scratch_operands = 0 : i64, tpu.core_type = #tpu.core_type<tc>, window_params = [{transform_indices = @transform_0, window_bounds = array<i64: 1, 3, 256>}, {pipeline_mode = #tpu.pipeline_mode<synchronous>, transform_indices = @transform_1, window_bounds = array<i64: 9, 16, 3>}, {transform_indices = @transform_2, window_bounds = array<i64: 1, 16, 256>}]} {
    %c0 = arith.constant 0 : index
    %c0_0 = arith.constant 0 : index
    %c0_1 = arith.constant 0 : index
    %0 = vector.load %arg1[%c0, %c0_0, %c0_1] : memref<1x3x256xf32, #tpu.memory_space<vmem>>, vector<1x3x256xf32>
    %1 = vector.shape_cast %0 : vector<1x3x256xf32> to vector<3x256xf32>
    %2 = tpu.iota {dimensions = array<i32: 1>} : vector<1x256xi32>
    %c16_i32 = arith.constant 16 : i32
    %c0_i32 = arith.constant 0 : i32
    %3 = arith.cmpi eq, %c16_i32, %c0_i32 : i32
    %c1_i32 = arith.constant 1 : i32
    %4 = arith.select %3, %c1_i32, %c16_i32 : i32
    %5 = vector.broadcast %4 : i32 to vector<1x256xi32>
    %6 = arith.remsi %2, %5 : vector<1x256xi32>
    %c0_i32_2 = arith.constant 0 : i32
    %7 = vector.broadcast %c0_i32_2 : i32 to vector<1x256xi32>
    %8 = arith.cmpi ne, %6, %7 : vector<1x256xi32>
    %c0_i32_3 = arith.constant 0 : i32
    %9 = vector.broadcast %c0_i32_3 : i32 to vector<1x256xi32>
    %10 = arith.cmpi slt, %6, %9 : vector<1x256xi32>
    %c0_i32_4 = arith.constant 0 : i32
    %11 = arith.cmpi slt, %4, %c0_i32_4 : i32
    %12 = vector.broadcast %11 : i1 to vector<1x256xi1>
    %13 = vector.broadcast %12 : vector<1x256xi1> to vector<1x256xi1>
    %14 = arith.xori %10, %13 : vector<1x256xi1>
    %15 = arith.andi %14, %8 : vector<1x256xi1>
    %16 = vector.broadcast %4 : i32 to vector<1x256xi32>
    %17 = arith.addi %6, %16 : vector<1x256xi32>
    %18 = arith.select %15, %17, %6 : vector<1x256xi1>, vector<1x256xi32>
    %c1_i32_5 = arith.constant 1 : i32
    %19 = vector.broadcast %c1_i32_5 : i32 to vector<1x256xi32>
    %20 = arith.cmpi sge, %18, %19 : vector<1x256xi32>
    %c14_i32 = arith.constant 14 : i32
    %21 = vector.broadcast %c14_i32 : i32 to vector<1x256xi32>
    %22 = arith.cmpi sle, %18, %21 : vector<1x256xi32>
    %cst = arith.constant 0.000000e+00 : f32
    %23 = vector.broadcast %cst : f32 to vector<16x256xf32>
    %cst_6 = arith.constant 0.000000e+00 : f32
    %24 = vector.broadcast %cst_6 : f32 to vector<3x17xf32>
    %25 = vector.extract_strided_slice %1 {offsets = [0, 0], sizes = [3, 239], strides = [1, 1]} : vector<3x256xf32> to vector<3x239xf32>
    %26 = tpu.concatenate %24, %25 in 1 : vector<3x17xf32>, vector<3x239xf32> -> vector<3x256xf32>
    %cst_7 = arith.constant 0.000000e+00 : f32
    %27 = vector.shape_cast %20 : vector<1x256xi1> to vector<1x256xi1>
    %28 = vector.broadcast %27 : vector<1x256xi1> to vector<3x256xi1>
    %29 = vector.broadcast %cst_7 : f32 to vector<3x256xf32>
    %30 = arith.select %28, %26, %29 : vector<3x256xi1>, vector<3x256xf32>
    %c0_8 = arith.constant 0 : index
    %c0_9 = arith.constant 0 : index
    %c0_10 = arith.constant 0 : index
    %31 = vector.load %arg2[%c0_8, %c0_9, %c0_10] : memref<9x16x3xf32, #tpu.memory_space<vmem>>, vector<1x16x3xf32>
    %32 = vector.shape_cast %31 : vector<1x16x3xf32> to vector<16x3xf32>
    %cst_11 = arith.constant dense<0.000000e+00> : vector<16x256xf32>
    %33 = tpu.matmul %32, %30, %cst_11 {dimension_numbers = #tpu.dot_dimension_numbers<[1], [0], [0], [1], [0, 0, 1, 1], [], []>} : vector<16x3xf32>, vector<3x256xf32>, vector<16x256xf32> -> vector<16x256xf32>
    %34 = arith.addf %23, %33 : vector<16x256xf32>
    %cst_12 = arith.constant 0.000000e+00 : f32
    %35 = vector.broadcast %cst_12 : f32 to vector<3x16xf32>
    %36 = vector.extract_strided_slice %1 {offsets = [0, 0], sizes = [3, 240], strides = [1, 1]} : vector<3x256xf32> to vector<3x240xf32>
    %37 = tpu.concatenate %35, %36 in 1 : vector<3x16xf32>, vector<3x240xf32> -> vector<3x256xf32>
    %c1 = arith.constant 1 : index
    %c0_13 = arith.constant 0 : index
    %c0_14 = arith.constant 0 : index
    %38 = vector.load %arg2[%c1, %c0_13, %c0_14] : memref<9x16x3xf32, #tpu.memory_space<vmem>>, vector<1x16x3xf32>
    %39 = vector.shape_cast %38 : vector<1x16x3xf32> to vector<16x3xf32>
    %cst_15 = arith.constant dense<0.000000e+00> : vector<16x256xf32>
    %40 = tpu.matmul %39, %37, %cst_15 {dimension_numbers = #tpu.dot_dimension_numbers<[1], [0], [0], [1], [0, 0, 1, 1], [], []>} : vector<16x3xf32>, vector<3x256xf32>, vector<16x256xf32> -> vector<16x256xf32>
    %41 = arith.addf %34, %40 : vector<16x256xf32>
    %cst_16 = arith.constant 0.000000e+00 : f32
    %42 = vector.broadcast %cst_16 : f32 to vector<3x15xf32>
    %43 = vector.extract_strided_slice %1 {offsets = [0, 0], sizes = [3, 241], strides = [1, 1]} : vector<3x256xf32> to vector<3x241xf32>
    %44 = tpu.concatenate %42, %43 in 1 : vector<3x15xf32>, vector<3x241xf32> -> vector<3x256xf32>
    %cst_17 = arith.constant 0.000000e+00 : f32
    %45 = vector.shape_cast %22 : vector<1x256xi1> to vector<1x256xi1>
    %46 = vector.broadcast %45 : vector<1x256xi1> to vector<3x256xi1>
    %47 = vector.broadcast %cst_17 : f32 to vector<3x256xf32>
    %48 = arith.select %46, %44, %47 : vector<3x256xi1>, vector<3x256xf32>
    %c2 = arith.constant 2 : index
    %c0_18 = arith.constant 0 : index
    %c0_19 = arith.constant 0 : index
    %49 = vector.load %arg2[%c2, %c0_18, %c0_19] : memref<9x16x3xf32, #tpu.memory_space<vmem>>, vector<1x16x3xf32>
    %50 = vector.shape_cast %49 : vector<1x16x3xf32> to vector<16x3xf32>
    %cst_20 = arith.constant dense<0.000000e+00> : vector<16x256xf32>
    %51 = tpu.matmul %50, %48, %cst_20 {dimension_numbers = #tpu.dot_dimension_numbers<[1], [0], [0], [1], [0, 0, 1, 1], [], []>} : vector<16x3xf32>, vector<3x256xf32>, vector<16x256xf32> -> vector<16x256xf32>
    %52 = arith.addf %41, %51 : vector<16x256xf32>
    %cst_21 = arith.constant 0.000000e+00 : f32
    %53 = vector.broadcast %cst_21 : f32 to vector<3x1xf32>
    %54 = vector.extract_strided_slice %1 {offsets = [0, 0], sizes = [3, 255], strides = [1, 1]} : vector<3x256xf32> to vector<3x255xf32>
    %55 = tpu.concatenate %53, %54 in 1 : vector<3x1xf32>, vector<3x255xf32> -> vector<3x256xf32>
    %cst_22 = arith.constant 0.000000e+00 : f32
    %56 = vector.shape_cast %20 : vector<1x256xi1> to vector<1x256xi1>
    %57 = vector.broadcast %56 : vector<1x256xi1> to vector<3x256xi1>
    %58 = vector.broadcast %cst_22 : f32 to vector<3x256xf32>
    %59 = arith.select %57, %55, %58 : vector<3x256xi1>, vector<3x256xf32>
    %c3 = arith.constant 3 : index
    %c0_23 = arith.constant 0 : index
    %c0_24 = arith.constant 0 : index
    %60 = vector.load %arg2[%c3, %c0_23, %c0_24] : memref<9x16x3xf32, #tpu.memory_space<vmem>>, vector<1x16x3xf32>
    %61 = vector.shape_cast %60 : vector<1x16x3xf32> to vector<16x3xf32>
    %cst_25 = arith.constant dense<0.000000e+00> : vector<16x256xf32>
    %62 = tpu.matmul %61, %59, %cst_25 {dimension_numbers = #tpu.dot_dimension_numbers<[1], [0], [0], [1], [0, 0, 1, 1], [], []>} : vector<16x3xf32>, vector<3x256xf32>, vector<16x256xf32> -> vector<16x256xf32>
    %63 = arith.addf %52, %62 : vector<16x256xf32>
    %c4 = arith.constant 4 : index
    %c0_26 = arith.constant 0 : index
    %c0_27 = arith.constant 0 : index
    %64 = vector.load %arg2[%c4, %c0_26, %c0_27] : memref<9x16x3xf32, #tpu.memory_space<vmem>>, vector<1x16x3xf32>
    %65 = vector.shape_cast %64 : vector<1x16x3xf32> to vector<16x3xf32>
    %cst_28 = arith.constant dense<0.000000e+00> : vector<16x256xf32>
    %66 = tpu.matmul %65, %1, %cst_28 {dimension_numbers = #tpu.dot_dimension_numbers<[1], [0], [0], [1], [0, 0, 1, 1], [], []>} : vector<16x3xf32>, vector<3x256xf32>, vector<16x256xf32> -> vector<16x256xf32>
    %67 = arith.addf %63, %66 : vector<16x256xf32>
    %cst_29 = arith.constant 0.000000e+00 : f32
    %68 = vector.broadcast %cst_29 : f32 to vector<3x1xf32>
    %69 = vector.extract_strided_slice %1 {offsets = [0, 1], sizes = [3, 255], strides = [1, 1]} : vector<3x256xf32> to vector<3x255xf32>
    %70 = tpu.concatenate %69, %68 in 1 : vector<3x255xf32>, vector<3x1xf32> -> vector<3x256xf32>
    %cst_30 = arith.constant 0.000000e+00 : f32
    %71 = vector.shape_cast %22 : vector<1x256xi1> to vector<1x256xi1>
    %72 = vector.broadcast %71 : vector<1x256xi1> to vector<3x256xi1>
    %73 = vector.broadcast %cst_30 : f32 to vector<3x256xf32>
    %74 = arith.select %72, %70, %73 : vector<3x256xi1>, vector<3x256xf32>
    %c5 = arith.constant 5 : index
    %c0_31 = arith.constant 0 : index
    %c0_32 = arith.constant 0 : index
    %75 = vector.load %arg2[%c5, %c0_31, %c0_32] : memref<9x16x3xf32, #tpu.memory_space<vmem>>, vector<1x16x3xf32>
    %76 = vector.shape_cast %75 : vector<1x16x3xf32> to vector<16x3xf32>
    %cst_33 = arith.constant dense<0.000000e+00> : vector<16x256xf32>
    %77 = tpu.matmul %76, %74, %cst_33 {dimension_numbers = #tpu.dot_dimension_numbers<[1], [0], [0], [1], [0, 0, 1, 1], [], []>} : vector<16x3xf32>, vector<3x256xf32>, vector<16x256xf32> -> vector<16x256xf32>
    %78 = arith.addf %67, %77 : vector<16x256xf32>
    %cst_34 = arith.constant 0.000000e+00 : f32
    %79 = vector.broadcast %cst_34 : f32 to vector<3x15xf32>
    %80 = vector.extract_strided_slice %1 {offsets = [0, 15], sizes = [3, 241], strides = [1, 1]} : vector<3x256xf32> to vector<3x241xf32>
    %81 = tpu.concatenate %80, %79 in 1 : vector<3x241xf32>, vector<3x15xf32> -> vector<3x256xf32>
    %cst_35 = arith.constant 0.000000e+00 : f32
    %82 = vector.shape_cast %20 : vector<1x256xi1> to vector<1x256xi1>
    %83 = vector.broadcast %82 : vector<1x256xi1> to vector<3x256xi1>
    %84 = vector.broadcast %cst_35 : f32 to vector<3x256xf32>
    %85 = arith.select %83, %81, %84 : vector<3x256xi1>, vector<3x256xf32>
    %c6 = arith.constant 6 : index
    %c0_36 = arith.constant 0 : index
    %c0_37 = arith.constant 0 : index
    %86 = vector.load %arg2[%c6, %c0_36, %c0_37] : memref<9x16x3xf32, #tpu.memory_space<vmem>>, vector<1x16x3xf32>
    %87 = vector.shape_cast %86 : vector<1x16x3xf32> to vector<16x3xf32>
    %cst_38 = arith.constant dense<0.000000e+00> : vector<16x256xf32>
    %88 = tpu.matmul %87, %85, %cst_38 {dimension_numbers = #tpu.dot_dimension_numbers<[1], [0], [0], [1], [0, 0, 1, 1], [], []>} : vector<16x3xf32>, vector<3x256xf32>, vector<16x256xf32> -> vector<16x256xf32>
    %89 = arith.addf %78, %88 : vector<16x256xf32>
    %cst_39 = arith.constant 0.000000e+00 : f32
    %90 = vector.broadcast %cst_39 : f32 to vector<3x16xf32>
    %91 = vector.extract_strided_slice %1 {offsets = [0, 16], sizes = [3, 240], strides = [1, 1]} : vector<3x256xf32> to vector<3x240xf32>
    %92 = tpu.concatenate %91, %90 in 1 : vector<3x240xf32>, vector<3x16xf32> -> vector<3x256xf32>
    %c7 = arith.constant 7 : index
    %c0_40 = arith.constant 0 : index
    %c0_41 = arith.constant 0 : index
    %93 = vector.load %arg2[%c7, %c0_40, %c0_41] : memref<9x16x3xf32, #tpu.memory_space<vmem>>, vector<1x16x3xf32>
    %94 = vector.shape_cast %93 : vector<1x16x3xf32> to vector<16x3xf32>
    %cst_42 = arith.constant dense<0.000000e+00> : vector<16x256xf32>
    %95 = tpu.matmul %94, %92, %cst_42 {dimension_numbers = #tpu.dot_dimension_numbers<[1], [0], [0], [1], [0, 0, 1, 1], [], []>} : vector<16x3xf32>, vector<3x256xf32>, vector<16x256xf32> -> vector<16x256xf32>
    %96 = arith.addf %89, %95 : vector<16x256xf32>
    %cst_43 = arith.constant 0.000000e+00 : f32
    %97 = vector.broadcast %cst_43 : f32 to vector<3x17xf32>
    %98 = vector.extract_strided_slice %1 {offsets = [0, 17], sizes = [3, 239], strides = [1, 1]} : vector<3x256xf32> to vector<3x239xf32>
    %99 = tpu.concatenate %98, %97 in 1 : vector<3x239xf32>, vector<3x17xf32> -> vector<3x256xf32>
    %cst_44 = arith.constant 0.000000e+00 : f32
    %100 = vector.shape_cast %22 : vector<1x256xi1> to vector<1x256xi1>
    %101 = vector.broadcast %100 : vector<1x256xi1> to vector<3x256xi1>
    %102 = vector.broadcast %cst_44 : f32 to vector<3x256xf32>
    %103 = arith.select %101, %99, %102 : vector<3x256xi1>, vector<3x256xf32>
    %c8 = arith.constant 8 : index
    %c0_45 = arith.constant 0 : index
    %c0_46 = arith.constant 0 : index
    %104 = vector.load %arg2[%c8, %c0_45, %c0_46] : memref<9x16x3xf32, #tpu.memory_space<vmem>>, vector<1x16x3xf32>
    %105 = vector.shape_cast %104 : vector<1x16x3xf32> to vector<16x3xf32>
    %cst_47 = arith.constant dense<0.000000e+00> : vector<16x256xf32>
    %106 = tpu.matmul %105, %103, %cst_47 {dimension_numbers = #tpu.dot_dimension_numbers<[1], [0], [0], [1], [0, 0, 1, 1], [], []>} : vector<16x3xf32>, vector<3x256xf32>, vector<16x256xf32> -> vector<16x256xf32>
    %107 = arith.addf %96, %106 : vector<16x256xf32>
    %c0_48 = arith.constant 0 : index
    %c0_49 = arith.constant 0 : index
    %c0_50 = arith.constant 0 : index
    %108 = vector.load %arg3[%c0_48, %c0_49, %c0_50] : memref<1x16x256xf32, #tpu.memory_space<vmem>>, vector<1x16x256xf32>
    %109 = vector.shape_cast %108 : vector<1x16x256xf32> to vector<16x256xf32>
    %110 = vector.shape_cast %107 : vector<16x256xf32> to vector<1x16x256xf32>
    tpu.vector_store %arg3[%c0_48, %c0_49, %c0_50], %110 {strides = array<i32>} : memref<1x16x256xf32, #tpu.memory_space<vmem>>, vector<1x16x256xf32>,
    return
  }
  func.func @transform_0(%arg0: i32) -> (i32, i32, i32) {
    %c0_i32 = arith.constant 0 : i32
    %c0_i32_0 = arith.constant 0 : i32
    %c0_i32_1 = arith.constant 0 : i32
    return %arg0, %c0_i32, %c0_i32_0 : i32, i32, i32
  }
  func.func @transform_1(%arg0: i32) -> (i32, i32, i32) {
    %c0_i32 = arith.constant 0 : i32
    %c0_i32_0 = arith.constant 0 : i32
    %c0_i32_1 = arith.constant 0 : i32
    %c0_i32_2 = arith.constant 0 : i32
    return %c0_i32, %c0_i32_0, %c0_i32_1 : i32, i32, i32
  }
  func.func @transform_2(%arg0: i32) -> (i32, i32, i32) {
    %c0_i32 = arith.constant 0 : i32
    %c0_i32_0 = arith.constant 0 : i32
    %c0_i32_1 = arith.constant 0 : i32
    return %arg0, %c0_i32, %c0_i32_0 : i32, i32, i32
  }
}

module attributes {stable_mosaic.version = 11 : i64} {
  func.func @_conv3x3_kernel(%arg0: i32, %arg1: memref<1x32x256xf32, #tpu.memory_space<vmem>>, %arg2: memref<9x16x32xf32, #tpu.memory_space<vmem>>, %arg3: memref<1x16x256xf32, #tpu.memory_space<vmem>>) attributes {dimension_semantics = [#tpu.dimension_semantics<parallel>], iteration_bounds = array<i64: 2>, scalar_prefetch = 0 : i64, scratch_operands = 0 : i64, tpu.core_type = #tpu.core_type<tc>, window_params = [{transform_indices = @transform_0, window_bounds = array<i64: 1, 32, 256>}, {pipeline_mode = #tpu.pipeline_mode<synchronous>, transform_indices = @transform_1, window_bounds = array<i64: 9, 16, 32>}, {transform_indices = @transform_2, window_bounds = array<i64: 1, 16, 256>}]} {
    %c0 = arith.constant 0 : index
    %c0_0 = arith.constant 0 : index
    %c0_1 = arith.constant 0 : index
    %0 = vector.load %arg1[%c0, %c0_0, %c0_1] : memref<1x32x256xf32, #tpu.memory_space<vmem>>, vector<1x32x256xf32>
    %1 = vector.shape_cast %0 : vector<1x32x256xf32> to vector<32x256xf32>
    %2 = tpu.iota {dimensions = array<i32: 1>} : vector<1x256xi32>
    %c16_i32 = arith.constant 16 : i32
    %c0_i32 = arith.constant 0 : i32
    %3 = arith.cmpi eq, %c16_i32, %c0_i32 : i32
    %c1_i32 = arith.constant 1 : i32
    %4 = arith.select %3, %c1_i32, %c16_i32 : i32
    %5 = vector.broadcast %4 : i32 to vector<1x256xi32>
    %6 = arith.remsi %2, %5 : vector<1x256xi32>
    %c0_i32_2 = arith.constant 0 : i32
    %7 = vector.broadcast %c0_i32_2 : i32 to vector<1x256xi32>
    %8 = arith.cmpi ne, %6, %7 : vector<1x256xi32>
    %c0_i32_3 = arith.constant 0 : i32
    %9 = vector.broadcast %c0_i32_3 : i32 to vector<1x256xi32>
    %10 = arith.cmpi slt, %6, %9 : vector<1x256xi32>
    %c0_i32_4 = arith.constant 0 : i32
    %11 = arith.cmpi slt, %4, %c0_i32_4 : i32
    %12 = vector.broadcast %11 : i1 to vector<1x256xi1>
    %13 = vector.broadcast %12 : vector<1x256xi1> to vector<1x256xi1>
    %14 = arith.xori %10, %13 : vector<1x256xi1>
    %15 = arith.andi %14, %8 : vector<1x256xi1>
    %16 = vector.broadcast %4 : i32 to vector<1x256xi32>
    %17 = arith.addi %6, %16 : vector<1x256xi32>
    %18 = arith.select %15, %17, %6 : vector<1x256xi1>, vector<1x256xi32>
    %c1_i32_5 = arith.constant 1 : i32
    %19 = vector.broadcast %c1_i32_5 : i32 to vector<1x256xi32>
    %20 = arith.cmpi sge, %18, %19 : vector<1x256xi32>
    %c14_i32 = arith.constant 14 : i32
    %21 = vector.broadcast %c14_i32 : i32 to vector<1x256xi32>
    %22 = arith.cmpi sle, %18, %21 : vector<1x256xi32>
    %cst = arith.constant 0.000000e+00 : f32
    %23 = vector.broadcast %cst : f32 to vector<16x256xf32>
    %cst_6 = arith.constant 0.000000e+00 : f32
    %24 = vector.broadcast %cst_6 : f32 to vector<32x17xf32>
    %25 = vector.extract_strided_slice %1 {offsets = [0, 0], sizes = [32, 239], strides = [1, 1]} : vector<32x256xf32> to vector<32x239xf32>
    %26 = tpu.concatenate %24, %25 in 1 : vector<32x17xf32>, vector<32x239xf32> -> vector<32x256xf32>
    %cst_7 = arith.constant 0.000000e+00 : f32
    %27 = vector.shape_cast %20 : vector<1x256xi1> to vector<1x256xi1>
    %28 = vector.broadcast %27 : vector<1x256xi1> to vector<32x256xi1>
    %29 = vector.broadcast %cst_7 : f32 to vector<32x256xf32>
    %30 = arith.select %28, %26, %29 : vector<32x256xi1>, vector<32x256xf32>
    %c0_8 = arith.constant 0 : index
    %c0_9 = arith.constant 0 : index
    %c0_10 = arith.constant 0 : index
    %31 = vector.load %arg2[%c0_8, %c0_9, %c0_10] : memref<9x16x32xf32, #tpu.memory_space<vmem>>, vector<1x16x32xf32>
    %32 = vector.shape_cast %31 : vector<1x16x32xf32> to vector<16x32xf32>
    %cst_11 = arith.constant dense<0.000000e+00> : vector<16x256xf32>
    %33 = tpu.matmul %32, %30, %cst_11 {dimension_numbers = #tpu.dot_dimension_numbers<[1], [0], [0], [1], [0, 0, 1, 1], [], []>} : vector<16x32xf32>, vector<32x256xf32>, vector<16x256xf32> -> vector<16x256xf32>
    %34 = arith.addf %23, %33 : vector<16x256xf32>
    %cst_12 = arith.constant 0.000000e+00 : f32
    %35 = vector.broadcast %cst_12 : f32 to vector<32x16xf32>
    %36 = vector.extract_strided_slice %1 {offsets = [0, 0], sizes = [32, 240], strides = [1, 1]} : vector<32x256xf32> to vector<32x240xf32>
    %37 = tpu.concatenate %35, %36 in 1 : vector<32x16xf32>, vector<32x240xf32> -> vector<32x256xf32>
    %c1 = arith.constant 1 : index
    %c0_13 = arith.constant 0 : index
    %c0_14 = arith.constant 0 : index
    %38 = vector.load %arg2[%c1, %c0_13, %c0_14] : memref<9x16x32xf32, #tpu.memory_space<vmem>>, vector<1x16x32xf32>
    %39 = vector.shape_cast %38 : vector<1x16x32xf32> to vector<16x32xf32>
    %cst_15 = arith.constant dense<0.000000e+00> : vector<16x256xf32>
    %40 = tpu.matmul %39, %37, %cst_15 {dimension_numbers = #tpu.dot_dimension_numbers<[1], [0], [0], [1], [0, 0, 1, 1], [], []>} : vector<16x32xf32>, vector<32x256xf32>, vector<16x256xf32> -> vector<16x256xf32>
    %41 = arith.addf %34, %40 : vector<16x256xf32>
    %cst_16 = arith.constant 0.000000e+00 : f32
    %42 = vector.broadcast %cst_16 : f32 to vector<32x15xf32>
    %43 = vector.extract_strided_slice %1 {offsets = [0, 0], sizes = [32, 241], strides = [1, 1]} : vector<32x256xf32> to vector<32x241xf32>
    %44 = tpu.concatenate %42, %43 in 1 : vector<32x15xf32>, vector<32x241xf32> -> vector<32x256xf32>
    %cst_17 = arith.constant 0.000000e+00 : f32
    %45 = vector.shape_cast %22 : vector<1x256xi1> to vector<1x256xi1>
    %46 = vector.broadcast %45 : vector<1x256xi1> to vector<32x256xi1>
    %47 = vector.broadcast %cst_17 : f32 to vector<32x256xf32>
    %48 = arith.select %46, %44, %47 : vector<32x256xi1>, vector<32x256xf32>
    %c2 = arith.constant 2 : index
    %c0_18 = arith.constant 0 : index
    %c0_19 = arith.constant 0 : index
    %49 = vector.load %arg2[%c2, %c0_18, %c0_19] : memref<9x16x32xf32, #tpu.memory_space<vmem>>, vector<1x16x32xf32>
    %50 = vector.shape_cast %49 : vector<1x16x32xf32> to vector<16x32xf32>
    %cst_20 = arith.constant dense<0.000000e+00> : vector<16x256xf32>
    %51 = tpu.matmul %50, %48, %cst_20 {dimension_numbers = #tpu.dot_dimension_numbers<[1], [0], [0], [1], [0, 0, 1, 1], [], []>} : vector<16x32xf32>, vector<32x256xf32>, vector<16x256xf32> -> vector<16x256xf32>
    %52 = arith.addf %41, %51 : vector<16x256xf32>
    %cst_21 = arith.constant 0.000000e+00 : f32
    %53 = vector.broadcast %cst_21 : f32 to vector<32x1xf32>
    %54 = vector.extract_strided_slice %1 {offsets = [0, 0], sizes = [32, 255], strides = [1, 1]} : vector<32x256xf32> to vector<32x255xf32>
    %55 = tpu.concatenate %53, %54 in 1 : vector<32x1xf32>, vector<32x255xf32> -> vector<32x256xf32>
    %cst_22 = arith.constant 0.000000e+00 : f32
    %56 = vector.shape_cast %20 : vector<1x256xi1> to vector<1x256xi1>
    %57 = vector.broadcast %56 : vector<1x256xi1> to vector<32x256xi1>
    %58 = vector.broadcast %cst_22 : f32 to vector<32x256xf32>
    %59 = arith.select %57, %55, %58 : vector<32x256xi1>, vector<32x256xf32>
    %c3 = arith.constant 3 : index
    %c0_23 = arith.constant 0 : index
    %c0_24 = arith.constant 0 : index
    %60 = vector.load %arg2[%c3, %c0_23, %c0_24] : memref<9x16x32xf32, #tpu.memory_space<vmem>>, vector<1x16x32xf32>
    %61 = vector.shape_cast %60 : vector<1x16x32xf32> to vector<16x32xf32>
    %cst_25 = arith.constant dense<0.000000e+00> : vector<16x256xf32>
    %62 = tpu.matmul %61, %59, %cst_25 {dimension_numbers = #tpu.dot_dimension_numbers<[1], [0], [0], [1], [0, 0, 1, 1], [], []>} : vector<16x32xf32>, vector<32x256xf32>, vector<16x256xf32> -> vector<16x256xf32>
    %63 = arith.addf %52, %62 : vector<16x256xf32>
    %c4 = arith.constant 4 : index
    %c0_26 = arith.constant 0 : index
    %c0_27 = arith.constant 0 : index
    %64 = vector.load %arg2[%c4, %c0_26, %c0_27] : memref<9x16x32xf32, #tpu.memory_space<vmem>>, vector<1x16x32xf32>
    %65 = vector.shape_cast %64 : vector<1x16x32xf32> to vector<16x32xf32>
    %cst_28 = arith.constant dense<0.000000e+00> : vector<16x256xf32>
    %66 = tpu.matmul %65, %1, %cst_28 {dimension_numbers = #tpu.dot_dimension_numbers<[1], [0], [0], [1], [0, 0, 1, 1], [], []>} : vector<16x32xf32>, vector<32x256xf32>, vector<16x256xf32> -> vector<16x256xf32>
    %67 = arith.addf %63, %66 : vector<16x256xf32>
    %cst_29 = arith.constant 0.000000e+00 : f32
    %68 = vector.broadcast %cst_29 : f32 to vector<32x1xf32>
    %69 = vector.extract_strided_slice %1 {offsets = [0, 1], sizes = [32, 255], strides = [1, 1]} : vector<32x256xf32> to vector<32x255xf32>
    %70 = tpu.concatenate %69, %68 in 1 : vector<32x255xf32>, vector<32x1xf32> -> vector<32x256xf32>
    %cst_30 = arith.constant 0.000000e+00 : f32
    %71 = vector.shape_cast %22 : vector<1x256xi1> to vector<1x256xi1>
    %72 = vector.broadcast %71 : vector<1x256xi1> to vector<32x256xi1>
    %73 = vector.broadcast %cst_30 : f32 to vector<32x256xf32>
    %74 = arith.select %72, %70, %73 : vector<32x256xi1>, vector<32x256xf32>
    %c5 = arith.constant 5 : index
    %c0_31 = arith.constant 0 : index
    %c0_32 = arith.constant 0 : index
    %75 = vector.load %arg2[%c5, %c0_31, %c0_32] : memref<9x16x32xf32, #tpu.memory_space<vmem>>, vector<1x16x32xf32>
    %76 = vector.shape_cast %75 : vector<1x16x32xf32> to vector<16x32xf32>
    %cst_33 = arith.constant dense<0.000000e+00> : vector<16x256xf32>
    %77 = tpu.matmul %76, %74, %cst_33 {dimension_numbers = #tpu.dot_dimension_numbers<[1], [0], [0], [1], [0, 0, 1, 1], [], []>} : vector<16x32xf32>, vector<32x256xf32>, vector<16x256xf32> -> vector<16x256xf32>
    %78 = arith.addf %67, %77 : vector<16x256xf32>
    %cst_34 = arith.constant 0.000000e+00 : f32
    %79 = vector.broadcast %cst_34 : f32 to vector<32x15xf32>
    %80 = vector.extract_strided_slice %1 {offsets = [0, 15], sizes = [32, 241], strides = [1, 1]} : vector<32x256xf32> to vector<32x241xf32>
    %81 = tpu.concatenate %80, %79 in 1 : vector<32x241xf32>, vector<32x15xf32> -> vector<32x256xf32>
    %cst_35 = arith.constant 0.000000e+00 : f32
    %82 = vector.shape_cast %20 : vector<1x256xi1> to vector<1x256xi1>
    %83 = vector.broadcast %82 : vector<1x256xi1> to vector<32x256xi1>
    %84 = vector.broadcast %cst_35 : f32 to vector<32x256xf32>
    %85 = arith.select %83, %81, %84 : vector<32x256xi1>, vector<32x256xf32>
    %c6 = arith.constant 6 : index
    %c0_36 = arith.constant 0 : index
    %c0_37 = arith.constant 0 : index
    %86 = vector.load %arg2[%c6, %c0_36, %c0_37] : memref<9x16x32xf32, #tpu.memory_space<vmem>>, vector<1x16x32xf32>
    %87 = vector.shape_cast %86 : vector<1x16x32xf32> to vector<16x32xf32>
    %cst_38 = arith.constant dense<0.000000e+00> : vector<16x256xf32>
    %88 = tpu.matmul %87, %85, %cst_38 {dimension_numbers = #tpu.dot_dimension_numbers<[1], [0], [0], [1], [0, 0, 1, 1], [], []>} : vector<16x32xf32>, vector<32x256xf32>, vector<16x256xf32> -> vector<16x256xf32>
    %89 = arith.addf %78, %88 : vector<16x256xf32>
    %cst_39 = arith.constant 0.000000e+00 : f32
    %90 = vector.broadcast %cst_39 : f32 to vector<32x16xf32>
    %91 = vector.extract_strided_slice %1 {offsets = [0, 16], sizes = [32, 240], strides = [1, 1]} : vector<32x256xf32> to vector<32x240xf32>
    %92 = tpu.concatenate %91, %90 in 1 : vector<32x240xf32>, vector<32x16xf32> -> vector<32x256xf32>
    %c7 = arith.constant 7 : index
    %c0_40 = arith.constant 0 : index
    %c0_41 = arith.constant 0 : index
    %93 = vector.load %arg2[%c7, %c0_40, %c0_41] : memref<9x16x32xf32, #tpu.memory_space<vmem>>, vector<1x16x32xf32>
    %94 = vector.shape_cast %93 : vector<1x16x32xf32> to vector<16x32xf32>
    %cst_42 = arith.constant dense<0.000000e+00> : vector<16x256xf32>
    %95 = tpu.matmul %94, %92, %cst_42 {dimension_numbers = #tpu.dot_dimension_numbers<[1], [0], [0], [1], [0, 0, 1, 1], [], []>} : vector<16x32xf32>, vector<32x256xf32>, vector<16x256xf32> -> vector<16x256xf32>
    %96 = arith.addf %89, %95 : vector<16x256xf32>
    %cst_43 = arith.constant 0.000000e+00 : f32
    %97 = vector.broadcast %cst_43 : f32 to vector<32x17xf32>
    %98 = vector.extract_strided_slice %1 {offsets = [0, 17], sizes = [32, 239], strides = [1, 1]} : vector<32x256xf32> to vector<32x239xf32>
    %99 = tpu.concatenate %98, %97 in 1 : vector<32x239xf32>, vector<32x17xf32> -> vector<32x256xf32>
    %cst_44 = arith.constant 0.000000e+00 : f32
    %100 = vector.shape_cast %22 : vector<1x256xi1> to vector<1x256xi1>
    %101 = vector.broadcast %100 : vector<1x256xi1> to vector<32x256xi1>
    %102 = vector.broadcast %cst_44 : f32 to vector<32x256xf32>
    %103 = arith.select %101, %99, %102 : vector<32x256xi1>, vector<32x256xf32>
    %c8 = arith.constant 8 : index
    %c0_45 = arith.constant 0 : index
    %c0_46 = arith.constant 0 : index
    %104 = vector.load %arg2[%c8, %c0_45, %c0_46] : memref<9x16x32xf32, #tpu.memory_space<vmem>>, vector<1x16x32xf32>
    %105 = vector.shape_cast %104 : vector<1x16x32xf32> to vector<16x32xf32>
    %cst_47 = arith.constant dense<0.000000e+00> : vector<16x256xf32>
    %106 = tpu.matmul %105, %103, %cst_47 {dimension_numbers = #tpu.dot_dimension_numbers<[1], [0], [0], [1], [0, 0, 1, 1], [], []>} : vector<16x32xf32>, vector<32x256xf32>, vector<16x256xf32> -> vector<16x256xf32>
    %107 = arith.addf %96, %106 : vector<16x256xf32>
    %c0_48 = arith.constant 0 : index
    %c0_49 = arith.constant 0 : index
    %c0_50 = arith.constant 0 : index
    %108 = vector.load %arg3[%c0_48, %c0_49, %c0_50] : memref<1x16x256xf32, #tpu.memory_space<vmem>>, vector<1x16x256xf32>
    %109 = vector.shape_cast %108 : vector<1x16x256xf32> to vector<16x256xf32>
    %110 = vector.shape_cast %107 : vector<16x256xf32> to vector<1x16x256xf32>
    tpu.vector_store %arg3[%c0_48, %c0_49, %c0_50], %110 {strides = array<i32>} : memref<1x16x256xf32, #tpu.memory_space<vmem>>, vector<1x16x256xf32>,
    return
  }
  func.func @transform_0(%arg0: i32) -> (i32, i32, i32) {
    %c0_i32 = arith.constant 0 : i32
    %c0_i32_0 = arith.constant 0 : i32
    %c0_i32_1 = arith.constant 0 : i32
    return %arg0, %c0_i32, %c0_i32_0 : i32, i32, i32
  }
  func.func @transform_1(%arg0: i32) -> (i32, i32, i32) {
    %c0_i32 = arith.constant 0 : i32
    %c0_i32_0 = arith.constant 0 : i32
    %c0_i32_1 = arith.constant 0 : i32
    %c0_i32_2 = arith.constant 0 : i32
    return %c0_i32, %c0_i32_0, %c0_i32_1 : i32, i32, i32
  }
  func.func @transform_2(%arg0: i32) -> (i32, i32, i32) {
    %c0_i32 = arith.constant 0 : i32
    %c0_i32_0 = arith.constant 0 : i32
    %c0_i32_1 = arith.constant 0 : i32
    return %arg0, %c0_i32, %c0_i32_0 : i32, i32, i32
  }
}

module attributes {stable_mosaic.version = 11 : i64} {
  func.func @_group_rdb_kernel(%arg0: i32, %arg1: memref<1x16x256xf32, #tpu.memory_space<vmem>>, %arg2: memref<4x16x32xf32, #tpu.memory_space<vmem>>, %arg3: memref<36x8x16xf32, #tpu.memory_space<vmem>>, %arg4: memref<2x16x32xf32, #tpu.memory_space<vmem>>, %arg5: memref<2x16x16xf32, #tpu.memory_space<vmem>>, %arg6: memref<1x16x256xf32, #tpu.memory_space<vmem>>, %arg7: memref<32x256xf32, #tpu.memory_space<vmem>>) attributes {dimension_semantics = [#tpu.dimension_semantics<parallel>], iteration_bounds = array<i64: 2>, scalar_prefetch = 0 : i64, scratch_operands = 1 : i64, tpu.core_type = #tpu.core_type<tc>, window_params = [{transform_indices = @transform_0, window_bounds = array<i64: 1, 16, 256>}, {pipeline_mode = #tpu.pipeline_mode<synchronous>, transform_indices = @transform_1, window_bounds = array<i64: 4, 16, 32>}, {pipeline_mode = #tpu.pipeline_mode<synchronous>, transform_indices = @transform_2, window_bounds = array<i64: 36, 8, 16>}, {pipeline_mode = #tpu.pipeline_mode<synchronous>, transform_indices = @transform_3, window_bounds = array<i64: 2, 16, 32>}, {pipeline_mode = #tpu.pipeline_mode<synchronous>, transform_indices = @transform_4, window_bounds = array<i64: 2, 16, 16>}, {transform_indices = @transform_5, window_bounds = array<i64: 1, 16, 256>}]} {
    %0 = tpu.iota {dimensions = array<i32: 1>} : vector<1x256xi32>
    %c16_i32 = arith.constant 16 : i32
    %c0_i32 = arith.constant 0 : i32
    %1 = arith.cmpi eq, %c16_i32, %c0_i32 : i32
    %c1_i32 = arith.constant 1 : i32
    %2 = arith.select %1, %c1_i32, %c16_i32 : i32
    %3 = vector.broadcast %2 : i32 to vector<1x256xi32>
    %4 = arith.remsi %0, %3 : vector<1x256xi32>
    %c0_i32_0 = arith.constant 0 : i32
    %5 = vector.broadcast %c0_i32_0 : i32 to vector<1x256xi32>
    %6 = arith.cmpi ne, %4, %5 : vector<1x256xi32>
    %c0_i32_1 = arith.constant 0 : i32
    %7 = vector.broadcast %c0_i32_1 : i32 to vector<1x256xi32>
    %8 = arith.cmpi slt, %4, %7 : vector<1x256xi32>
    %c0_i32_2 = arith.constant 0 : i32
    %9 = arith.cmpi slt, %2, %c0_i32_2 : i32
    %10 = vector.broadcast %9 : i1 to vector<1x256xi1>
    %11 = vector.broadcast %10 : vector<1x256xi1> to vector<1x256xi1>
    %12 = arith.xori %8, %11 : vector<1x256xi1>
    %13 = arith.andi %12, %6 : vector<1x256xi1>
    %14 = vector.broadcast %2 : i32 to vector<1x256xi32>
    %15 = arith.addi %4, %14 : vector<1x256xi32>
    %16 = arith.select %13, %15, %4 : vector<1x256xi1>, vector<1x256xi32>
    %c1_i32_3 = arith.constant 1 : i32
    %17 = vector.broadcast %c1_i32_3 : i32 to vector<1x256xi32>
    %18 = arith.cmpi sge, %16, %17 : vector<1x256xi32>
    %c14_i32 = arith.constant 14 : i32
    %19 = vector.broadcast %c14_i32 : i32 to vector<1x256xi32>
    %20 = arith.cmpi sle, %16, %19 : vector<1x256xi32>
    %c0 = arith.constant 0 : index
    %c0_4 = arith.constant 0 : index
    %c0_5 = arith.constant 0 : index
    %21 = vector.load %arg1[%c0, %c0_4, %c0_5] : memref<1x16x256xf32, #tpu.memory_space<vmem>>, vector<1x16x256xf32>
    %22 = vector.shape_cast %21 : vector<1x16x256xf32> to vector<16x256xf32>
    %cst = arith.constant 0.000000e+00 : f32
    %23 = vector.broadcast %cst : f32 to vector<16x256xf32>
    %24 = arith.maximumf %22, %23 : vector<16x256xf32>
    %cst_6 = arith.constant 0.000000e+00 : f32
    %25 = vector.broadcast %cst_6 : f32 to vector<16x256xf32>
    %c0_7 = arith.constant 0 : index
    %c0_8 = arith.constant 0 : index
    %26 = vector.load %arg7[%c0_7, %c0_8] : memref<32x256xf32, #tpu.memory_space<vmem>>, vector<16x256xf32>
    tpu.vector_store %arg7[%c0_7, %c0_8], %24 {strides = array<i32>} : memref<32x256xf32, #tpu.memory_space<vmem>>, vector<16x256xf32>,
    %c0_9 = arith.constant 0 : index
    %c0_10 = arith.constant 0 : index
    %27 = vector.load %arg7[%c0_9, %c0_10] : memref<32x256xf32, #tpu.memory_space<vmem>>, vector<16x256xf32>
    %cst_11 = arith.constant 0.000000e+00 : f32
    %28 = vector.broadcast %cst_11 : f32 to vector<16x256xf32>
    %29 = arith.maximumf %27, %28 : vector<16x256xf32>
    %c0_12 = arith.constant 0 : index
    %c0_13 = arith.constant 0 : index
    %c0_14 = arith.constant 0 : index
    %30 = vector.load %arg2[%c0_12, %c0_13, %c0_14] : memref<4x16x32xf32, #tpu.memory_space<vmem>>, vector<1x16x32xf32>
    %31 = vector.shape_cast %30 : vector<1x16x32xf32> to vector<16x32xf32>
    %32 = vector.extract_strided_slice %31 {offsets = [0, 0], sizes = [16, 16], strides = [1, 1]} : vector<16x32xf32> to vector<16x16xf32>
    %cst_15 = arith.constant dense<0.000000e+00> : vector<16x256xf32>
    %33 = tpu.matmul %32, %29, %cst_15 {dimension_numbers = #tpu.dot_dimension_numbers<[1], [0], [0], [1], [0, 0, 1, 1], [], []>} : vector<16x16xf32>, vector<16x256xf32>, vector<16x256xf32> -> vector<16x256xf32>
    %cst_16 = arith.constant 0.000000e+00 : f32
    %34 = vector.broadcast %cst_16 : f32 to vector<16x256xf32>
    %35 = arith.maximumf %33, %34 : vector<16x256xf32>
    %cst_17 = arith.constant 0.000000e+00 : f32
    %36 = vector.broadcast %cst_17 : f32 to vector<8x256xf32>
    %cst_18 = arith.constant 0.000000e+00 : f32
    %37 = vector.broadcast %cst_18 : f32 to vector<16x17xf32>
    %38 = vector.extract_strided_slice %35 {offsets = [0, 0], sizes = [16, 239], strides = [1, 1]} : vector<16x256xf32> to vector<16x239xf32>
    %39 = tpu.concatenate %37, %38 in 1 : vector<16x17xf32>, vector<16x239xf32> -> vector<16x256xf32>
    %cst_19 = arith.constant 0.000000e+00 : f32
    %40 = vector.shape_cast %18 : vector<1x256xi1> to vector<1x256xi1>
    %41 = vector.broadcast %40 : vector<1x256xi1> to vector<16x256xi1>
    %42 = vector.broadcast %cst_19 : f32 to vector<16x256xf32>
    %43 = arith.select %41, %39, %42 : vector<16x256xi1>, vector<16x256xf32>
    %c0_20 = arith.constant 0 : index
    %c0_21 = arith.constant 0 : index
    %c0_22 = arith.constant 0 : index
    %44 = vector.load %arg3[%c0_20, %c0_21, %c0_22] : memref<36x8x16xf32, #tpu.memory_space<vmem>>, vector<1x8x16xf32>
    %45 = vector.shape_cast %44 : vector<1x8x16xf32> to vector<8x16xf32>
    %cst_23 = arith.constant dense<0.000000e+00> : vector<8x256xf32>
    %46 = tpu.matmul %45, %43, %cst_23 {dimension_numbers = #tpu.dot_dimension_numbers<[1], [0], [0], [1], [0, 0, 1, 1], [], []>} : vector<8x16xf32>, vector<16x256xf32>, vector<8x256xf32> -> vector<8x256xf32>
    %47 = arith.addf %36, %46 : vector<8x256xf32>
    %cst_24 = arith.constant 0.000000e+00 : f32
    %48 = vector.broadcast %cst_24 : f32 to vector<16x16xf32>
    %49 = vector.extract_strided_slice %35 {offsets = [0, 0], sizes = [16, 240], strides = [1, 1]} : vector<16x256xf32> to vector<16x240xf32>
    %50 = tpu.concatenate %48, %49 in 1 : vector<16x16xf32>, vector<16x240xf32> -> vector<16x256xf32>
    %c1 = arith.constant 1 : index
    %c0_25 = arith.constant 0 : index
    %c0_26 = arith.constant 0 : index
    %51 = vector.load %arg3[%c1, %c0_25, %c0_26] : memref<36x8x16xf32, #tpu.memory_space<vmem>>, vector<1x8x16xf32>
    %52 = vector.shape_cast %51 : vector<1x8x16xf32> to vector<8x16xf32>
    %cst_27 = arith.constant dense<0.000000e+00> : vector<8x256xf32>
    %53 = tpu.matmul %52, %50, %cst_27 {dimension_numbers = #tpu.dot_dimension_numbers<[1], [0], [0], [1], [0, 0, 1, 1], [], []>} : vector<8x16xf32>, vector<16x256xf32>, vector<8x256xf32> -> vector<8x256xf32>
    %54 = arith.addf %47, %53 : vector<8x256xf32>
    %cst_28 = arith.constant 0.000000e+00 : f32
    %55 = vector.broadcast %cst_28 : f32 to vector<16x15xf32>
    %56 = vector.extract_strided_slice %35 {offsets = [0, 0], sizes = [16, 241], strides = [1, 1]} : vector<16x256xf32> to vector<16x241xf32>
    %57 = tpu.concatenate %55, %56 in 1 : vector<16x15xf32>, vector<16x241xf32> -> vector<16x256xf32>
    %cst_29 = arith.constant 0.000000e+00 : f32
    %58 = vector.shape_cast %20 : vector<1x256xi1> to vector<1x256xi1>
    %59 = vector.broadcast %58 : vector<1x256xi1> to vector<16x256xi1>
    %60 = vector.broadcast %cst_29 : f32 to vector<16x256xf32>
    %61 = arith.select %59, %57, %60 : vector<16x256xi1>, vector<16x256xf32>
    %c2 = arith.constant 2 : index
    %c0_30 = arith.constant 0 : index
    %c0_31 = arith.constant 0 : index
    %62 = vector.load %arg3[%c2, %c0_30, %c0_31] : memref<36x8x16xf32, #tpu.memory_space<vmem>>, vector<1x8x16xf32>
    %63 = vector.shape_cast %62 : vector<1x8x16xf32> to vector<8x16xf32>
    %cst_32 = arith.constant dense<0.000000e+00> : vector<8x256xf32>
    %64 = tpu.matmul %63, %61, %cst_32 {dimension_numbers = #tpu.dot_dimension_numbers<[1], [0], [0], [1], [0, 0, 1, 1], [], []>} : vector<8x16xf32>, vector<16x256xf32>, vector<8x256xf32> -> vector<8x256xf32>
    %65 = arith.addf %54, %64 : vector<8x256xf32>
    %cst_33 = arith.constant 0.000000e+00 : f32
    %66 = vector.broadcast %cst_33 : f32 to vector<16x1xf32>
    %67 = vector.extract_strided_slice %35 {offsets = [0, 0], sizes = [16, 255], strides = [1, 1]} : vector<16x256xf32> to vector<16x255xf32>
    %68 = tpu.concatenate %66, %67 in 1 : vector<16x1xf32>, vector<16x255xf32> -> vector<16x256xf32>
    %cst_34 = arith.constant 0.000000e+00 : f32
    %69 = vector.shape_cast %18 : vector<1x256xi1> to vector<1x256xi1>
    %70 = vector.broadcast %69 : vector<1x256xi1> to vector<16x256xi1>
    %71 = vector.broadcast %cst_34 : f32 to vector<16x256xf32>
    %72 = arith.select %70, %68, %71 : vector<16x256xi1>, vector<16x256xf32>
    %c3 = arith.constant 3 : index
    %c0_35 = arith.constant 0 : index
    %c0_36 = arith.constant 0 : index
    %73 = vector.load %arg3[%c3, %c0_35, %c0_36] : memref<36x8x16xf32, #tpu.memory_space<vmem>>, vector<1x8x16xf32>
    %74 = vector.shape_cast %73 : vector<1x8x16xf32> to vector<8x16xf32>
    %cst_37 = arith.constant dense<0.000000e+00> : vector<8x256xf32>
    %75 = tpu.matmul %74, %72, %cst_37 {dimension_numbers = #tpu.dot_dimension_numbers<[1], [0], [0], [1], [0, 0, 1, 1], [], []>} : vector<8x16xf32>, vector<16x256xf32>, vector<8x256xf32> -> vector<8x256xf32>
    %76 = arith.addf %65, %75 : vector<8x256xf32>
    %c4 = arith.constant 4 : index
    %c0_38 = arith.constant 0 : index
    %c0_39 = arith.constant 0 : index
    %77 = vector.load %arg3[%c4, %c0_38, %c0_39] : memref<36x8x16xf32, #tpu.memory_space<vmem>>, vector<1x8x16xf32>
    %78 = vector.shape_cast %77 : vector<1x8x16xf32> to vector<8x16xf32>
    %cst_40 = arith.constant dense<0.000000e+00> : vector<8x256xf32>
    %79 = tpu.matmul %78, %35, %cst_40 {dimension_numbers = #tpu.dot_dimension_numbers<[1], [0], [0], [1], [0, 0, 1, 1], [], []>} : vector<8x16xf32>, vector<16x256xf32>, vector<8x256xf32> -> vector<8x256xf32>
    %80 = arith.addf %76, %79 : vector<8x256xf32>
    %cst_41 = arith.constant 0.000000e+00 : f32
    %81 = vector.broadcast %cst_41 : f32 to vector<16x1xf32>
    %82 = vector.extract_strided_slice %35 {offsets = [0, 1], sizes = [16, 255], strides = [1, 1]} : vector<16x256xf32> to vector<16x255xf32>
    %83 = tpu.concatenate %82, %81 in 1 : vector<16x255xf32>, vector<16x1xf32> -> vector<16x256xf32>
    %cst_42 = arith.constant 0.000000e+00 : f32
    %84 = vector.shape_cast %20 : vector<1x256xi1> to vector<1x256xi1>
    %85 = vector.broadcast %84 : vector<1x256xi1> to vector<16x256xi1>
    %86 = vector.broadcast %cst_42 : f32 to vector<16x256xf32>
    %87 = arith.select %85, %83, %86 : vector<16x256xi1>, vector<16x256xf32>
    %c5 = arith.constant 5 : index
    %c0_43 = arith.constant 0 : index
    %c0_44 = arith.constant 0 : index
    %88 = vector.load %arg3[%c5, %c0_43, %c0_44] : memref<36x8x16xf32, #tpu.memory_space<vmem>>, vector<1x8x16xf32>
    %89 = vector.shape_cast %88 : vector<1x8x16xf32> to vector<8x16xf32>
    %cst_45 = arith.constant dense<0.000000e+00> : vector<8x256xf32>
    %90 = tpu.matmul %89, %87, %cst_45 {dimension_numbers = #tpu.dot_dimension_numbers<[1], [0], [0], [1], [0, 0, 1, 1], [], []>} : vector<8x16xf32>, vector<16x256xf32>, vector<8x256xf32> -> vector<8x256xf32>
    %91 = arith.addf %80, %90 : vector<8x256xf32>
    %cst_46 = arith.constant 0.000000e+00 : f32
    %92 = vector.broadcast %cst_46 : f32 to vector<16x15xf32>
    %93 = vector.extract_strided_slice %35 {offsets = [0, 15], sizes = [16, 241], strides = [1, 1]} : vector<16x256xf32> to vector<16x241xf32>
    %94 = tpu.concatenate %93, %92 in 1 : vector<16x241xf32>, vector<16x15xf32> -> vector<16x256xf32>
    %cst_47 = arith.constant 0.000000e+00 : f32
    %95 = vector.shape_cast %18 : vector<1x256xi1> to vector<1x256xi1>
    %96 = vector.broadcast %95 : vector<1x256xi1> to vector<16x256xi1>
    %97 = vector.broadcast %cst_47 : f32 to vector<16x256xf32>
    %98 = arith.select %96, %94, %97 : vector<16x256xi1>, vector<16x256xf32>
    %c6 = arith.constant 6 : index
    %c0_48 = arith.constant 0 : index
    %c0_49 = arith.constant 0 : index
    %99 = vector.load %arg3[%c6, %c0_48, %c0_49] : memref<36x8x16xf32, #tpu.memory_space<vmem>>, vector<1x8x16xf32>
    %100 = vector.shape_cast %99 : vector<1x8x16xf32> to vector<8x16xf32>
    %cst_50 = arith.constant dense<0.000000e+00> : vector<8x256xf32>
    %101 = tpu.matmul %100, %98, %cst_50 {dimension_numbers = #tpu.dot_dimension_numbers<[1], [0], [0], [1], [0, 0, 1, 1], [], []>} : vector<8x16xf32>, vector<16x256xf32>, vector<8x256xf32> -> vector<8x256xf32>
    %102 = arith.addf %91, %101 : vector<8x256xf32>
    %cst_51 = arith.constant 0.000000e+00 : f32
    %103 = vector.broadcast %cst_51 : f32 to vector<16x16xf32>
    %104 = vector.extract_strided_slice %35 {offsets = [0, 16], sizes = [16, 240], strides = [1, 1]} : vector<16x256xf32> to vector<16x240xf32>
    %105 = tpu.concatenate %104, %103 in 1 : vector<16x240xf32>, vector<16x16xf32> -> vector<16x256xf32>
    %c7 = arith.constant 7 : index
    %c0_52 = arith.constant 0 : index
    %c0_53 = arith.constant 0 : index
    %106 = vector.load %arg3[%c7, %c0_52, %c0_53] : memref<36x8x16xf32, #tpu.memory_space<vmem>>, vector<1x8x16xf32>
    %107 = vector.shape_cast %106 : vector<1x8x16xf32> to vector<8x16xf32>
    %cst_54 = arith.constant dense<0.000000e+00> : vector<8x256xf32>
    %108 = tpu.matmul %107, %105, %cst_54 {dimension_numbers = #tpu.dot_dimension_numbers<[1], [0], [0], [1], [0, 0, 1, 1], [], []>} : vector<8x16xf32>, vector<16x256xf32>, vector<8x256xf32> -> vector<8x256xf32>
    %109 = arith.addf %102, %108 : vector<8x256xf32>
    %cst_55 = arith.constant 0.000000e+00 : f32
    %110 = vector.broadcast %cst_55 : f32 to vector<16x17xf32>
    %111 = vector.extract_strided_slice %35 {offsets = [0, 17], sizes = [16, 239], strides = [1, 1]} : vector<16x256xf32> to vector<16x239xf32>
    %112 = tpu.concatenate %111, %110 in 1 : vector<16x239xf32>, vector<16x17xf32> -> vector<16x256xf32>
    %cst_56 = arith.constant 0.000000e+00 : f32
    %113 = vector.shape_cast %20 : vector<1x256xi1> to vector<1x256xi1>
    %114 = vector.broadcast %113 : vector<1x256xi1> to vector<16x256xi1>
    %115 = vector.broadcast %cst_56 : f32 to vector<16x256xf32>
    %116 = arith.select %114, %112, %115 : vector<16x256xi1>, vector<16x256xf32>
    %c8 = arith.constant 8 : index
    %c0_57 = arith.constant 0 : index
    %c0_58 = arith.constant 0 : index
    %117 = vector.load %arg3[%c8, %c0_57, %c0_58] : memref<36x8x16xf32, #tpu.memory_space<vmem>>, vector<1x8x16xf32>
    %118 = vector.shape_cast %117 : vector<1x8x16xf32> to vector<8x16xf32>
    %cst_59 = arith.constant dense<0.000000e+00> : vector<8x256xf32>
    %119 = tpu.matmul %118, %116, %cst_59 {dimension_numbers = #tpu.dot_dimension_numbers<[1], [0], [0], [1], [0, 0, 1, 1], [], []>} : vector<8x16xf32>, vector<16x256xf32>, vector<8x256xf32> -> vector<8x256xf32>
    %120 = arith.addf %109, %119 : vector<8x256xf32>
    %c16 = arith.constant 16 : index
    %c0_60 = arith.constant 0 : index
    %121 = vector.load %arg7[%c16, %c0_60] : memref<32x256xf32, #tpu.memory_space<vmem>>, vector<8x256xf32>
    tpu.vector_store %arg7[%c16, %c0_60], %120 {strides = array<i32>} : memref<32x256xf32, #tpu.memory_space<vmem>>, vector<8x256xf32>,
    %c0_61 = arith.constant 0 : index
    %c0_62 = arith.constant 0 : index
    %122 = vector.load %arg7[%c0_61, %c0_62] : memref<32x256xf32, #tpu.memory_space<vmem>>, vector<24x256xf32>
    %cst_63 = arith.constant 0.000000e+00 : f32
    %123 = vector.broadcast %cst_63 : f32 to vector<24x256xf32>
    %124 = arith.maximumf %122, %123 : vector<24x256xf32>
    %c1_64 = arith.constant 1 : index
    %c0_65 = arith.constant 0 : index
    %c0_66 = arith.constant 0 : index
    %125 = vector.load %arg2[%c1_64, %c0_65, %c0_66] : memref<4x16x32xf32, #tpu.memory_space<vmem>>, vector<1x16x32xf32>
    %126 = vector.shape_cast %125 : vector<1x16x32xf32> to vector<16x32xf32>
    %127 = vector.extract_strided_slice %126 {offsets = [0, 0], sizes = [16, 24], strides = [1, 1]} : vector<16x32xf32> to vector<16x24xf32>
    %cst_67 = arith.constant dense<0.000000e+00> : vector<16x256xf32>
    %128 = tpu.matmul %127, %124, %cst_67 {dimension_numbers = #tpu.dot_dimension_numbers<[1], [0], [0], [1], [0, 0, 1, 1], [], []>} : vector<16x24xf32>, vector<24x256xf32>, vector<16x256xf32> -> vector<16x256xf32>
    %cst_68 = arith.constant 0.000000e+00 : f32
    %129 = vector.broadcast %cst_68 : f32 to vector<16x256xf32>
    %130 = arith.maximumf %128, %129 : vector<16x256xf32>
    %cst_69 = arith.constant 0.000000e+00 : f32
    %131 = vector.broadcast %cst_69 : f32 to vector<8x256xf32>
    %cst_70 = arith.constant 0.000000e+00 : f32
    %132 = vector.broadcast %cst_70 : f32 to vector<16x17xf32>
    %133 = vector.extract_strided_slice %130 {offsets = [0, 0], sizes = [16, 239], strides = [1, 1]} : vector<16x256xf32> to vector<16x239xf32>
    %134 = tpu.concatenate %132, %133 in 1 : vector<16x17xf32>, vector<16x239xf32> -> vector<16x256xf32>
    %cst_71 = arith.constant 0.000000e+00 : f32
    %135 = vector.shape_cast %18 : vector<1x256xi1> to vector<1x256xi1>
    %136 = vector.broadcast %135 : vector<1x256xi1> to vector<16x256xi1>
    %137 = vector.broadcast %cst_71 : f32 to vector<16x256xf32>
    %138 = arith.select %136, %134, %137 : vector<16x256xi1>, vector<16x256xf32>
    %c9 = arith.constant 9 : index
    %c0_72 = arith.constant 0 : index
    %c0_73 = arith.constant 0 : index
    %139 = vector.load %arg3[%c9, %c0_72, %c0_73] : memref<36x8x16xf32, #tpu.memory_space<vmem>>, vector<1x8x16xf32>
    %140 = vector.shape_cast %139 : vector<1x8x16xf32> to vector<8x16xf32>
    %cst_74 = arith.constant dense<0.000000e+00> : vector<8x256xf32>
    %141 = tpu.matmul %140, %138, %cst_74 {dimension_numbers = #tpu.dot_dimension_numbers<[1], [0], [0], [1], [0, 0, 1, 1], [], []>} : vector<8x16xf32>, vector<16x256xf32>, vector<8x256xf32> -> vector<8x256xf32>
    %142 = arith.addf %131, %141 : vector<8x256xf32>
    %cst_75 = arith.constant 0.000000e+00 : f32
    %143 = vector.broadcast %cst_75 : f32 to vector<16x16xf32>
    %144 = vector.extract_strided_slice %130 {offsets = [0, 0], sizes = [16, 240], strides = [1, 1]} : vector<16x256xf32> to vector<16x240xf32>
    %145 = tpu.concatenate %143, %144 in 1 : vector<16x16xf32>, vector<16x240xf32> -> vector<16x256xf32>
    %c10 = arith.constant 10 : index
    %c0_76 = arith.constant 0 : index
    %c0_77 = arith.constant 0 : index
    %146 = vector.load %arg3[%c10, %c0_76, %c0_77] : memref<36x8x16xf32, #tpu.memory_space<vmem>>, vector<1x8x16xf32>
    %147 = vector.shape_cast %146 : vector<1x8x16xf32> to vector<8x16xf32>
    %cst_78 = arith.constant dense<0.000000e+00> : vector<8x256xf32>
    %148 = tpu.matmul %147, %145, %cst_78 {dimension_numbers = #tpu.dot_dimension_numbers<[1], [0], [0], [1], [0, 0, 1, 1], [], []>} : vector<8x16xf32>, vector<16x256xf32>, vector<8x256xf32> -> vector<8x256xf32>
    %149 = arith.addf %142, %148 : vector<8x256xf32>
    %cst_79 = arith.constant 0.000000e+00 : f32
    %150 = vector.broadcast %cst_79 : f32 to vector<16x15xf32>
    %151 = vector.extract_strided_slice %130 {offsets = [0, 0], sizes = [16, 241], strides = [1, 1]} : vector<16x256xf32> to vector<16x241xf32>
    %152 = tpu.concatenate %150, %151 in 1 : vector<16x15xf32>, vector<16x241xf32> -> vector<16x256xf32>
    %cst_80 = arith.constant 0.000000e+00 : f32
    %153 = vector.shape_cast %20 : vector<1x256xi1> to vector<1x256xi1>
    %154 = vector.broadcast %153 : vector<1x256xi1> to vector<16x256xi1>
    %155 = vector.broadcast %cst_80 : f32 to vector<16x256xf32>
    %156 = arith.select %154, %152, %155 : vector<16x256xi1>, vector<16x256xf32>
    %c11 = arith.constant 11 : index
    %c0_81 = arith.constant 0 : index
    %c0_82 = arith.constant 0 : index
    %157 = vector.load %arg3[%c11, %c0_81, %c0_82] : memref<36x8x16xf32, #tpu.memory_space<vmem>>, vector<1x8x16xf32>
    %158 = vector.shape_cast %157 : vector<1x8x16xf32> to vector<8x16xf32>
    %cst_83 = arith.constant dense<0.000000e+00> : vector<8x256xf32>
    %159 = tpu.matmul %158, %156, %cst_83 {dimension_numbers = #tpu.dot_dimension_numbers<[1], [0], [0], [1], [0, 0, 1, 1], [], []>} : vector<8x16xf32>, vector<16x256xf32>, vector<8x256xf32> -> vector<8x256xf32>
    %160 = arith.addf %149, %159 : vector<8x256xf32>
    %cst_84 = arith.constant 0.000000e+00 : f32
    %161 = vector.broadcast %cst_84 : f32 to vector<16x1xf32>
    %162 = vector.extract_strided_slice %130 {offsets = [0, 0], sizes = [16, 255], strides = [1, 1]} : vector<16x256xf32> to vector<16x255xf32>
    %163 = tpu.concatenate %161, %162 in 1 : vector<16x1xf32>, vector<16x255xf32> -> vector<16x256xf32>
    %cst_85 = arith.constant 0.000000e+00 : f32
    %164 = vector.shape_cast %18 : vector<1x256xi1> to vector<1x256xi1>
    %165 = vector.broadcast %164 : vector<1x256xi1> to vector<16x256xi1>
    %166 = vector.broadcast %cst_85 : f32 to vector<16x256xf32>
    %167 = arith.select %165, %163, %166 : vector<16x256xi1>, vector<16x256xf32>
    %c12 = arith.constant 12 : index
    %c0_86 = arith.constant 0 : index
    %c0_87 = arith.constant 0 : index
    %168 = vector.load %arg3[%c12, %c0_86, %c0_87] : memref<36x8x16xf32, #tpu.memory_space<vmem>>, vector<1x8x16xf32>
    %169 = vector.shape_cast %168 : vector<1x8x16xf32> to vector<8x16xf32>
    %cst_88 = arith.constant dense<0.000000e+00> : vector<8x256xf32>
    %170 = tpu.matmul %169, %167, %cst_88 {dimension_numbers = #tpu.dot_dimension_numbers<[1], [0], [0], [1], [0, 0, 1, 1], [], []>} : vector<8x16xf32>, vector<16x256xf32>, vector<8x256xf32> -> vector<8x256xf32>
    %171 = arith.addf %160, %170 : vector<8x256xf32>
    %c13 = arith.constant 13 : index
    %c0_89 = arith.constant 0 : index
    %c0_90 = arith.constant 0 : index
    %172 = vector.load %arg3[%c13, %c0_89, %c0_90] : memref<36x8x16xf32, #tpu.memory_space<vmem>>, vector<1x8x16xf32>
    %173 = vector.shape_cast %172 : vector<1x8x16xf32> to vector<8x16xf32>
    %cst_91 = arith.constant dense<0.000000e+00> : vector<8x256xf32>
    %174 = tpu.matmul %173, %130, %cst_91 {dimension_numbers = #tpu.dot_dimension_numbers<[1], [0], [0], [1], [0, 0, 1, 1], [], []>} : vector<8x16xf32>, vector<16x256xf32>, vector<8x256xf32> -> vector<8x256xf32>
    %175 = arith.addf %171, %174 : vector<8x256xf32>
    %cst_92 = arith.constant 0.000000e+00 : f32
    %176 = vector.broadcast %cst_92 : f32 to vector<16x1xf32>
    %177 = vector.extract_strided_slice %130 {offsets = [0, 1], sizes = [16, 255], strides = [1, 1]} : vector<16x256xf32> to vector<16x255xf32>
    %178 = tpu.concatenate %177, %176 in 1 : vector<16x255xf32>, vector<16x1xf32> -> vector<16x256xf32>
    %cst_93 = arith.constant 0.000000e+00 : f32
    %179 = vector.shape_cast %20 : vector<1x256xi1> to vector<1x256xi1>
    %180 = vector.broadcast %179 : vector<1x256xi1> to vector<16x256xi1>
    %181 = vector.broadcast %cst_93 : f32 to vector<16x256xf32>
    %182 = arith.select %180, %178, %181 : vector<16x256xi1>, vector<16x256xf32>
    %c14 = arith.constant 14 : index
    %c0_94 = arith.constant 0 : index
    %c0_95 = arith.constant 0 : index
    %183 = vector.load %arg3[%c14, %c0_94, %c0_95] : memref<36x8x16xf32, #tpu.memory_space<vmem>>, vector<1x8x16xf32>
    %184 = vector.shape_cast %183 : vector<1x8x16xf32> to vector<8x16xf32>
    %cst_96 = arith.constant dense<0.000000e+00> : vector<8x256xf32>
    %185 = tpu.matmul %184, %182, %cst_96 {dimension_numbers = #tpu.dot_dimension_numbers<[1], [0], [0], [1], [0, 0, 1, 1], [], []>} : vector<8x16xf32>, vector<16x256xf32>, vector<8x256xf32> -> vector<8x256xf32>
    %186 = arith.addf %175, %185 : vector<8x256xf32>
    %cst_97 = arith.constant 0.000000e+00 : f32
    %187 = vector.broadcast %cst_97 : f32 to vector<16x15xf32>
    %188 = vector.extract_strided_slice %130 {offsets = [0, 15], sizes = [16, 241], strides = [1, 1]} : vector<16x256xf32> to vector<16x241xf32>
    %189 = tpu.concatenate %188, %187 in 1 : vector<16x241xf32>, vector<16x15xf32> -> vector<16x256xf32>
    %cst_98 = arith.constant 0.000000e+00 : f32
    %190 = vector.shape_cast %18 : vector<1x256xi1> to vector<1x256xi1>
    %191 = vector.broadcast %190 : vector<1x256xi1> to vector<16x256xi1>
    %192 = vector.broadcast %cst_98 : f32 to vector<16x256xf32>
    %193 = arith.select %191, %189, %192 : vector<16x256xi1>, vector<16x256xf32>
    %c15 = arith.constant 15 : index
    %c0_99 = arith.constant 0 : index
    %c0_100 = arith.constant 0 : index
    %194 = vector.load %arg3[%c15, %c0_99, %c0_100] : memref<36x8x16xf32, #tpu.memory_space<vmem>>, vector<1x8x16xf32>
    %195 = vector.shape_cast %194 : vector<1x8x16xf32> to vector<8x16xf32>
    %cst_101 = arith.constant dense<0.000000e+00> : vector<8x256xf32>
    %196 = tpu.matmul %195, %193, %cst_101 {dimension_numbers = #tpu.dot_dimension_numbers<[1], [0], [0], [1], [0, 0, 1, 1], [], []>} : vector<8x16xf32>, vector<16x256xf32>, vector<8x256xf32> -> vector<8x256xf32>
    %197 = arith.addf %186, %196 : vector<8x256xf32>
    %cst_102 = arith.constant 0.000000e+00 : f32
    %198 = vector.broadcast %cst_102 : f32 to vector<16x16xf32>
    %199 = vector.extract_strided_slice %130 {offsets = [0, 16], sizes = [16, 240], strides = [1, 1]} : vector<16x256xf32> to vector<16x240xf32>
    %200 = tpu.concatenate %199, %198 in 1 : vector<16x240xf32>, vector<16x16xf32> -> vector<16x256xf32>
    %c16_103 = arith.constant 16 : index
    %c0_104 = arith.constant 0 : index
    %c0_105 = arith.constant 0 : index
    %201 = vector.load %arg3[%c16_103, %c0_104, %c0_105] : memref<36x8x16xf32, #tpu.memory_space<vmem>>, vector<1x8x16xf32>
    %202 = vector.shape_cast %201 : vector<1x8x16xf32> to vector<8x16xf32>
    %cst_106 = arith.constant dense<0.000000e+00> : vector<8x256xf32>
    %203 = tpu.matmul %202, %200, %cst_106 {dimension_numbers = #tpu.dot_dimension_numbers<[1], [0], [0], [1], [0, 0, 1, 1], [], []>} : vector<8x16xf32>, vector<16x256xf32>, vector<8x256xf32> -> vector<8x256xf32>
    %204 = arith.addf %197, %203 : vector<8x256xf32>
    %cst_107 = arith.constant 0.000000e+00 : f32
    %205 = vector.broadcast %cst_107 : f32 to vector<16x17xf32>
    %206 = vector.extract_strided_slice %130 {offsets = [0, 17], sizes = [16, 239], strides = [1, 1]} : vector<16x256xf32> to vector<16x239xf32>
    %207 = tpu.concatenate %206, %205 in 1 : vector<16x239xf32>, vector<16x17xf32> -> vector<16x256xf32>
    %cst_108 = arith.constant 0.000000e+00 : f32
    %208 = vector.shape_cast %20 : vector<1x256xi1> to vector<1x256xi1>
    %209 = vector.broadcast %208 : vector<1x256xi1> to vector<16x256xi1>
    %210 = vector.broadcast %cst_108 : f32 to vector<16x256xf32>
    %211 = arith.select %209, %207, %210 : vector<16x256xi1>, vector<16x256xf32>
    %c17 = arith.constant 17 : index
    %c0_109 = arith.constant 0 : index
    %c0_110 = arith.constant 0 : index
    %212 = vector.load %arg3[%c17, %c0_109, %c0_110] : memref<36x8x16xf32, #tpu.memory_space<vmem>>, vector<1x8x16xf32>
    %213 = vector.shape_cast %212 : vector<1x8x16xf32> to vector<8x16xf32>
    %cst_111 = arith.constant dense<0.000000e+00> : vector<8x256xf32>
    %214 = tpu.matmul %213, %211, %cst_111 {dimension_numbers = #tpu.dot_dimension_numbers<[1], [0], [0], [1], [0, 0, 1, 1], [], []>} : vector<8x16xf32>, vector<16x256xf32>, vector<8x256xf32> -> vector<8x256xf32>
    %215 = arith.addf %204, %214 : vector<8x256xf32>
    %c24 = arith.constant 24 : index
    %c0_112 = arith.constant 0 : index
    %216 = vector.load %arg7[%c24, %c0_112] : memref<32x256xf32, #tpu.memory_space<vmem>>, vector<8x256xf32>
    tpu.vector_store %arg7[%c24, %c0_112], %215 {strides = array<i32>} : memref<32x256xf32, #tpu.memory_space<vmem>>, vector<8x256xf32>,
    %c0_113 = arith.constant 0 : index
    %c0_114 = arith.constant 0 : index
    %c0_115 = arith.constant 0 : index
    %217 = vector.load %arg4[%c0_113, %c0_114, %c0_115] : memref<2x16x32xf32, #tpu.memory_space<vmem>>, vector<1x16x32xf32>
    %218 = vector.shape_cast %217 : vector<1x16x32xf32> to vector<16x32xf32>
    %c0_116 = arith.constant 0 : index
    %c0_117 = arith.constant 0 : index
    %219 = vector.load %arg7[%c0_116, %c0_117] : memref<32x256xf32, #tpu.memory_space<vmem>>, vector<32x256xf32>
    %cst_118 = arith.constant dense<0.000000e+00> : vector<16x256xf32>
    %220 = tpu.matmul %218, %219, %cst_118 {dimension_numbers = #tpu.dot_dimension_numbers<[1], [0], [0], [1], [0, 0, 1, 1], [], []>} : vector<16x32xf32>, vector<32x256xf32>, vector<16x256xf32> -> vector<16x256xf32>
    %221 = arith.addf %220, %24 : vector<16x256xf32>
    %c0_119 = arith.constant 0 : index
    %c0_120 = arith.constant 0 : index
    %c0_121 = arith.constant 0 : index
    %222 = vector.load %arg5[%c0_119, %c0_120, %c0_121] : memref<2x16x16xf32, #tpu.memory_space<vmem>>, vector<1x16x16xf32>
    %223 = vector.shape_cast %222 : vector<1x16x16xf32> to vector<16x16xf32>
    %cst_122 = arith.constant dense<0.000000e+00> : vector<16x256xf32>
    %224 = tpu.matmul %223, %221, %cst_122 {dimension_numbers = #tpu.dot_dimension_numbers<[1], [0], [0], [1], [0, 0, 1, 1], [], []>} : vector<16x16xf32>, vector<16x256xf32>, vector<16x256xf32> -> vector<16x256xf32>
    %225 = arith.addf %25, %224 : vector<16x256xf32>
    %c0_123 = arith.constant 0 : index
    %c0_124 = arith.constant 0 : index
    %226 = vector.load %arg7[%c0_123, %c0_124] : memref<32x256xf32, #tpu.memory_space<vmem>>, vector<16x256xf32>
    tpu.vector_store %arg7[%c0_123, %c0_124], %221 {strides = array<i32>} : memref<32x256xf32, #tpu.memory_space<vmem>>, vector<16x256xf32>,
    %c0_125 = arith.constant 0 : index
    %c0_126 = arith.constant 0 : index
    %227 = vector.load %arg7[%c0_125, %c0_126] : memref<32x256xf32, #tpu.memory_space<vmem>>, vector<16x256xf32>
    %cst_127 = arith.constant 0.000000e+00 : f32
    %228 = vector.broadcast %cst_127 : f32 to vector<16x256xf32>
    %229 = arith.maximumf %227, %228 : vector<16x256xf32>
    %c2_128 = arith.constant 2 : index
    %c0_129 = arith.constant 0 : index
    %c0_130 = arith.constant 0 : index
    %230 = vector.load %arg2[%c2_128, %c0_129, %c0_130] : memref<4x16x32xf32, #tpu.memory_space<vmem>>, vector<1x16x32xf32>
    %231 = vector.shape_cast %230 : vector<1x16x32xf32> to vector<16x32xf32>
    %232 = vector.extract_strided_slice %231 {offsets = [0, 0], sizes = [16, 16], strides = [1, 1]} : vector<16x32xf32> to vector<16x16xf32>
    %cst_131 = arith.constant dense<0.000000e+00> : vector<16x256xf32>
    %233 = tpu.matmul %232, %229, %cst_131 {dimension_numbers = #tpu.dot_dimension_numbers<[1], [0], [0], [1], [0, 0, 1, 1], [], []>} : vector<16x16xf32>, vector<16x256xf32>, vector<16x256xf32> -> vector<16x256xf32>
    %cst_132 = arith.constant 0.000000e+00 : f32
    %234 = vector.broadcast %cst_132 : f32 to vector<16x256xf32>
    %235 = arith.maximumf %233, %234 : vector<16x256xf32>
    %cst_133 = arith.constant 0.000000e+00 : f32
    %236 = vector.broadcast %cst_133 : f32 to vector<8x256xf32>
    %cst_134 = arith.constant 0.000000e+00 : f32
    %237 = vector.broadcast %cst_134 : f32 to vector<16x17xf32>
    %238 = vector.extract_strided_slice %235 {offsets = [0, 0], sizes = [16, 239], strides = [1, 1]} : vector<16x256xf32> to vector<16x239xf32>
    %239 = tpu.concatenate %237, %238 in 1 : vector<16x17xf32>, vector<16x239xf32> -> vector<16x256xf32>
    %cst_135 = arith.constant 0.000000e+00 : f32
    %240 = vector.shape_cast %18 : vector<1x256xi1> to vector<1x256xi1>
    %241 = vector.broadcast %240 : vector<1x256xi1> to vector<16x256xi1>
    %242 = vector.broadcast %cst_135 : f32 to vector<16x256xf32>
    %243 = arith.select %241, %239, %242 : vector<16x256xi1>, vector<16x256xf32>
    %c18 = arith.constant 18 : index
    %c0_136 = arith.constant 0 : index
    %c0_137 = arith.constant 0 : index
    %244 = vector.load %arg3[%c18, %c0_136, %c0_137] : memref<36x8x16xf32, #tpu.memory_space<vmem>>, vector<1x8x16xf32>
    %245 = vector.shape_cast %244 : vector<1x8x16xf32> to vector<8x16xf32>
    %cst_138 = arith.constant dense<0.000000e+00> : vector<8x256xf32>
    %246 = tpu.matmul %245, %243, %cst_138 {dimension_numbers = #tpu.dot_dimension_numbers<[1], [0], [0], [1], [0, 0, 1, 1], [], []>} : vector<8x16xf32>, vector<16x256xf32>, vector<8x256xf32> -> vector<8x256xf32>
    %247 = arith.addf %236, %246 : vector<8x256xf32>
    %cst_139 = arith.constant 0.000000e+00 : f32
    %248 = vector.broadcast %cst_139 : f32 to vector<16x16xf32>
    %249 = vector.extract_strided_slice %235 {offsets = [0, 0], sizes = [16, 240], strides = [1, 1]} : vector<16x256xf32> to vector<16x240xf32>
    %250 = tpu.concatenate %248, %249 in 1 : vector<16x16xf32>, vector<16x240xf32> -> vector<16x256xf32>
    %c19 = arith.constant 19 : index
    %c0_140 = arith.constant 0 : index
    %c0_141 = arith.constant 0 : index
    %251 = vector.load %arg3[%c19, %c0_140, %c0_141] : memref<36x8x16xf32, #tpu.memory_space<vmem>>, vector<1x8x16xf32>
    %252 = vector.shape_cast %251 : vector<1x8x16xf32> to vector<8x16xf32>
    %cst_142 = arith.constant dense<0.000000e+00> : vector<8x256xf32>
    %253 = tpu.matmul %252, %250, %cst_142 {dimension_numbers = #tpu.dot_dimension_numbers<[1], [0], [0], [1], [0, 0, 1, 1], [], []>} : vector<8x16xf32>, vector<16x256xf32>, vector<8x256xf32> -> vector<8x256xf32>
    %254 = arith.addf %247, %253 : vector<8x256xf32>
    %cst_143 = arith.constant 0.000000e+00 : f32
    %255 = vector.broadcast %cst_143 : f32 to vector<16x15xf32>
    %256 = vector.extract_strided_slice %235 {offsets = [0, 0], sizes = [16, 241], strides = [1, 1]} : vector<16x256xf32> to vector<16x241xf32>
    %257 = tpu.concatenate %255, %256 in 1 : vector<16x15xf32>, vector<16x241xf32> -> vector<16x256xf32>
    %cst_144 = arith.constant 0.000000e+00 : f32
    %258 = vector.shape_cast %20 : vector<1x256xi1> to vector<1x256xi1>
    %259 = vector.broadcast %258 : vector<1x256xi1> to vector<16x256xi1>
    %260 = vector.broadcast %cst_144 : f32 to vector<16x256xf32>
    %261 = arith.select %259, %257, %260 : vector<16x256xi1>, vector<16x256xf32>
    %c20 = arith.constant 20 : index
    %c0_145 = arith.constant 0 : index
    %c0_146 = arith.constant 0 : index
    %262 = vector.load %arg3[%c20, %c0_145, %c0_146] : memref<36x8x16xf32, #tpu.memory_space<vmem>>, vector<1x8x16xf32>
    %263 = vector.shape_cast %262 : vector<1x8x16xf32> to vector<8x16xf32>
    %cst_147 = arith.constant dense<0.000000e+00> : vector<8x256xf32>
    %264 = tpu.matmul %263, %261, %cst_147 {dimension_numbers = #tpu.dot_dimension_numbers<[1], [0], [0], [1], [0, 0, 1, 1], [], []>} : vector<8x16xf32>, vector<16x256xf32>, vector<8x256xf32> -> vector<8x256xf32>
    %265 = arith.addf %254, %264 : vector<8x256xf32>
    %cst_148 = arith.constant 0.000000e+00 : f32
    %266 = vector.broadcast %cst_148 : f32 to vector<16x1xf32>
    %267 = vector.extract_strided_slice %235 {offsets = [0, 0], sizes = [16, 255], strides = [1, 1]} : vector<16x256xf32> to vector<16x255xf32>
    %268 = tpu.concatenate %266, %267 in 1 : vector<16x1xf32>, vector<16x255xf32> -> vector<16x256xf32>
    %cst_149 = arith.constant 0.000000e+00 : f32
    %269 = vector.shape_cast %18 : vector<1x256xi1> to vector<1x256xi1>
    %270 = vector.broadcast %269 : vector<1x256xi1> to vector<16x256xi1>
    %271 = vector.broadcast %cst_149 : f32 to vector<16x256xf32>
    %272 = arith.select %270, %268, %271 : vector<16x256xi1>, vector<16x256xf32>
    %c21 = arith.constant 21 : index
    %c0_150 = arith.constant 0 : index
    %c0_151 = arith.constant 0 : index
    %273 = vector.load %arg3[%c21, %c0_150, %c0_151] : memref<36x8x16xf32, #tpu.memory_space<vmem>>, vector<1x8x16xf32>
    %274 = vector.shape_cast %273 : vector<1x8x16xf32> to vector<8x16xf32>
    %cst_152 = arith.constant dense<0.000000e+00> : vector<8x256xf32>
    %275 = tpu.matmul %274, %272, %cst_152 {dimension_numbers = #tpu.dot_dimension_numbers<[1], [0], [0], [1], [0, 0, 1, 1], [], []>} : vector<8x16xf32>, vector<16x256xf32>, vector<8x256xf32> -> vector<8x256xf32>
    %276 = arith.addf %265, %275 : vector<8x256xf32>
    %c22 = arith.constant 22 : index
    %c0_153 = arith.constant 0 : index
    %c0_154 = arith.constant 0 : index
    %277 = vector.load %arg3[%c22, %c0_153, %c0_154] : memref<36x8x16xf32, #tpu.memory_space<vmem>>, vector<1x8x16xf32>
    %278 = vector.shape_cast %277 : vector<1x8x16xf32> to vector<8x16xf32>
    %cst_155 = arith.constant dense<0.000000e+00> : vector<8x256xf32>
    %279 = tpu.matmul %278, %235, %cst_155 {dimension_numbers = #tpu.dot_dimension_numbers<[1], [0], [0], [1], [0, 0, 1, 1], [], []>} : vector<8x16xf32>, vector<16x256xf32>, vector<8x256xf32> -> vector<8x256xf32>
    %280 = arith.addf %276, %279 : vector<8x256xf32>
    %cst_156 = arith.constant 0.000000e+00 : f32
    %281 = vector.broadcast %cst_156 : f32 to vector<16x1xf32>
    %282 = vector.extract_strided_slice %235 {offsets = [0, 1], sizes = [16, 255], strides = [1, 1]} : vector<16x256xf32> to vector<16x255xf32>
    %283 = tpu.concatenate %282, %281 in 1 : vector<16x255xf32>, vector<16x1xf32> -> vector<16x256xf32>
    %cst_157 = arith.constant 0.000000e+00 : f32
    %284 = vector.shape_cast %20 : vector<1x256xi1> to vector<1x256xi1>
    %285 = vector.broadcast %284 : vector<1x256xi1> to vector<16x256xi1>
    %286 = vector.broadcast %cst_157 : f32 to vector<16x256xf32>
    %287 = arith.select %285, %283, %286 : vector<16x256xi1>, vector<16x256xf32>
    %c23 = arith.constant 23 : index
    %c0_158 = arith.constant 0 : index
    %c0_159 = arith.constant 0 : index
    %288 = vector.load %arg3[%c23, %c0_158, %c0_159] : memref<36x8x16xf32, #tpu.memory_space<vmem>>, vector<1x8x16xf32>
    %289 = vector.shape_cast %288 : vector<1x8x16xf32> to vector<8x16xf32>
    %cst_160 = arith.constant dense<0.000000e+00> : vector<8x256xf32>
    %290 = tpu.matmul %289, %287, %cst_160 {dimension_numbers = #tpu.dot_dimension_numbers<[1], [0], [0], [1], [0, 0, 1, 1], [], []>} : vector<8x16xf32>, vector<16x256xf32>, vector<8x256xf32> -> vector<8x256xf32>
    %291 = arith.addf %280, %290 : vector<8x256xf32>
    %cst_161 = arith.constant 0.000000e+00 : f32
    %292 = vector.broadcast %cst_161 : f32 to vector<16x15xf32>
    %293 = vector.extract_strided_slice %235 {offsets = [0, 15], sizes = [16, 241], strides = [1, 1]} : vector<16x256xf32> to vector<16x241xf32>
    %294 = tpu.concatenate %293, %292 in 1 : vector<16x241xf32>, vector<16x15xf32> -> vector<16x256xf32>
    %cst_162 = arith.constant 0.000000e+00 : f32
    %295 = vector.shape_cast %18 : vector<1x256xi1> to vector<1x256xi1>
    %296 = vector.broadcast %295 : vector<1x256xi1> to vector<16x256xi1>
    %297 = vector.broadcast %cst_162 : f32 to vector<16x256xf32>
    %298 = arith.select %296, %294, %297 : vector<16x256xi1>, vector<16x256xf32>
    %c24_163 = arith.constant 24 : index
    %c0_164 = arith.constant 0 : index
    %c0_165 = arith.constant 0 : index
    %299 = vector.load %arg3[%c24_163, %c0_164, %c0_165] : memref<36x8x16xf32, #tpu.memory_space<vmem>>, vector<1x8x16xf32>
    %300 = vector.shape_cast %299 : vector<1x8x16xf32> to vector<8x16xf32>
    %cst_166 = arith.constant dense<0.000000e+00> : vector<8x256xf32>
    %301 = tpu.matmul %300, %298, %cst_166 {dimension_numbers = #tpu.dot_dimension_numbers<[1], [0], [0], [1], [0, 0, 1, 1], [], []>} : vector<8x16xf32>, vector<16x256xf32>, vector<8x256xf32> -> vector<8x256xf32>
    %302 = arith.addf %291, %301 : vector<8x256xf32>
    %cst_167 = arith.constant 0.000000e+00 : f32
    %303 = vector.broadcast %cst_167 : f32 to vector<16x16xf32>
    %304 = vector.extract_strided_slice %235 {offsets = [0, 16], sizes = [16, 240], strides = [1, 1]} : vector<16x256xf32> to vector<16x240xf32>
    %305 = tpu.concatenate %304, %303 in 1 : vector<16x240xf32>, vector<16x16xf32> -> vector<16x256xf32>
    %c25 = arith.constant 25 : index
    %c0_168 = arith.constant 0 : index
    %c0_169 = arith.constant 0 : index
    %306 = vector.load %arg3[%c25, %c0_168, %c0_169] : memref<36x8x16xf32, #tpu.memory_space<vmem>>, vector<1x8x16xf32>
    %307 = vector.shape_cast %306 : vector<1x8x16xf32> to vector<8x16xf32>
    %cst_170 = arith.constant dense<0.000000e+00> : vector<8x256xf32>
    %308 = tpu.matmul %307, %305, %cst_170 {dimension_numbers = #tpu.dot_dimension_numbers<[1], [0], [0], [1], [0, 0, 1, 1], [], []>} : vector<8x16xf32>, vector<16x256xf32>, vector<8x256xf32> -> vector<8x256xf32>
    %309 = arith.addf %302, %308 : vector<8x256xf32>
    %cst_171 = arith.constant 0.000000e+00 : f32
    %310 = vector.broadcast %cst_171 : f32 to vector<16x17xf32>
    %311 = vector.extract_strided_slice %235 {offsets = [0, 17], sizes = [16, 239], strides = [1, 1]} : vector<16x256xf32> to vector<16x239xf32>
    %312 = tpu.concatenate %311, %310 in 1 : vector<16x239xf32>, vector<16x17xf32> -> vector<16x256xf32>
    %cst_172 = arith.constant 0.000000e+00 : f32
    %313 = vector.shape_cast %20 : vector<1x256xi1> to vector<1x256xi1>
    %314 = vector.broadcast %313 : vector<1x256xi1> to vector<16x256xi1>
    %315 = vector.broadcast %cst_172 : f32 to vector<16x256xf32>
    %316 = arith.select %314, %312, %315 : vector<16x256xi1>, vector<16x256xf32>
    %c26 = arith.constant 26 : index
    %c0_173 = arith.constant 0 : index
    %c0_174 = arith.constant 0 : index
    %317 = vector.load %arg3[%c26, %c0_173, %c0_174] : memref<36x8x16xf32, #tpu.memory_space<vmem>>, vector<1x8x16xf32>
    %318 = vector.shape_cast %317 : vector<1x8x16xf32> to vector<8x16xf32>
    %cst_175 = arith.constant dense<0.000000e+00> : vector<8x256xf32>
    %319 = tpu.matmul %318, %316, %cst_175 {dimension_numbers = #tpu.dot_dimension_numbers<[1], [0], [0], [1], [0, 0, 1, 1], [], []>} : vector<8x16xf32>, vector<16x256xf32>, vector<8x256xf32> -> vector<8x256xf32>
    %320 = arith.addf %309, %319 : vector<8x256xf32>
    %c16_176 = arith.constant 16 : index
    %c0_177 = arith.constant 0 : index
    %321 = vector.load %arg7[%c16_176, %c0_177] : memref<32x256xf32, #tpu.memory_space<vmem>>, vector<8x256xf32>
    tpu.vector_store %arg7[%c16_176, %c0_177], %320 {strides = array<i32>} : memref<32x256xf32, #tpu.memory_space<vmem>>, vector<8x256xf32>,
    %c0_178 = arith.constant 0 : index
    %c0_179 = arith.constant 0 : index
    %322 = vector.load %arg7[%c0_178, %c0_179] : memref<32x256xf32, #tpu.memory_space<vmem>>, vector<24x256xf32>
    %cst_180 = arith.constant 0.000000e+00 : f32
    %323 = vector.broadcast %cst_180 : f32 to vector<24x256xf32>
    %324 = arith.maximumf %322, %323 : vector<24x256xf32>
    %c3_181 = arith.constant 3 : index
    %c0_182 = arith.constant 0 : index
    %c0_183 = arith.constant 0 : index
    %325 = vector.load %arg2[%c3_181, %c0_182, %c0_183] : memref<4x16x32xf32, #tpu.memory_space<vmem>>, vector<1x16x32xf32>
    %326 = vector.shape_cast %325 : vector<1x16x32xf32> to vector<16x32xf32>
    %327 = vector.extract_strided_slice %326 {offsets = [0, 0], sizes = [16, 24], strides = [1, 1]} : vector<16x32xf32> to vector<16x24xf32>
    %cst_184 = arith.constant dense<0.000000e+00> : vector<16x256xf32>
    %328 = tpu.matmul %327, %324, %cst_184 {dimension_numbers = #tpu.dot_dimension_numbers<[1], [0], [0], [1], [0, 0, 1, 1], [], []>} : vector<16x24xf32>, vector<24x256xf32>, vector<16x256xf32> -> vector<16x256xf32>
    %cst_185 = arith.constant 0.000000e+00 : f32
    %329 = vector.broadcast %cst_185 : f32 to vector<16x256xf32>
    %330 = arith.maximumf %328, %329 : vector<16x256xf32>
    %cst_186 = arith.constant 0.000000e+00 : f32
    %331 = vector.broadcast %cst_186 : f32 to vector<8x256xf32>
    %cst_187 = arith.constant 0.000000e+00 : f32
    %332 = vector.broadcast %cst_187 : f32 to vector<16x17xf32>
    %333 = vector.extract_strided_slice %330 {offsets = [0, 0], sizes = [16, 239], strides = [1, 1]} : vector<16x256xf32> to vector<16x239xf32>
    %334 = tpu.concatenate %332, %333 in 1 : vector<16x17xf32>, vector<16x239xf32> -> vector<16x256xf32>
    %cst_188 = arith.constant 0.000000e+00 : f32
    %335 = vector.shape_cast %18 : vector<1x256xi1> to vector<1x256xi1>
    %336 = vector.broadcast %335 : vector<1x256xi1> to vector<16x256xi1>
    %337 = vector.broadcast %cst_188 : f32 to vector<16x256xf32>
    %338 = arith.select %336, %334, %337 : vector<16x256xi1>, vector<16x256xf32>
    %c27 = arith.constant 27 : index
    %c0_189 = arith.constant 0 : index
    %c0_190 = arith.constant 0 : index
    %339 = vector.load %arg3[%c27, %c0_189, %c0_190] : memref<36x8x16xf32, #tpu.memory_space<vmem>>, vector<1x8x16xf32>
    %340 = vector.shape_cast %339 : vector<1x8x16xf32> to vector<8x16xf32>
    %cst_191 = arith.constant dense<0.000000e+00> : vector<8x256xf32>
    %341 = tpu.matmul %340, %338, %cst_191 {dimension_numbers = #tpu.dot_dimension_numbers<[1], [0], [0], [1], [0, 0, 1, 1], [], []>} : vector<8x16xf32>, vector<16x256xf32>, vector<8x256xf32> -> vector<8x256xf32>
    %342 = arith.addf %331, %341 : vector<8x256xf32>
    %cst_192 = arith.constant 0.000000e+00 : f32
    %343 = vector.broadcast %cst_192 : f32 to vector<16x16xf32>
    %344 = vector.extract_strided_slice %330 {offsets = [0, 0], sizes = [16, 240], strides = [1, 1]} : vector<16x256xf32> to vector<16x240xf32>
    %345 = tpu.concatenate %343, %344 in 1 : vector<16x16xf32>, vector<16x240xf32> -> vector<16x256xf32>
    %c28 = arith.constant 28 : index
    %c0_193 = arith.constant 0 : index
    %c0_194 = arith.constant 0 : index
    %346 = vector.load %arg3[%c28, %c0_193, %c0_194] : memref<36x8x16xf32, #tpu.memory_space<vmem>>, vector<1x8x16xf32>
    %347 = vector.shape_cast %346 : vector<1x8x16xf32> to vector<8x16xf32>
    %cst_195 = arith.constant dense<0.000000e+00> : vector<8x256xf32>
    %348 = tpu.matmul %347, %345, %cst_195 {dimension_numbers = #tpu.dot_dimension_numbers<[1], [0], [0], [1], [0, 0, 1, 1], [], []>} : vector<8x16xf32>, vector<16x256xf32>, vector<8x256xf32> -> vector<8x256xf32>
    %349 = arith.addf %342, %348 : vector<8x256xf32>
    %cst_196 = arith.constant 0.000000e+00 : f32
    %350 = vector.broadcast %cst_196 : f32 to vector<16x15xf32>
    %351 = vector.extract_strided_slice %330 {offsets = [0, 0], sizes = [16, 241], strides = [1, 1]} : vector<16x256xf32> to vector<16x241xf32>
    %352 = tpu.concatenate %350, %351 in 1 : vector<16x15xf32>, vector<16x241xf32> -> vector<16x256xf32>
    %cst_197 = arith.constant 0.000000e+00 : f32
    %353 = vector.shape_cast %20 : vector<1x256xi1> to vector<1x256xi1>
    %354 = vector.broadcast %353 : vector<1x256xi1> to vector<16x256xi1>
    %355 = vector.broadcast %cst_197 : f32 to vector<16x256xf32>
    %356 = arith.select %354, %352, %355 : vector<16x256xi1>, vector<16x256xf32>
    %c29 = arith.constant 29 : index
    %c0_198 = arith.constant 0 : index
    %c0_199 = arith.constant 0 : index
    %357 = vector.load %arg3[%c29, %c0_198, %c0_199] : memref<36x8x16xf32, #tpu.memory_space<vmem>>, vector<1x8x16xf32>
    %358 = vector.shape_cast %357 : vector<1x8x16xf32> to vector<8x16xf32>
    %cst_200 = arith.constant dense<0.000000e+00> : vector<8x256xf32>
    %359 = tpu.matmul %358, %356, %cst_200 {dimension_numbers = #tpu.dot_dimension_numbers<[1], [0], [0], [1], [0, 0, 1, 1], [], []>} : vector<8x16xf32>, vector<16x256xf32>, vector<8x256xf32> -> vector<8x256xf32>
    %360 = arith.addf %349, %359 : vector<8x256xf32>
    %cst_201 = arith.constant 0.000000e+00 : f32
    %361 = vector.broadcast %cst_201 : f32 to vector<16x1xf32>
    %362 = vector.extract_strided_slice %330 {offsets = [0, 0], sizes = [16, 255], strides = [1, 1]} : vector<16x256xf32> to vector<16x255xf32>
    %363 = tpu.concatenate %361, %362 in 1 : vector<16x1xf32>, vector<16x255xf32> -> vector<16x256xf32>
    %cst_202 = arith.constant 0.000000e+00 : f32
    %364 = vector.shape_cast %18 : vector<1x256xi1> to vector<1x256xi1>
    %365 = vector.broadcast %364 : vector<1x256xi1> to vector<16x256xi1>
    %366 = vector.broadcast %cst_202 : f32 to vector<16x256xf32>
    %367 = arith.select %365, %363, %366 : vector<16x256xi1>, vector<16x256xf32>
    %c30 = arith.constant 30 : index
    %c0_203 = arith.constant 0 : index
    %c0_204 = arith.constant 0 : index
    %368 = vector.load %arg3[%c30, %c0_203, %c0_204] : memref<36x8x16xf32, #tpu.memory_space<vmem>>, vector<1x8x16xf32>
    %369 = vector.shape_cast %368 : vector<1x8x16xf32> to vector<8x16xf32>
    %cst_205 = arith.constant dense<0.000000e+00> : vector<8x256xf32>
    %370 = tpu.matmul %369, %367, %cst_205 {dimension_numbers = #tpu.dot_dimension_numbers<[1], [0], [0], [1], [0, 0, 1, 1], [], []>} : vector<8x16xf32>, vector<16x256xf32>, vector<8x256xf32> -> vector<8x256xf32>
    %371 = arith.addf %360, %370 : vector<8x256xf32>
    %c31 = arith.constant 31 : index
    %c0_206 = arith.constant 0 : index
    %c0_207 = arith.constant 0 : index
    %372 = vector.load %arg3[%c31, %c0_206, %c0_207] : memref<36x8x16xf32, #tpu.memory_space<vmem>>, vector<1x8x16xf32>
    %373 = vector.shape_cast %372 : vector<1x8x16xf32> to vector<8x16xf32>
    %cst_208 = arith.constant dense<0.000000e+00> : vector<8x256xf32>
    %374 = tpu.matmul %373, %330, %cst_208 {dimension_numbers = #tpu.dot_dimension_numbers<[1], [0], [0], [1], [0, 0, 1, 1], [], []>} : vector<8x16xf32>, vector<16x256xf32>, vector<8x256xf32> -> vector<8x256xf32>
    %375 = arith.addf %371, %374 : vector<8x256xf32>
    %cst_209 = arith.constant 0.000000e+00 : f32
    %376 = vector.broadcast %cst_209 : f32 to vector<16x1xf32>
    %377 = vector.extract_strided_slice %330 {offsets = [0, 1], sizes = [16, 255], strides = [1, 1]} : vector<16x256xf32> to vector<16x255xf32>
    %378 = tpu.concatenate %377, %376 in 1 : vector<16x255xf32>, vector<16x1xf32> -> vector<16x256xf32>
    %cst_210 = arith.constant 0.000000e+00 : f32
    %379 = vector.shape_cast %20 : vector<1x256xi1> to vector<1x256xi1>
    %380 = vector.broadcast %379 : vector<1x256xi1> to vector<16x256xi1>
    %381 = vector.broadcast %cst_210 : f32 to vector<16x256xf32>
    %382 = arith.select %380, %378, %381 : vector<16x256xi1>, vector<16x256xf32>
    %c32 = arith.constant 32 : index
    %c0_211 = arith.constant 0 : index
    %c0_212 = arith.constant 0 : index
    %383 = vector.load %arg3[%c32, %c0_211, %c0_212] : memref<36x8x16xf32, #tpu.memory_space<vmem>>, vector<1x8x16xf32>
    %384 = vector.shape_cast %383 : vector<1x8x16xf32> to vector<8x16xf32>
    %cst_213 = arith.constant dense<0.000000e+00> : vector<8x256xf32>
    %385 = tpu.matmul %384, %382, %cst_213 {dimension_numbers = #tpu.dot_dimension_numbers<[1], [0], [0], [1], [0, 0, 1, 1], [], []>} : vector<8x16xf32>, vector<16x256xf32>, vector<8x256xf32> -> vector<8x256xf32>
    %386 = arith.addf %375, %385 : vector<8x256xf32>
    %cst_214 = arith.constant 0.000000e+00 : f32
    %387 = vector.broadcast %cst_214 : f32 to vector<16x15xf32>
    %388 = vector.extract_strided_slice %330 {offsets = [0, 15], sizes = [16, 241], strides = [1, 1]} : vector<16x256xf32> to vector<16x241xf32>
    %389 = tpu.concatenate %388, %387 in 1 : vector<16x241xf32>, vector<16x15xf32> -> vector<16x256xf32>
    %cst_215 = arith.constant 0.000000e+00 : f32
    %390 = vector.shape_cast %18 : vector<1x256xi1> to vector<1x256xi1>
    %391 = vector.broadcast %390 : vector<1x256xi1> to vector<16x256xi1>
    %392 = vector.broadcast %cst_215 : f32 to vector<16x256xf32>
    %393 = arith.select %391, %389, %392 : vector<16x256xi1>, vector<16x256xf32>
    %c33 = arith.constant 33 : index
    %c0_216 = arith.constant 0 : index
    %c0_217 = arith.constant 0 : index
    %394 = vector.load %arg3[%c33, %c0_216, %c0_217] : memref<36x8x16xf32, #tpu.memory_space<vmem>>, vector<1x8x16xf32>
    %395 = vector.shape_cast %394 : vector<1x8x16xf32> to vector<8x16xf32>
    %cst_218 = arith.constant dense<0.000000e+00> : vector<8x256xf32>
    %396 = tpu.matmul %395, %393, %cst_218 {dimension_numbers = #tpu.dot_dimension_numbers<[1], [0], [0], [1], [0, 0, 1, 1], [], []>} : vector<8x16xf32>, vector<16x256xf32>, vector<8x256xf32> -> vector<8x256xf32>
    %397 = arith.addf %386, %396 : vector<8x256xf32>
    %cst_219 = arith.constant 0.000000e+00 : f32
    %398 = vector.broadcast %cst_219 : f32 to vector<16x16xf32>
    %399 = vector.extract_strided_slice %330 {offsets = [0, 16], sizes = [16, 240], strides = [1, 1]} : vector<16x256xf32> to vector<16x240xf32>
    %400 = tpu.concatenate %399, %398 in 1 : vector<16x240xf32>, vector<16x16xf32> -> vector<16x256xf32>
    %c34 = arith.constant 34 : index
    %c0_220 = arith.constant 0 : index
    %c0_221 = arith.constant 0 : index
    %401 = vector.load %arg3[%c34, %c0_220, %c0_221] : memref<36x8x16xf32, #tpu.memory_space<vmem>>, vector<1x8x16xf32>
    %402 = vector.shape_cast %401 : vector<1x8x16xf32> to vector<8x16xf32>
    %cst_222 = arith.constant dense<0.000000e+00> : vector<8x256xf32>
    %403 = tpu.matmul %402, %400, %cst_222 {dimension_numbers = #tpu.dot_dimension_numbers<[1], [0], [0], [1], [0, 0, 1, 1], [], []>} : vector<8x16xf32>, vector<16x256xf32>, vector<8x256xf32> -> vector<8x256xf32>
    %404 = arith.addf %397, %403 : vector<8x256xf32>
    %cst_223 = arith.constant 0.000000e+00 : f32
    %405 = vector.broadcast %cst_223 : f32 to vector<16x17xf32>
    %406 = vector.extract_strided_slice %330 {offsets = [0, 17], sizes = [16, 239], strides = [1, 1]} : vector<16x256xf32> to vector<16x239xf32>
    %407 = tpu.concatenate %406, %405 in 1 : vector<16x239xf32>, vector<16x17xf32> -> vector<16x256xf32>
    %cst_224 = arith.constant 0.000000e+00 : f32
    %408 = vector.shape_cast %20 : vector<1x256xi1> to vector<1x256xi1>
    %409 = vector.broadcast %408 : vector<1x256xi1> to vector<16x256xi1>
    %410 = vector.broadcast %cst_224 : f32 to vector<16x256xf32>
    %411 = arith.select %409, %407, %410 : vector<16x256xi1>, vector<16x256xf32>
    %c35 = arith.constant 35 : index
    %c0_225 = arith.constant 0 : index
    %c0_226 = arith.constant 0 : index
    %412 = vector.load %arg3[%c35, %c0_225, %c0_226] : memref<36x8x16xf32, #tpu.memory_space<vmem>>, vector<1x8x16xf32>
    %413 = vector.shape_cast %412 : vector<1x8x16xf32> to vector<8x16xf32>
    %cst_227 = arith.constant dense<0.000000e+00> : vector<8x256xf32>
    %414 = tpu.matmul %413, %411, %cst_227 {dimension_numbers = #tpu.dot_dimension_numbers<[1], [0], [0], [1], [0, 0, 1, 1], [], []>} : vector<8x16xf32>, vector<16x256xf32>, vector<8x256xf32> -> vector<8x256xf32>
    %415 = arith.addf %404, %414 : vector<8x256xf32>
    %c24_228 = arith.constant 24 : index
    %c0_229 = arith.constant 0 : index
    %416 = vector.load %arg7[%c24_228, %c0_229] : memref<32x256xf32, #tpu.memory_space<vmem>>, vector<8x256xf32>
    tpu.vector_store %arg7[%c24_228, %c0_229], %415 {strides = array<i32>} : memref<32x256xf32, #tpu.memory_space<vmem>>, vector<8x256xf32>,
    %c1_230 = arith.constant 1 : index
    %c0_231 = arith.constant 0 : index
    %c0_232 = arith.constant 0 : index
    %417 = vector.load %arg4[%c1_230, %c0_231, %c0_232] : memref<2x16x32xf32, #tpu.memory_space<vmem>>, vector<1x16x32xf32>
    %418 = vector.shape_cast %417 : vector<1x16x32xf32> to vector<16x32xf32>
    %c0_233 = arith.constant 0 : index
    %c0_234 = arith.constant 0 : index
    %419 = vector.load %arg7[%c0_233, %c0_234] : memref<32x256xf32, #tpu.memory_space<vmem>>, vector<32x256xf32>
    %cst_235 = arith.constant dense<0.000000e+00> : vector<16x256xf32>
    %420 = tpu.matmul %418, %419, %cst_235 {dimension_numbers = #tpu.dot_dimension_numbers<[1], [0], [0], [1], [0, 0, 1, 1], [], []>} : vector<16x32xf32>, vector<32x256xf32>, vector<16x256xf32> -> vector<16x256xf32>
    %421 = arith.addf %420, %221 : vector<16x256xf32>
    %c1_236 = arith.constant 1 : index
    %c0_237 = arith.constant 0 : index
    %c0_238 = arith.constant 0 : index
    %422 = vector.load %arg5[%c1_236, %c0_237, %c0_238] : memref<2x16x16xf32, #tpu.memory_space<vmem>>, vector<1x16x16xf32>
    %423 = vector.shape_cast %422 : vector<1x16x16xf32> to vector<16x16xf32>
    %cst_239 = arith.constant dense<0.000000e+00> : vector<16x256xf32>
    %424 = tpu.matmul %423, %421, %cst_239 {dimension_numbers = #tpu.dot_dimension_numbers<[1], [0], [0], [1], [0, 0, 1, 1], [], []>} : vector<16x16xf32>, vector<16x256xf32>, vector<16x256xf32> -> vector<16x256xf32>
    %425 = arith.addf %225, %424 : vector<16x256xf32>
    %426 = arith.addf %24, %425 : vector<16x256xf32>
    %c0_240 = arith.constant 0 : index
    %c0_241 = arith.constant 0 : index
    %c0_242 = arith.constant 0 : index
    %427 = vector.load %arg6[%c0_240, %c0_241, %c0_242] : memref<1x16x256xf32, #tpu.memory_space<vmem>>, vector<1x16x256xf32>
    %428 = vector.shape_cast %427 : vector<1x16x256xf32> to vector<16x256xf32>
    %429 = vector.shape_cast %426 : vector<16x256xf32> to vector<1x16x256xf32>
    tpu.vector_store %arg6[%c0_240, %c0_241, %c0_242], %429 {strides = array<i32>} : memref<1x16x256xf32, #tpu.memory_space<vmem>>, vector<1x16x256xf32>,
    return
  }
  func.func @transform_0(%arg0: i32) -> (i32, i32, i32) {
    %c0_i32 = arith.constant 0 : i32
    %c0_i32_0 = arith.constant 0 : i32
    %c0_i32_1 = arith.constant 0 : i32
    return %arg0, %c0_i32, %c0_i32_0 : i32, i32, i32
  }
  func.func @transform_1(%arg0: i32) -> (i32, i32, i32) {
    %c0_i32 = arith.constant 0 : i32
    %c0_i32_0 = arith.constant 0 : i32
    %c0_i32_1 = arith.constant 0 : i32
    %c0_i32_2 = arith.constant 0 : i32
    return %c0_i32, %c0_i32_0, %c0_i32_1 : i32, i32, i32
  }
  func.func @transform_2(%arg0: i32) -> (i32, i32, i32) {
    %c0_i32 = arith.constant 0 : i32
    %c0_i32_0 = arith.constant 0 : i32
    %c0_i32_1 = arith.constant 0 : i32
    %c0_i32_2 = arith.constant 0 : i32
    return %c0_i32, %c0_i32_0, %c0_i32_1 : i32, i32, i32
  }
  func.func @transform_3(%arg0: i32) -> (i32, i32, i32) {
    %c0_i32 = arith.constant 0 : i32
    %c0_i32_0 = arith.constant 0 : i32
    %c0_i32_1 = arith.constant 0 : i32
    %c0_i32_2 = arith.constant 0 : i32
    return %c0_i32, %c0_i32_0, %c0_i32_1 : i32, i32, i32
  }
  func.func @transform_4(%arg0: i32) -> (i32, i32, i32) {
    %c0_i32 = arith.constant 0 : i32
    %c0_i32_0 = arith.constant 0 : i32
    %c0_i32_1 = arith.constant 0 : i32
    %c0_i32_2 = arith.constant 0 : i32
    return %c0_i32, %c0_i32_0, %c0_i32_1 : i32, i32, i32
  }
  func.func @transform_5(%arg0: i32) -> (i32, i32, i32) {
    %c0_i32 = arith.constant 0 : i32
    %c0_i32_0 = arith.constant 0 : i32
    %c0_i32_1 = arith.constant 0 : i32
    return %arg0, %c0_i32, %c0_i32_0 : i32, i32, i32
  }
}

module attributes {stable_mosaic.version = 11 : i64} {
  func.func @_conv3x3_kernel(%arg0: i32, %arg1: memref<1x16x256xf32, #tpu.memory_space<vmem>>, %arg2: memref<9x1x16xf32, #tpu.memory_space<vmem>>, %arg3: memref<1x1x256xf32, #tpu.memory_space<vmem>>) attributes {dimension_semantics = [#tpu.dimension_semantics<parallel>], iteration_bounds = array<i64: 2>, scalar_prefetch = 0 : i64, scratch_operands = 0 : i64, tpu.core_type = #tpu.core_type<tc>, window_params = [{transform_indices = @transform_0, window_bounds = array<i64: 1, 16, 256>}, {pipeline_mode = #tpu.pipeline_mode<synchronous>, transform_indices = @transform_1, window_bounds = array<i64: 9, 1, 16>}, {transform_indices = @transform_2, window_bounds = array<i64: 1, 1, 256>}]} {
    %c0 = arith.constant 0 : index
    %c0_0 = arith.constant 0 : index
    %c0_1 = arith.constant 0 : index
    %0 = vector.load %arg1[%c0, %c0_0, %c0_1] : memref<1x16x256xf32, #tpu.memory_space<vmem>>, vector<1x16x256xf32>
    %1 = vector.shape_cast %0 : vector<1x16x256xf32> to vector<16x256xf32>
    %2 = tpu.iota {dimensions = array<i32: 1>} : vector<1x256xi32>
    %c16_i32 = arith.constant 16 : i32
    %c0_i32 = arith.constant 0 : i32
    %3 = arith.cmpi eq, %c16_i32, %c0_i32 : i32
    %c1_i32 = arith.constant 1 : i32
    %4 = arith.select %3, %c1_i32, %c16_i32 : i32
    %5 = vector.broadcast %4 : i32 to vector<1x256xi32>
    %6 = arith.remsi %2, %5 : vector<1x256xi32>
    %c0_i32_2 = arith.constant 0 : i32
    %7 = vector.broadcast %c0_i32_2 : i32 to vector<1x256xi32>
    %8 = arith.cmpi ne, %6, %7 : vector<1x256xi32>
    %c0_i32_3 = arith.constant 0 : i32
    %9 = vector.broadcast %c0_i32_3 : i32 to vector<1x256xi32>
    %10 = arith.cmpi slt, %6, %9 : vector<1x256xi32>
    %c0_i32_4 = arith.constant 0 : i32
    %11 = arith.cmpi slt, %4, %c0_i32_4 : i32
    %12 = vector.broadcast %11 : i1 to vector<1x256xi1>
    %13 = vector.broadcast %12 : vector<1x256xi1> to vector<1x256xi1>
    %14 = arith.xori %10, %13 : vector<1x256xi1>
    %15 = arith.andi %14, %8 : vector<1x256xi1>
    %16 = vector.broadcast %4 : i32 to vector<1x256xi32>
    %17 = arith.addi %6, %16 : vector<1x256xi32>
    %18 = arith.select %15, %17, %6 : vector<1x256xi1>, vector<1x256xi32>
    %c1_i32_5 = arith.constant 1 : i32
    %19 = vector.broadcast %c1_i32_5 : i32 to vector<1x256xi32>
    %20 = arith.cmpi sge, %18, %19 : vector<1x256xi32>
    %c14_i32 = arith.constant 14 : i32
    %21 = vector.broadcast %c14_i32 : i32 to vector<1x256xi32>
    %22 = arith.cmpi sle, %18, %21 : vector<1x256xi32>
    %cst = arith.constant 0.000000e+00 : f32
    %23 = vector.broadcast %cst : f32 to vector<1x256xf32>
    %cst_6 = arith.constant 0.000000e+00 : f32
    %24 = vector.broadcast %cst_6 : f32 to vector<16x17xf32>
    %25 = vector.extract_strided_slice %1 {offsets = [0, 0], sizes = [16, 239], strides = [1, 1]} : vector<16x256xf32> to vector<16x239xf32>
    %26 = tpu.concatenate %24, %25 in 1 : vector<16x17xf32>, vector<16x239xf32> -> vector<16x256xf32>
    %cst_7 = arith.constant 0.000000e+00 : f32
    %27 = vector.shape_cast %20 : vector<1x256xi1> to vector<1x256xi1>
    %28 = vector.broadcast %27 : vector<1x256xi1> to vector<16x256xi1>
    %29 = vector.broadcast %cst_7 : f32 to vector<16x256xf32>
    %30 = arith.select %28, %26, %29 : vector<16x256xi1>, vector<16x256xf32>
    %c0_8 = arith.constant 0 : index
    %c0_9 = arith.constant 0 : index
    %c0_10 = arith.constant 0 : index
    %31 = vector.load %arg2[%c0_8, %c0_9, %c0_10] : memref<9x1x16xf32, #tpu.memory_space<vmem>>, vector<1x1x16xf32>
    %32 = vector.shape_cast %31 : vector<1x1x16xf32> to vector<1x16xf32>
    %cst_11 = arith.constant dense<0.000000e+00> : vector<1x256xf32>
    %33 = tpu.matmul %32, %30, %cst_11 {dimension_numbers = #tpu.dot_dimension_numbers<[1], [0], [0], [1], [0, 0, 1, 1], [], []>} : vector<1x16xf32>, vector<16x256xf32>, vector<1x256xf32> -> vector<1x256xf32>
    %34 = arith.addf %23, %33 : vector<1x256xf32>
    %cst_12 = arith.constant 0.000000e+00 : f32
    %35 = vector.broadcast %cst_12 : f32 to vector<16x16xf32>
    %36 = vector.extract_strided_slice %1 {offsets = [0, 0], sizes = [16, 240], strides = [1, 1]} : vector<16x256xf32> to vector<16x240xf32>
    %37 = tpu.concatenate %35, %36 in 1 : vector<16x16xf32>, vector<16x240xf32> -> vector<16x256xf32>
    %c1 = arith.constant 1 : index
    %c0_13 = arith.constant 0 : index
    %c0_14 = arith.constant 0 : index
    %38 = vector.load %arg2[%c1, %c0_13, %c0_14] : memref<9x1x16xf32, #tpu.memory_space<vmem>>, vector<1x1x16xf32>
    %39 = vector.shape_cast %38 : vector<1x1x16xf32> to vector<1x16xf32>
    %cst_15 = arith.constant dense<0.000000e+00> : vector<1x256xf32>
    %40 = tpu.matmul %39, %37, %cst_15 {dimension_numbers = #tpu.dot_dimension_numbers<[1], [0], [0], [1], [0, 0, 1, 1], [], []>} : vector<1x16xf32>, vector<16x256xf32>, vector<1x256xf32> -> vector<1x256xf32>
    %41 = arith.addf %34, %40 : vector<1x256xf32>
    %cst_16 = arith.constant 0.000000e+00 : f32
    %42 = vector.broadcast %cst_16 : f32 to vector<16x15xf32>
    %43 = vector.extract_strided_slice %1 {offsets = [0, 0], sizes = [16, 241], strides = [1, 1]} : vector<16x256xf32> to vector<16x241xf32>
    %44 = tpu.concatenate %42, %43 in 1 : vector<16x15xf32>, vector<16x241xf32> -> vector<16x256xf32>
    %cst_17 = arith.constant 0.000000e+00 : f32
    %45 = vector.shape_cast %22 : vector<1x256xi1> to vector<1x256xi1>
    %46 = vector.broadcast %45 : vector<1x256xi1> to vector<16x256xi1>
    %47 = vector.broadcast %cst_17 : f32 to vector<16x256xf32>
    %48 = arith.select %46, %44, %47 : vector<16x256xi1>, vector<16x256xf32>
    %c2 = arith.constant 2 : index
    %c0_18 = arith.constant 0 : index
    %c0_19 = arith.constant 0 : index
    %49 = vector.load %arg2[%c2, %c0_18, %c0_19] : memref<9x1x16xf32, #tpu.memory_space<vmem>>, vector<1x1x16xf32>
    %50 = vector.shape_cast %49 : vector<1x1x16xf32> to vector<1x16xf32>
    %cst_20 = arith.constant dense<0.000000e+00> : vector<1x256xf32>
    %51 = tpu.matmul %50, %48, %cst_20 {dimension_numbers = #tpu.dot_dimension_numbers<[1], [0], [0], [1], [0, 0, 1, 1], [], []>} : vector<1x16xf32>, vector<16x256xf32>, vector<1x256xf32> -> vector<1x256xf32>
    %52 = arith.addf %41, %51 : vector<1x256xf32>
    %cst_21 = arith.constant 0.000000e+00 : f32
    %53 = vector.broadcast %cst_21 : f32 to vector<16x1xf32>
    %54 = vector.extract_strided_slice %1 {offsets = [0, 0], sizes = [16, 255], strides = [1, 1]} : vector<16x256xf32> to vector<16x255xf32>
    %55 = tpu.concatenate %53, %54 in 1 : vector<16x1xf32>, vector<16x255xf32> -> vector<16x256xf32>
    %cst_22 = arith.constant 0.000000e+00 : f32
    %56 = vector.shape_cast %20 : vector<1x256xi1> to vector<1x256xi1>
    %57 = vector.broadcast %56 : vector<1x256xi1> to vector<16x256xi1>
    %58 = vector.broadcast %cst_22 : f32 to vector<16x256xf32>
    %59 = arith.select %57, %55, %58 : vector<16x256xi1>, vector<16x256xf32>
    %c3 = arith.constant 3 : index
    %c0_23 = arith.constant 0 : index
    %c0_24 = arith.constant 0 : index
    %60 = vector.load %arg2[%c3, %c0_23, %c0_24] : memref<9x1x16xf32, #tpu.memory_space<vmem>>, vector<1x1x16xf32>
    %61 = vector.shape_cast %60 : vector<1x1x16xf32> to vector<1x16xf32>
    %cst_25 = arith.constant dense<0.000000e+00> : vector<1x256xf32>
    %62 = tpu.matmul %61, %59, %cst_25 {dimension_numbers = #tpu.dot_dimension_numbers<[1], [0], [0], [1], [0, 0, 1, 1], [], []>} : vector<1x16xf32>, vector<16x256xf32>, vector<1x256xf32> -> vector<1x256xf32>
    %63 = arith.addf %52, %62 : vector<1x256xf32>
    %c4 = arith.constant 4 : index
    %c0_26 = arith.constant 0 : index
    %c0_27 = arith.constant 0 : index
    %64 = vector.load %arg2[%c4, %c0_26, %c0_27] : memref<9x1x16xf32, #tpu.memory_space<vmem>>, vector<1x1x16xf32>
    %65 = vector.shape_cast %64 : vector<1x1x16xf32> to vector<1x16xf32>
    %cst_28 = arith.constant dense<0.000000e+00> : vector<1x256xf32>
    %66 = tpu.matmul %65, %1, %cst_28 {dimension_numbers = #tpu.dot_dimension_numbers<[1], [0], [0], [1], [0, 0, 1, 1], [], []>} : vector<1x16xf32>, vector<16x256xf32>, vector<1x256xf32> -> vector<1x256xf32>
    %67 = arith.addf %63, %66 : vector<1x256xf32>
    %cst_29 = arith.constant 0.000000e+00 : f32
    %68 = vector.broadcast %cst_29 : f32 to vector<16x1xf32>
    %69 = vector.extract_strided_slice %1 {offsets = [0, 1], sizes = [16, 255], strides = [1, 1]} : vector<16x256xf32> to vector<16x255xf32>
    %70 = tpu.concatenate %69, %68 in 1 : vector<16x255xf32>, vector<16x1xf32> -> vector<16x256xf32>
    %cst_30 = arith.constant 0.000000e+00 : f32
    %71 = vector.shape_cast %22 : vector<1x256xi1> to vector<1x256xi1>
    %72 = vector.broadcast %71 : vector<1x256xi1> to vector<16x256xi1>
    %73 = vector.broadcast %cst_30 : f32 to vector<16x256xf32>
    %74 = arith.select %72, %70, %73 : vector<16x256xi1>, vector<16x256xf32>
    %c5 = arith.constant 5 : index
    %c0_31 = arith.constant 0 : index
    %c0_32 = arith.constant 0 : index
    %75 = vector.load %arg2[%c5, %c0_31, %c0_32] : memref<9x1x16xf32, #tpu.memory_space<vmem>>, vector<1x1x16xf32>
    %76 = vector.shape_cast %75 : vector<1x1x16xf32> to vector<1x16xf32>
    %cst_33 = arith.constant dense<0.000000e+00> : vector<1x256xf32>
    %77 = tpu.matmul %76, %74, %cst_33 {dimension_numbers = #tpu.dot_dimension_numbers<[1], [0], [0], [1], [0, 0, 1, 1], [], []>} : vector<1x16xf32>, vector<16x256xf32>, vector<1x256xf32> -> vector<1x256xf32>
    %78 = arith.addf %67, %77 : vector<1x256xf32>
    %cst_34 = arith.constant 0.000000e+00 : f32
    %79 = vector.broadcast %cst_34 : f32 to vector<16x15xf32>
    %80 = vector.extract_strided_slice %1 {offsets = [0, 15], sizes = [16, 241], strides = [1, 1]} : vector<16x256xf32> to vector<16x241xf32>
    %81 = tpu.concatenate %80, %79 in 1 : vector<16x241xf32>, vector<16x15xf32> -> vector<16x256xf32>
    %cst_35 = arith.constant 0.000000e+00 : f32
    %82 = vector.shape_cast %20 : vector<1x256xi1> to vector<1x256xi1>
    %83 = vector.broadcast %82 : vector<1x256xi1> to vector<16x256xi1>
    %84 = vector.broadcast %cst_35 : f32 to vector<16x256xf32>
    %85 = arith.select %83, %81, %84 : vector<16x256xi1>, vector<16x256xf32>
    %c6 = arith.constant 6 : index
    %c0_36 = arith.constant 0 : index
    %c0_37 = arith.constant 0 : index
    %86 = vector.load %arg2[%c6, %c0_36, %c0_37] : memref<9x1x16xf32, #tpu.memory_space<vmem>>, vector<1x1x16xf32>
    %87 = vector.shape_cast %86 : vector<1x1x16xf32> to vector<1x16xf32>
    %cst_38 = arith.constant dense<0.000000e+00> : vector<1x256xf32>
    %88 = tpu.matmul %87, %85, %cst_38 {dimension_numbers = #tpu.dot_dimension_numbers<[1], [0], [0], [1], [0, 0, 1, 1], [], []>} : vector<1x16xf32>, vector<16x256xf32>, vector<1x256xf32> -> vector<1x256xf32>
    %89 = arith.addf %78, %88 : vector<1x256xf32>
    %cst_39 = arith.constant 0.000000e+00 : f32
    %90 = vector.broadcast %cst_39 : f32 to vector<16x16xf32>
    %91 = vector.extract_strided_slice %1 {offsets = [0, 16], sizes = [16, 240], strides = [1, 1]} : vector<16x256xf32> to vector<16x240xf32>
    %92 = tpu.concatenate %91, %90 in 1 : vector<16x240xf32>, vector<16x16xf32> -> vector<16x256xf32>
    %c7 = arith.constant 7 : index
    %c0_40 = arith.constant 0 : index
    %c0_41 = arith.constant 0 : index
    %93 = vector.load %arg2[%c7, %c0_40, %c0_41] : memref<9x1x16xf32, #tpu.memory_space<vmem>>, vector<1x1x16xf32>
    %94 = vector.shape_cast %93 : vector<1x1x16xf32> to vector<1x16xf32>
    %cst_42 = arith.constant dense<0.000000e+00> : vector<1x256xf32>
    %95 = tpu.matmul %94, %92, %cst_42 {dimension_numbers = #tpu.dot_dimension_numbers<[1], [0], [0], [1], [0, 0, 1, 1], [], []>} : vector<1x16xf32>, vector<16x256xf32>, vector<1x256xf32> -> vector<1x256xf32>
    %96 = arith.addf %89, %95 : vector<1x256xf32>
    %cst_43 = arith.constant 0.000000e+00 : f32
    %97 = vector.broadcast %cst_43 : f32 to vector<16x17xf32>
    %98 = vector.extract_strided_slice %1 {offsets = [0, 17], sizes = [16, 239], strides = [1, 1]} : vector<16x256xf32> to vector<16x239xf32>
    %99 = tpu.concatenate %98, %97 in 1 : vector<16x239xf32>, vector<16x17xf32> -> vector<16x256xf32>
    %cst_44 = arith.constant 0.000000e+00 : f32
    %100 = vector.shape_cast %22 : vector<1x256xi1> to vector<1x256xi1>
    %101 = vector.broadcast %100 : vector<1x256xi1> to vector<16x256xi1>
    %102 = vector.broadcast %cst_44 : f32 to vector<16x256xf32>
    %103 = arith.select %101, %99, %102 : vector<16x256xi1>, vector<16x256xf32>
    %c8 = arith.constant 8 : index
    %c0_45 = arith.constant 0 : index
    %c0_46 = arith.constant 0 : index
    %104 = vector.load %arg2[%c8, %c0_45, %c0_46] : memref<9x1x16xf32, #tpu.memory_space<vmem>>, vector<1x1x16xf32>
    %105 = vector.shape_cast %104 : vector<1x1x16xf32> to vector<1x16xf32>
    %cst_47 = arith.constant dense<0.000000e+00> : vector<1x256xf32>
    %106 = tpu.matmul %105, %103, %cst_47 {dimension_numbers = #tpu.dot_dimension_numbers<[1], [0], [0], [1], [0, 0, 1, 1], [], []>} : vector<1x16xf32>, vector<16x256xf32>, vector<1x256xf32> -> vector<1x256xf32>
    %107 = arith.addf %96, %106 : vector<1x256xf32>
    %c0_48 = arith.constant 0 : index
    %c0_49 = arith.constant 0 : index
    %c0_50 = arith.constant 0 : index
    %108 = vector.load %arg3[%c0_48, %c0_49, %c0_50] : memref<1x1x256xf32, #tpu.memory_space<vmem>>, vector<1x1x256xf32>
    %109 = vector.shape_cast %108 : vector<1x1x256xf32> to vector<1x256xf32>
    %110 = vector.shape_cast %107 : vector<1x256xf32> to vector<1x1x256xf32>
    tpu.vector_store %arg3[%c0_48, %c0_49, %c0_50], %110 {strides = array<i32>} : memref<1x1x256xf32, #tpu.memory_space<vmem>>, vector<1x1x256xf32>,
    return
  }
  func.func @transform_0(%arg0: i32) -> (i32, i32, i32) {
    %c0_i32 = arith.constant 0 : i32
    %c0_i32_0 = arith.constant 0 : i32
    %c0_i32_1 = arith.constant 0 : i32
    return %arg0, %c0_i32, %c0_i32_0 : i32, i32, i32
  }
  func.func @transform_1(%arg0: i32) -> (i32, i32, i32) {
    %c0_i32 = arith.constant 0 : i32
    %c0_i32_0 = arith.constant 0 : i32
    %c0_i32_1 = arith.constant 0 : i32
    %c0_i32_2 = arith.constant 0 : i32
    return %c0_i32, %c0_i32_0, %c0_i32_1 : i32, i32, i32
  }
  func.func @transform_2(%arg0: i32) -> (i32, i32, i32) {
    %c0_i32 = arith.constant 0 : i32
    %c0_i32_0 = arith.constant 0 : i32
    %c0_i32_1 = arith.constant 0 : i32
    return %arg0, %c0_i32, %c0_i32_0 : i32, i32, i32
  }
}

</mosaic_0001>

<bundles_post_ra>
// kernel: pix2pix_rdn_forward.7
= control target key start
LH: loop header
LB: loop body
LE: loop exit
PB: predicated region body
PF: predicated region fallthrough
CT: control target
= control target key end

     0   :  { %s1293_s9 = smov 0   ;;  %s1714_s0 = inlined_call_operand.vmem [shape: f32[2,32,256], index: 0, kind: input, shape index: {}]   ;;  %s1715_s1 = inlined_call_operand.vmem [shape: f32[9,16,32], index: 1, kind: input, shape index: {}]   ;;  %s1716_s2 = inlined_call_operand.vmem [shape: f32[2,16,256], index: 2, kind: output, shape index: {}]  }
   0x1 LB: > { %s1093_s10 = sadd.s32 4294967295, %s1268_s9   ;;  %p1097_p0 = scmp.ge.s32.totalorder %s1268_s9, 1  ;;  %s1268_s9 = sphi %s1293_s9, %s12_s9  }
   0x2   : > { %p112_p1 = scmp.lt.s32.totalorder %s1268_s9, 3 }
   0x4   : > { %p113_p2 = pnand %p1097_p0, %p112_p1 }
   0x5   : > { %p134_p3 = scmp.lt.s32.totalorder (!%p113_p2), %s1093_s10, 1  ;;  %s1270_s15 = smov (!%p113_p2), 16  }
   0x6   : > { %116 = sbr.rel (%p113_p2) target bundleno = 425 (0x1a9), region = 28  ;;  %s1271_s16 = smov (!%p113_p2), 17  }
   0x7   : > { %s1272_s17 = smov (!%p113_p2), 15   ;;  %s1273_s18 = smov (!%p113_p2), 1  }
   0x8   : > { %s1274_s19 = smov (!%p113_p2), 127   ;;  %s1275_s20 = smov (!%p113_p2), 113  }
   0x9   : > { %s1276_s21 = smov (!%p113_p2), 112   ;;  %s1277_s22 = smov (!%p113_p2), 111  }
   0xb   : > { %s1728_s10 = smov (!%p134_p3, %s1093_s10), 1  ;;  %vm254_vm0 = vcmask 130048   ;;  %v152_v16 = vlaneseq  ;;  %vm395_vm2 = vcmask 121856   ;;  %vm207_vm3 = vcmask 138240   ;;  %v1103_v50 = vld [vmem:[%s1715_s1 + $0x18] sm:$0xff]  ;;  %v236_v56 = vld [vmem:[%s1715_s1] sm:$0xff] }
   0xc   : > { %s1216_s11 = sshll.u32 %s1728_s10, 6  ;;  %vm1374_vm1 = vmneg %vm254_vm0  ;;  %vm274_vm7 = vcmask 261120   ;;  %vm499_vm9 = vcmask 7168   ;;  %vm658_vm10 = vcmask 1039360   ;;  %vm858_vm11 = vcmask 916480   ;;  %s1217_s5 = sshll.u32 %s1728_s10, 5 }
   0xd   : > { %s138_s14 = scalar_lea.vmem %s1714_s0, %s1216_s11  ;;  %v153_v18 = vand.u32 127, %v152_v16  ;;  %v1128_v16 = vld [vmem:[%s1715_s1 + $0x20] sm:$0xff]  ;;  %vm758_vm12 = vcmask 924672   ;;  %vm950_vm13 = vcmask 908288   ;;  %s143_s8 = scalar_lea.vmem %s1716_s2, %s1217_s5 }
   0xe   : > { %v1307_v0 = vld [vmem:[%s138_s14 + $0x30] sm:$0xff]  ;;  %v1309_v1 = vld [vmem:[%s138_s14 + $0x20] sm:$0xff]  ;;  %v1313_v2 = vld [vmem:[%s138_s14 + $0x28] sm:$0xff] }
   0xf   : > { %250 = vrot.lane.b32.xlu0 %v1307_v0, %s1270_s15  ;;  %246 = vrot.lane.b32.xlu1 %v1309_v1, %s1270_s15  ;;  %v1315_v3 = vld [vmem:[%s138_s14 + $0x38] sm:$0xff]  ;;  %v1317_v4 = vld [vmem:[%s138_s14 + $0x8] sm:$0xff]  ;;  %v1252_v17 = vpack.i.bf16 %v1309_v1, %v1307_v0  ;;  %v1391_v22 = vadd.s32 128, %v153_v18  ;;  %v159_v27 = vand.u32 15, %v153_v18 }
  0x10   : > { %v1319_v5 = vld [vmem:[%s138_s14 + $0x18] sm:$0xff]  ;;  %v1242_v7 = vpack.i.bf16 %v1313_v2, %v1315_v3  ;;  %v1325_v8 = vld [vmem:[%s138_s14 + $0x10] sm:$0xff]  ;;  %v1328_v9 = vld [vmem:[%s138_s14] sm:$0xff] }
  0x11   : > { %v1247_v6 = vpack.i.bf16 %v1317_v4, %v1319_v5  ;;  %v1257_v26 = vpack.i.bf16 %v1328_v9, %v1325_v8  ;;  %v166_v28 = vand.u32 15, %v1391_v22  ;;  %vm1412_vm4 = vcmp.le.s32.totalorder %v159_v27, 14 }
  0x12   : > { %vm1422_vm5 = vcmp.ge.s32.totalorder %v159_v27, 1 }
  0x13   : > { %1248 = vrot.lane.b32.xlu2 %v1247_v6, %s1270_s15  ;;  %vm1426_vm6 = vcmp.ge.s32.totalorder %v166_v28, 1  ;;  %vm1487_vm8 = vcmp.le.s32.totalorder %v166_v28, 14  ;;  %v237_v6 = vld [vmem:[%s1715_s1 + $0x8] sm:$0xff] }
  0x17   : > { %1243 = vrot.lane.b32.xlu0 %v1242_v7, %s1270_s15  ;;  %242 = vrot.lane.b32.xlu1 %v1325_v8, %s1270_s15  ;;  %v1102_v7 = vld [vmem:[%s1715_s1 + $0x10] sm:$0xff] }
  0x1b   : > { %238 = vrot.lane.b32.xlu2 %v1328_v9, %s1270_s15 }
  0x1f   : > { %203 = vrot.lane.b32.xlu0 %v1307_v0, %s1271_s16  ;;  %205 = vrot.lane.b32.xlu1 %v1315_v3, %s1271_s16 }
  0x23   : > { %199 = vrot.lane.b32.xlu2 %v1309_v1, %s1271_s16 }
  0x27   : > { %201 = vrot.lane.b32.xlu0 %v1313_v2, %s1271_s16  ;;  %195 = vrot.lane.b32.xlu1 %v1325_v8, %s1271_s16 }
  0x2b   : > { %197 = vrot.lane.b32.xlu2 %v1319_v5, %s1271_s16 }
  0x2f   : > { %193 = vrot.lane.b32.xlu1 %v1317_v4, %s1271_s16  ;;  %191 = vrot.lane.b32.xlu0 %v1328_v9, %s1271_s16 }
  0x33   : > { %391 = vrot.lane.b32.xlu2 %v1307_v0, %s1272_s17 }
  0x37   : > { %387 = vrot.lane.b32.xlu1 %v1309_v1, %s1272_s17  ;;  %393 = vrot.lane.b32.xlu0 %v1315_v3, %s1272_s17 }
  0x3b   : > { %389 = vrot.lane.b32.xlu2 %v1313_v2, %s1272_s17 }
  0x3f   : > { %385 = vrot.lane.b32.xlu1 %v1319_v5, %s1272_s17  ;;  %383 = vrot.lane.b32.xlu0 %v1325_v8, %s1272_s17 }
  0x43   : > { %379 = vrot.lane.b32.xlu2 %v1328_v9, %s1272_s17 }
  0x47   : > { %495 = vrot.lane.b32.xlu1 %v1307_v0, %s1273_s18  ;;  %381 = vrot.lane.b32.xlu0 %v1317_v4, %s1272_s17 }
  0x4b   : > { %497 = vrot.lane.b32.xlu2 %v1315_v3, %s1273_s18 }
  0x4f   : > { %493 = vrot.lane.b32.xlu1 %v1313_v2, %s1273_s18  ;;  %491 = vrot.lane.b32.xlu0 %v1309_v1, %s1273_s18 }
  0x53   : > { %487 = vrot.lane.b32.xlu2 %v1325_v8, %s1273_s18 }
  0x57   : > { %483 = vrot.lane.b32.xlu1 %v1328_v9, %s1273_s18  ;;  %489 = vrot.lane.b32.xlu0 %v1319_v5, %s1273_s18 }
  0x5b   : > { %485 = vrot.lane.b32.xlu2 %v1317_v4, %s1273_s18 }
  0x5f   : > { %656 = vrot.lane.b32.xlu1 %v1315_v3, %s1274_s19  ;;  %654 = vrot.lane.b32.xlu0 %v1307_v0, %s1274_s19 }
  0x63   : > { %650 = vrot.lane.b32.xlu2 %v1309_v1, %s1274_s19 }
  0x67   : > { %646 = vrot.lane.b32.xlu1 %v1325_v8, %s1274_s19  ;;  %652 = vrot.lane.b32.xlu0 %v1313_v2, %s1274_s19 }
  0x6b   : > { %648 = vrot.lane.b32.xlu2 %v1319_v5, %s1274_s19 }
  0x6d   : > { %v1361_v10 = vpop.permute.xlu2 %1248 }
  0x6e   : > { %v1251_v30 = vunpack.i.h.bf16 %v1361_v10  ;;  %v1250_v31 = vunpack.i.l.bf16 %v1361_v10 }
  0x6f   : > { %644 = vrot.lane.b32.xlu1 %v1317_v4, %s1274_s19  ;;  %642 = vrot.lane.b32.xlu0 %v1328_v9, %s1274_s19 }
  0x73   : > { %754 = vrot.lane.b32.xlu2 %v1307_v0, %s1275_s20 }
  0x75   : > { %v239_v11 = vpop.permute.xlu2 %238 }
  0x76   : > { %v255_v40 = vsel %vm254_vm0, %v239_v11, %v1251_v30 }
  0x77   : > { %750 = vrot.lane.b32.xlu1 %v1309_v1, %s1275_s20  ;;  %756 = vrot.lane.b32.xlu0 %v1315_v3, %s1275_s20 }
  0x7b   : > { %752 = vrot.lane.b32.xlu2 %v1313_v2, %s1275_s20 }
  0x7d   : > { %v1369_v12 = vpop.permute.xlu2 %199 }
  0x7e   : > { %v222_v43 = vsel %vm207_vm3, 0.0, %v1369_v12 }
  0x7f   : > { %748 = vrot.lane.b32.xlu1 %v1319_v5, %s1275_s20  ;;  %746 = vrot.lane.b32.xlu0 %v1325_v8, %s1275_s20 }
  0x81   : > { %v251_v14 = vpop.permute.xlu0 %250  ;;  %v247_v15 = vpop.permute.xlu1 %246 }
  0x82   : > { %1105 = vmatpush.msk.msra.mxu0 %vm1374_vm1, %v251_v14  ;;  %1218 = vmatpush.msk.msra.mxu2 %vm1374_vm1, %v251_v14 }
  0x83   : > { %742 = vrot.lane.b32.xlu2 %v1328_v9, %s1275_s20 }
  0x84   : > { %1107 = vmatpush.msk.msra.mxu0 %vm1374_vm1, %v247_v15  ;;  %1219 = vmatpush.msk.msra.mxu2 %vm1374_vm1, %v247_v15 }
  0x85   : > { %v198_v19 = vpop.permute.xlu2 %197 }
  0x87   : > { %1253 = vrot.lane.b32.xlu1 %v1252_v17, %s1276_s21  ;;  %744 = vrot.lane.b32.xlu0 %v1317_v4, %s1275_s20 }
  0x89   : > { %v1244_v20 = vpop.permute.xlu0 %1243  ;;  %v243_v21 = vpop.permute.xlu1 %242 }
  0x8a   : > { %v1246_v23 = vunpack.i.h.bf16 %v1244_v20  ;;  %v1245_v24 = vunpack.i.l.bf16 %v1244_v20  ;;  %1109 = vmatpush.msk.msra.mxu0 %vm1374_vm1, %v243_v21  ;;  %1220 = vmatpush.msk.msra.mxu2 %vm1374_vm1, %v243_v21  ;;  %v256_v35 = vsel %vm254_vm0, %v243_v21, %v1250_v31 }
  0x8b   : > { %856 = vrot.lane.b32.xlu2 %v1315_v3, %s1276_s21 }
  0x8c   : > { %v258_v25 = vsel %vm254_vm0, %v251_v14, %v1245_v24  ;;  %1111 = vmatpush.msk.msra.mxu0 %vm1374_vm1, %v239_v11  ;;  %1221 = vmatpush.msk.msra.mxu2 %vm1374_vm1, %v239_v11  ;;  %v257_v32 = vsel %vm254_vm0, %v247_v15, %v1246_v23 }
  0x8d   : > { %316 = vmatpush.msra.mxu1 %v258_v25  ;;  %1222 = vmatpush.msra.mxu3 %v258_v25  ;;  %v1407_v29 = vpop.permute.xlu2 %391 }
  0x8e   : > { %v411_v34 = vsel %vm395_vm2, 0.0, %v1407_v29  ;;  %1113 = vmatmul.msk.f32.vlgmr.msra.gmra.mxu2 %vm274_vm7, %v1103_v50  ;;  %1112 = vmatmul.msk.f32.vlgmr.msra.gmra.mxu0 %vm274_vm7, %v1102_v7 }
  0x8f   : > { %317 = vmatpush.msra.mxu1 %v257_v32  ;;  %1223 = vmatpush.msra.mxu3 %v257_v32 }
  0x90   : > { %1258 = vrot.lane.b32.xlu1 %v1257_v26, %s1276_s21  ;;  %852 = vrot.lane.b32.xlu0 %v1313_v2, %s1276_s21 }
  0x91   : > { %v204_v36 = vpop.permute.xlu0 %203  ;;  %v206_v37 = vpop.permute.xlu1 %205  ;;  %318 = vmatpush.msra.mxu1 %v256_v35  ;;  %1224 = vmatpush.msra.mxu3 %v256_v35  ;;  %v1143_v35 = vld [vmem:[%s1715_s1 + $0x38] sm:$0xff] }
  0x92   : > { %v223_v41 = vsel %vm207_vm3, 0.0, %v204_v36  ;;  %v211_v42 = vsel %vm207_vm3, %v204_v36, %v206_v37  ;;  %1130 = vmatpush.msk.msrb.mxu0 %vm1412_vm4, %v411_v34 }
  0x93   : > { %319 = vmatpush.msra.mxu1 %v255_v40  ;;  %1225 = vmatpush.msra.mxu3 %v255_v40 }
  0x94   : > { %1116 = vmatpush.msk.msrb.mxu2 %vm1422_vm5, %v223_v41  ;;  %848 = vrot.lane.b32.xlu2 %v1319_v5, %s1276_s21 }
  0x95   : > { %1122 = vmatpush.msk.msrb.mxu3 %vm1426_vm6, %v211_v42  ;;  %v390_v44 = vpop.permute.xlu2 %389  ;;  %1114 = vmatmul.msk.f32.vlgmr.msra.gmra.mxu1 %vm274_vm7, %v1102_v7 }
  0x96   : > { %1117 = vmatpush.msk.msrb.mxu2 %vm1422_vm5, %v222_v43  ;;  %1115 = vmatmul.msk.f32.vlgmr.msra.gmra.mxu3 %vm274_vm7, %v1103_v50  ;;  %v1162_v50 = vld [vmem:[%s1715_s1 + $0x50] sm:$0xff] }
  0x98   : > { %946 = vrot.lane.b32.xlu1 %v1307_v0, %s1277_s22  ;;  %844 = vrot.lane.b32.xlu0 %v1317_v4, %s1276_s21 }
  0x99   : > { %v202_v45 = vpop.permute.xlu0 %201  ;;  %v196_v46 = vpop.permute.xlu1 %195 }
  0x9a   : > { %v210_v47 = vsel %vm207_vm3, %v1369_v12, %v202_v45  ;;  %v221_v48 = vsel %vm207_vm3, 0.0, %v196_v46  ;;  %v209_v49 = vsel %vm207_vm3, %v196_v46, %v198_v19 }
  0x9b   : > { %1123 = vmatpush.msk.msrb.mxu3 %vm1426_vm6, %v210_v47  ;;  %1118 = vmatpush.msk.msrb.mxu2 %vm1422_vm5, %v221_v48 }
  0x9c   : > { %948 = vrot.lane.b32.xlu2 %v1315_v3, %s1277_s22 }
  0x9d   : > { %1124 = vmatpush.msk.msrb.mxu3 %vm1426_vm6, %v209_v49  ;;  %v380_v51 = vpop.permute.xlu2 %379 }
  0x9e   : > { %v408_v15 = vsel %vm395_vm2, 0.0, %v380_v51 }
  0xa0   : > { %944 = vrot.lane.b32.xlu1 %v1313_v2, %s1277_s22  ;;  %942 = vrot.lane.b32.xlu0 %v1309_v1, %s1277_s22 }
  0xa1   : > { %v194_v52 = vpop.permute.xlu1 %193  ;;  %v192_v53 = vpop.permute.xlu0 %191 }
  0xa2   : > { %v220_v54 = vsel %vm207_vm3, 0.0, %v192_v53  ;;  %v208_v55 = vsel %vm207_vm3, %v192_v53, %v194_v52 }
  0xa3   : > { %1119 = vmatpush.msk.msrb.mxu2 %vm1422_vm5, %v220_v54  ;;  %1125 = vmatpush.msk.msrb.mxu3 %vm1426_vm6, %v208_v55 }
  0xa4   : > { %1120 = vmatmul.msk.f32.vlgmr.msrb.gmra.mxu2 %vm274_vm7, %v236_v56  ;;  %1126 = vmatmul.msk.f32.vlgmr.msrb.gmra.mxu3 %vm274_vm7, %v236_v56  ;;  %v1163_v56 = vld [vmem:[%s1715_s1 + $0x58] sm:$0xff] }
  0xa5   : > { %938 = vrot.lane.b32.xlu2 %v1325_v8, %s1277_s22  ;;  %v498_v57 = vpop.permute.xlu2 %497 }
  0xa8   : > { %940 = vrot.lane.b32.xlu0 %v1319_v5, %s1277_s22  ;;  %934 = vrot.lane.b32.xlu1 %v1328_v9, %s1277_s22 }
  0xa9   : > { %v388_v59 = vpop.permute.xlu1 %387  ;;  %v394_v60 = vpop.permute.xlu0 %393 }
  0xaa   : > { %v399_v61 = vsel %vm395_vm2, %v1407_v29, %v394_v60  ;;  %v410_v62 = vsel %vm395_vm2, 0.0, %v388_v59  ;;  %v398_v63 = vsel %vm395_vm2, %v388_v59, %v390_v44 }
  0xab   : > { %1136 = vmatpush.msk.msrb.mxu1 %vm1487_vm8, %v399_v61  ;;  %1131 = vmatpush.msk.msrb.mxu0 %vm1412_vm4, %v410_v62 }
  0xac   : > { %1121 = vmatmul.msk.f32.gmra.mxu2 %vm274_vm7, %v237_v6  ;;  %1127 = vmatmul.msk.f32.gmra.mxu3 %vm274_vm7, %v237_v6 }
  0xad   : > { %1137 = vmatpush.msk.msrb.mxu1 %vm1487_vm8, %v398_v63  ;;  %936 = vrot.lane.b32.xlu2 %v1317_v4, %s1277_s22  ;;  %v488_v10 = vpop.permute.xlu2 %487 }
  0xae   : > { %v513_v27 = vsel %vm499_vm9, 0.0, %v488_v10 }
  0xb1   : > { %v386_v11 = vpop.permute.xlu1 %385  ;;  %v384_v12 = vpop.permute.xlu0 %383 }
  0xb2   : > { %v409_v13 = vsel %vm395_vm2, 0.0, %v384_v12  ;;  %v397_v14 = vsel %vm395_vm2, %v384_v12, %v386_v11 }
  0xb3   : > { %1132 = vmatpush.msk.msrb.mxu0 %vm1412_vm4, %v409_v13  ;;  %1138 = vmatpush.msk.msrb.mxu1 %vm1487_vm8, %v397_v14  ;;  %v1176_v14 = vld [vmem:[%s1715_s1 + $0x60] sm:$0xff] }
  0xb5   : > { %1133 = vmatpush.msk.msrb.mxu0 %vm1412_vm4, %v408_v15  ;;  %v486_v17 = vpop.permute.xlu2 %485 }
  0xb6   : > { %1134 = vmatmul.msk.f32.vlgmr.msrb.gmra.mxu0 %vm274_vm7, %v1128_v16 }
  0xb7   : > { %604 = vmatpush.msra.mxu0 %v1307_v0  ;;  %v1129_v0 = vld [vmem:[%s1715_s1 + $0x28] sm:$0xff] }
  0xb9   : > { %v496_v18 = vpop.permute.xlu1 %495  ;;  %v382_v19 = vpop.permute.xlu0 %381  ;;  %605 = vmatpush.msra.mxu0 %v1309_v1 }
  0xba   : > { %v515_v20 = vsel %vm499_vm9, 0.0, %v496_v18  ;;  %v396_v21 = vsel %vm395_vm2, %v380_v51, %v382_v19  ;;  %v503_v22 = vsel %vm499_vm9, %v496_v18, %v498_v57 }
  0xbb   : > { %1139 = vmatpush.msk.msrb.mxu1 %vm1487_vm8, %v396_v21  ;;  %1144 = vmatpush.msk.msra.mxu2 %vm1422_vm5, %v515_v20  ;;  %v1177_v21 = vld [vmem:[%s1715_s1 + $0x68] sm:$0xff] }
  0xbc   : > { %1150 = vmatpush.msk.msra.mxu3 %vm1426_vm6, %v503_v22  ;;  %1140 = vmatmul.msk.f32.vlgmr.msrb.gmra.mxu1 %vm274_vm7, %v1128_v16 }
  0xbd   : > { %v651_v1 = vpop.permute.xlu2 %650  ;;  %627 = vmatpush.msra.mxu1 %v1315_v3  ;;  %606 = vmatpush.msra.mxu0 %v1325_v8 }
  0xbe   : > { %1135 = vmatmul.msk.f32.gmra.mxu0 %vm274_vm7, %v1129_v0 }
  0xbf   : > { %628 = vmatpush.msra.mxu1 %v1313_v2  ;;  %607 = vmatpush.msra.mxu0 %v1328_v9  ;;  %v1156_v2 = vld [vmem:[%s1715_s1 + $0x40] sm:$0xff]  ;;  %v1142_v9 = vld [vmem:[%s1715_s1 + $0x30] sm:$0xff] }
  0xc1   : > { %v494_v23 = vpop.permute.xlu1 %493  ;;  %v492_v24 = vpop.permute.xlu0 %491  ;;  %629 = vmatpush.msra.mxu1 %v1319_v5 }
  0xc2   : > { %v502_v25 = vsel %vm499_vm9, %v492_v24, %v494_v23  ;;  %v514_v26 = vsel %vm499_vm9, 0.0, %v492_v24  ;;  %v1190_v24 = vld [vmem:[%s1715_s1 + $0x70] sm:$0xff] }
  0xc3   : > { %1145 = vmatpush.msk.msra.mxu2 %vm1422_vm5, %v514_v26  ;;  %1151 = vmatpush.msk.msra.mxu3 %vm1426_vm6, %v502_v25 }
  0xc4   : > { %1141 = vmatmul.msk.f32.gmra.mxu1 %vm274_vm7, %v1129_v0 }
  0xc5   : > { %1146 = vmatpush.msk.msra.mxu2 %vm1422_vm5, %v513_v27  ;;  %v649_v3 = vpop.permute.xlu2 %648  ;;  %630 = vmatpush.msra.mxu1 %v1317_v4  ;;  %v1157_v4 = vld [vmem:[%s1715_s1 + $0x48] sm:$0xff] }
  0xc6   : > { %1158 = vmatmul.msk.f32.vlgmr.msra.gmra.mxu0 %vm274_vm7, %v1156_v2  ;;  %v672_v46 = vsel %vm658_vm10, %v649_v3, 0.0 }
  0xc9   : > { %v484_v5 = vpop.permute.xlu1 %483  ;;  %v490_v8 = vpop.permute.xlu0 %489 }
  0xca   : > { %v512_v28 = vsel %vm499_vm9, 0.0, %v484_v5  ;;  %v501_v29 = vsel %vm499_vm9, %v488_v10, %v490_v8  ;;  %v500_v30 = vsel %vm499_vm9, %v484_v5, %v486_v17  ;;  %v1191_v5 = vld [vmem:[%s1715_s1 + $0x78] sm:$0xff] }
  0xcb   : > { %1152 = vmatpush.msk.msra.mxu3 %vm1426_vm6, %v501_v29  ;;  %1147 = vmatpush.msk.msra.mxu2 %vm1422_vm5, %v512_v28 }
  0xcc   : > { %1148 = vmatmul.msk.f32.vlgmr.msra.gmra.mxu2 %vm274_vm7, %v1142_v9  ;;  %1160 = vmatmul.msk.f32.vlgmr.msra.gmra.mxu1 %vm274_vm7, %v1156_v2 }
  0xcd   : > { %1153 = vmatpush.msk.msra.mxu3 %vm1426_vm6, %v500_v30  ;;  %v755_v31 = vpop.permute.xlu2 %754 }
  0xce   : > { %1154 = vmatmul.msk.f32.vlgmr.msra.gmra.mxu3 %vm274_vm7, %v1142_v9  ;;  %1159 = vmatmul.msk.f32.gmra.mxu0 %vm274_vm7, %v1157_v4 }
  0xd1   : > { %v657_v32 = vpop.permute.xlu1 %656  ;;  %v655_v34 = vpop.permute.xlu0 %654 }
  0xd2   : > { %v674_v36 = vsel %vm658_vm10, %v657_v32, 0.0  ;;  %v662_v37 = vsel %vm658_vm10, %v655_v34, %v657_v32 }
  0xd3   : > { %1164 = vmatpush.msk.msrb.mxu2 %vm1412_vm4, %v662_v37  ;;  %1170 = vmatpush.msk.msrb.mxu3 %vm1487_vm8, %v674_v36  ;;  %v1200_v37 = vld [vmem:[%s1715_s1 + $0x80] sm:$0xff] }
  0xd4   : > { %1149 = vmatmul.msk.f32.gmra.mxu2 %vm274_vm7, %v1143_v35  ;;  %1161 = vmatmul.msk.f32.gmra.mxu1 %vm274_vm7, %v1157_v4 }
  0xd5   : > { %v753_v40 = vpop.permute.xlu2 %752 }
  0xd6   : > { %1155 = vmatmul.msk.f32.gmra.mxu3 %vm274_vm7, %v1143_v35  ;;  %v773_v61 = vsel %vm758_vm12, %v753_v40, 0.0 }
  0xd9   : > { %v647_v41 = vpop.permute.xlu1 %646  ;;  %v653_v42 = vpop.permute.xlu0 %652 }
  0xda   : > { %v661_v43 = vsel %vm658_vm10, %v651_v1, %v653_v42  ;;  %v673_v44 = vsel %vm658_vm10, %v653_v42, 0.0  ;;  %v660_v45 = vsel %vm658_vm10, %v647_v41, %v649_v3 }
  0xdb   : > { %1165 = vmatpush.msk.msrb.mxu2 %vm1412_vm4, %v661_v43  ;;  %1171 = vmatpush.msk.msrb.mxu3 %vm1487_vm8, %v673_v44 }
  0xdd   : > { %1166 = vmatpush.msk.msrb.mxu2 %vm1412_vm4, %v660_v45  ;;  %1172 = vmatpush.msk.msrb.mxu3 %vm1487_vm8, %v672_v46  ;;  %v743_v47 = vpop.permute.xlu2 %742 }
  0xe1   : > { %v645_v48 = vpop.permute.xlu1 %644  ;;  %v643_v49 = vpop.permute.xlu0 %642 }
  0xe2   : > { %v671_v51 = vsel %vm658_vm10, %v645_v48, 0.0  ;;  %v659_v52 = vsel %vm658_vm10, %v643_v49, %v645_v48 }
  0xe3   : > { %1167 = vmatpush.msk.msrb.mxu2 %vm1412_vm4, %v659_v52  ;;  %1173 = vmatpush.msk.msrb.mxu3 %vm1487_vm8, %v671_v51 }
  0xe4   : > { %1168 = vmatmul.msk.f32.vlgmr.msrb.gmra.mxu2 %vm274_vm7, %v1162_v50  ;;  %1174 = vmatmul.msk.f32.vlgmr.msrb.gmra.mxu3 %vm274_vm7, %v1162_v50 }
  0xe5   : > { %v857_v53 = vpop.permute.xlu2 %856 }
  0xe6   : > { %1194 = vmatpush.msk.msra.mxu3 %vm858_vm11, %v857_v53 }
  0xe9   : > { %v751_v54 = vpop.permute.xlu1 %750  ;;  %v757_v55 = vpop.permute.xlu0 %756 }
  0xea   : > { %v762_v57 = vsel %vm758_vm12, %v755_v31, %v757_v55  ;;  %v774_v59 = vsel %vm758_vm12, %v757_v55, 0.0  ;;  %v761_v60 = vsel %vm758_vm12, %v751_v54, %v753_v40  ;;  %v1201_v40 = vld [vmem:[%s1715_s1 + $0x88] sm:$0xff] }
  0xeb   : > { %1178 = vmatpush.msk.msrb.mxu0 %vm1422_vm5, %v762_v57  ;;  %1184 = vmatpush.msk.msrb.mxu1 %vm1426_vm6, %v774_v59 }
  0xec   : > { %1169 = vmatmul.msk.f32.gmra.mxu2 %vm274_vm7, %v1163_v56  ;;  %1175 = vmatmul.msk.f32.gmra.mxu3 %vm274_vm7, %v1163_v56 }
  0xed   : > { %1179 = vmatpush.msk.msrb.mxu0 %vm1422_vm5, %v761_v60  ;;  %1185 = vmatpush.msk.msrb.mxu1 %vm1426_vm6, %v773_v61 }
  0xee   : > { %v849_v62 = vpop.permute.xlu2 %848 }
  0xf1   : > { %v749_v63 = vpop.permute.xlu1 %748  ;;  %v747_v6 = vpop.permute.xlu0 %746 }
  0xf2   : > { %v772_v7 = vsel %vm758_vm12, %v749_v63, 0.0  ;;  %v760_v10 = vsel %vm758_vm12, %v747_v6, %v749_v63 }
  0xf3   : > { %1180 = vmatpush.msk.msrb.mxu0 %vm1422_vm5, %v760_v10  ;;  %1186 = vmatpush.msk.msrb.mxu1 %vm1426_vm6, %v772_v7 }
  0xf6   : > { %v949_v11 = vpop.permute.xlu2 %948 }
  0xf7   : > { %v966_v18 = vsel %vm950_vm13, %v949_v11, 0.0 }
  0xf9   : > { %v1254_v12 = vpop.permute.xlu1 %1253  ;;  %v745_v13 = vpop.permute.xlu0 %744 }
  0xfa   : > { %v1255_v15 = vunpack.i.l.bf16 %v1254_v12  ;;  %v759_v16 = vsel %vm758_vm12, %v743_v47, %v745_v13  ;;  %v771_v17 = vsel %vm758_vm12, %v745_v13, 0.0  ;;  %v1256_v20 = vunpack.i.h.bf16 %v1254_v12 }
  0xfb   : > { %1181 = vmatpush.msk.msrb.mxu0 %vm1422_vm5, %v759_v16  ;;  %1187 = vmatpush.msk.msrb.mxu1 %vm1426_vm6, %v771_v17 }
  0xfc   : > { %v862_v19 = vsel %vm858_vm11, %v1255_v15, %v857_v53  ;;  %1182 = vmatmul.msk.f32.vlgmr.msrb.gmra.mxu0 %vm274_vm7, %v1176_v14  ;;  %1188 = vmatmul.msk.f32.vlgmr.msrb.gmra.mxu1 %vm274_vm7, %v1176_v14 }
  0xfd   : > { %896 = vmatpush.msra.mxu2 %v862_v19  ;;  %1208 = vmatpush.msk.msra.mxu1 %vm1487_vm8, %v966_v18 }
  0xff   : > { %v939_v3 = vpop.permute.xlu2 %938 }
 0x102   : > { %v1259_v38 = vpop.permute.xlu1 %1258  ;;  %v853_v22 = vpop.permute.xlu0 %852 }
 0x103   : > { %v1260_v0 = vunpack.i.l.bf16 %v1259_v38  ;;  %1195 = vmatpush.msk.msra.mxu3 %vm858_vm11, %v853_v22  ;;  %v861_v39 = vsel %vm858_vm11, %v1256_v20, %v853_v22  ;;  %v1261_v23 = vunpack.i.h.bf16 %v1259_v38 }
 0x104   : > { %897 = vmatpush.msra.mxu2 %v861_v39  ;;  %1183 = vmatmul.msk.f32.gmra.mxu0 %vm274_vm7, %v1177_v21 }
 0x105   : > { %1189 = vmatmul.msk.f32.gmra.mxu1 %vm274_vm7, %v1177_v21  ;;  %1196 = vmatpush.msk.msra.mxu3 %vm858_vm11, %v849_v62  ;;  %v860_v1 = vsel %vm858_vm11, %v1260_v0, %v849_v62 }
 0x106   : > { %898 = vmatpush.msra.mxu2 %v860_v1 }
 0x107   : > { %v937_v30 = vpop.permute.xlu2 %936 }
 0x108   : > { %v963_v36 = vsel %vm950_vm13, %v937_v30, 0.0 }
 0x10a   : > { %v947_v25 = vpop.permute.xlu1 %946  ;;  %v845_v26 = vpop.permute.xlu0 %844 }
 0x10b   : > { %1197 = vmatpush.msk.msra.mxu3 %vm858_vm11, %v845_v26  ;;  %v859_v27 = vsel %vm858_vm11, %v1261_v23, %v845_v26  ;;  %v954_v2 = vsel %vm950_vm13, %v947_v25, %v949_v11  ;;  %v298_v43 = vpop.f32.mrf.mxu0 }
 0x10c   : > { %899 = vmatpush.msra.mxu2 %v859_v27  ;;  %1198 = vmatmul.msk.f32.vlgmr.msra.gmra.mxu3 %vm274_vm7, %v1190_v24 }
 0x10d   : > { %1192 = vmatmul.msk.f32.vlgmr.msra.gmra.mxu2 %vm274_vm7, %v1190_v24  ;;  %1202 = vmatpush.msk.msra.mxu0 %vm1412_vm4, %v954_v2 }
 0x111   : > { %v301_v41 = vpop.f32.mrf.mxu2 }
 0x112   : > { %v945_v8 = vpop.permute.xlu1 %944  ;;  %v943_v9 = vpop.permute.xlu0 %942 }
 0x113   : > { %v965_v28 = vsel %vm950_vm13, %v945_v8, 0.0  ;;  %v953_v29 = vsel %vm950_vm13, %v943_v9, %v945_v8  ;;  %v321_v33 = vpop.f32.mrf.mxu1 }
 0x114   : > { %1199 = vmatmul.msk.f32.gmra.mxu3 %vm274_vm7, %v1191_v5  ;;  %1203 = vmatpush.msk.msra.mxu0 %vm1412_vm4, %v953_v29 }
 0x115   : > { %1193 = vmatmul.msk.f32.gmra.mxu2 %vm274_vm7, %v1191_v5  ;;  %1209 = vmatpush.msk.msra.mxu1 %vm1487_vm8, %v965_v28 }
 0x119   : > { %v324_v42 = vpop.f32.mrf.mxu3 }
 0x11a   : > { %v941_v4 = vpop.permute.xlu0 %940  ;;  %v935_v31 = vpop.permute.xlu1 %934 }
 0x11b   : > { %v952_v32 = vsel %vm950_vm13, %v939_v3, %v941_v4  ;;  %v964_v34 = vsel %vm950_vm13, %v941_v4, 0.0  ;;  %v951_v35 = vsel %vm950_vm13, %v935_v31, %v937_v30 }
 0x11c   : > { %1204 = vmatpush.msk.msra.mxu0 %vm1412_vm4, %v952_v32  ;;  %1210 = vmatpush.msk.msra.mxu1 %vm1487_vm8, %v964_v34 }
 0x11e   : > { %1205 = vmatpush.msk.msra.mxu0 %vm1412_vm4, %v951_v35  ;;  %1211 = vmatpush.msk.msra.mxu1 %vm1487_vm8, %v963_v36 }
 0x11f   : > { %1206 = vmatmul.msk.f32.vlgmr.msra.gmra.mxu0 %vm274_vm7, %v1200_v37  ;;  %1212 = vmatmul.msk.f32.vlgmr.msra.gmra.mxu1 %vm274_vm7, %v1200_v37 }
 0x127   : > { %1207 = vmatmul.msk.f32.gmra.mxu0 %vm274_vm7, %v1201_v40  ;;  %1213 = vmatmul.msk.f32.gmra.mxu1 %vm274_vm7, %v1201_v40  ;;  %v350_v44 = vpop.f32.mrf.mxu2  ;;  %v373_v45 = vpop.f32.mrf.mxu3 }
 0x128   : > { %v351_v62 = vadd.f32 %v350_v44, %v298_v43  ;;  %v374_v63 = vadd.f32 %v373_v45, %v321_v33 }
 0x12f   : > { %v353_v47 = vpop.f32.mrf.mxu2  ;;  %v376_v48 = vpop.f32.mrf.mxu3 }
 0x130   : > { %v354_v16 = vadd.f32 %v353_v47, %v301_v41  ;;  %v377_v17 = vadd.f32 %v376_v48, %v324_v42 }
 0x133   : > { %v450_v58 = vpop.f32.mrf.mxu0 }
 0x134   : > { %v479_v10 = vadd.f32 %v450_v58, %v351_v62 }
 0x139   : > { %v473_v46 = vpop.f32.mrf.mxu1 }
 0x13a   : > { %v480_v11 = vadd.f32 %v473_v46, %v374_v63 }
 0x13b   : > { %v453_v49 = vpop.f32.mrf.mxu0 }
 0x13c   : > { %v481_v38 = vadd.f32 %v453_v49, %v354_v16 }
 0x141   : > { %v476_v50 = vpop.f32.mrf.mxu1 }
 0x142   : > { %v482_v22 = vadd.f32 %v476_v50, %v377_v17 }
 0x143   : > { %v609_v53 = vpop.f32.mrf.mxu0 }
 0x149   : > { %v632_v54 = vpop.f32.mrf.mxu1 }
 0x14b   : > { %v612_v57 = vpop.f32.mrf.mxu0 }
 0x14f   : > { %v550_v51 = vpop.f32.mrf.mxu2 }
 0x150   : > { %v579_v14 = vadd.f32 %v550_v51, %v479_v10 }
 0x151   : > { %v573_v52 = vpop.f32.mrf.mxu3  ;;  %v635_v59 = vpop.f32.mrf.mxu1 }
 0x152   : > { %v580_v15 = vadd.f32 %v573_v52, %v480_v11  ;;  %v638_v18 = vadd.f32 %v609_v53, %v579_v14 }
 0x154   : > { %v639_v19 = vadd.f32 %v632_v54, %v580_v15 }
 0x157   : > { %v553_v55 = vpop.f32.mrf.mxu2 }
 0x158   : > { %v581_v24 = vadd.f32 %v553_v55, %v481_v38 }
 0x159   : > { %v576_v56 = vpop.f32.mrf.mxu3 }
 0x15a   : > { %v582_v25 = vadd.f32 %v576_v56, %v482_v22  ;;  %v640_v9 = vadd.f32 %v612_v57, %v581_v24 }
 0x15c   : > { %v641_v28 = vadd.f32 %v635_v59, %v582_v25 }
 0x167   : > { %v709_v60 = vpop.f32.mrf.mxu2  ;;  %v732_v61 = vpop.f32.mrf.mxu3 }
 0x168   : > { %v738_v1 = vadd.f32 %v709_v60, %v638_v18  ;;  %v739_v23 = vadd.f32 %v732_v61, %v639_v19 }
 0x16f   : > { %v712_v12 = vpop.f32.mrf.mxu2  ;;  %v735_v13 = vpop.f32.mrf.mxu3 }
 0x170   : > { %v740_v4 = vadd.f32 %v712_v12, %v640_v9  ;;  %v741_v31 = vadd.f32 %v735_v13, %v641_v28 }
 0x179   : > { %v809_v6 = vpop.f32.mrf.mxu0  ;;  %v832_v7 = vpop.f32.mrf.mxu1 }
 0x17a   : > { %v838_v26 = vadd.f32 %v809_v6, %v738_v1  ;;  %v839_v27 = vadd.f32 %v832_v7, %v739_v23 }
 0x181   : > { %v812_v20 = vpop.f32.mrf.mxu0 }
 0x182   : > { %v835_v21 = vpop.f32.mrf.mxu1  ;;  %v840_v35 = vadd.f32 %v812_v20, %v740_v4 }
 0x183   : > { %v841_v36 = vadd.f32 %v835_v21, %v741_v31 }
 0x18f   : > { %v924_v0 = vpop.f32.mrf.mxu3 }
 0x190   : > { %v901_v39 = vpop.f32.mrf.mxu2  ;;  %v931_v2 = vadd.f32 %v924_v0, %v839_v27 }
 0x191   : > { %v930_v3 = vadd.f32 %v901_v39, %v838_v26 }
 0x197   : > { %v927_v32 = vpop.f32.mrf.mxu3 }
 0x198   : > { %v904_v34 = vpop.f32.mrf.mxu2  ;;  %v933_v37 = vadd.f32 %v927_v32, %v841_v36 }
 0x199   : > { %v932_v40 = vadd.f32 %v904_v34, %v840_v35 }
 0x19c   : > { %v1001_v5 = vpop.f32.mrf.mxu0  ;;  %v1024_v8 = vpop.f32.mrf.mxu1 }
 0x19d   : > { %v1030_v29 = vadd.f32 %v1001_v5, %v930_v3  ;;  %v1031_v30 = vadd.f32 %v1024_v8, %v931_v2 }
 0x19f   : > { %1034 = vst [vmem:[%s143_s8] sm:$0xff] %v1030_v29 }
 0x1a0   : > { %1035 = vst [vmem:[%s143_s8 + $0x8] sm:$0xff] %v1031_v30 }
 0x1a4   : > { %v1004_v41 = vpop.f32.mrf.mxu0  ;;  %v1027_v42 = vpop.f32.mrf.mxu1 }
 0x1a5   : > { %v1032_v43 = vadd.f32 %v1004_v41, %v932_v40  ;;  %v1033_v33 = vadd.f32 %v1027_v42, %v933_v37 }
 0x1a7   : > { %1036 = vst [vmem:[%s143_s8 + $0x10] sm:$0xff] %v1032_v43 }
 0x1a8   : > { %1037 = vst [vmem:[%s143_s8 + $0x18] sm:$0xff] %v1033_v33 }
 0x1a9 PF: > { %s12_s9 = sadd.s32 1, %s1268_s9  }
 0x1aa   : > { %p9_p4 = scmp.ge.s32.totalorder %s12_s9, 4  }
 0x1ac   :  { %11 = sbr.rel (!%p9_p4) target bundleno = 1 (0x1), region = 66 }

// kernel: pix2pix_rdn_forward.5
= control target key start
LH: loop header
LB: loop body
LE: loop exit
PB: predicated region body
PF: predicated region fallthrough
CT: control target
= control target key end

     0   :  { %s1059_s9 = smov 0   ;;  %s1241_s0 = inlined_call_operand.vmem [shape: f32[2,3,256], index: 0, kind: input, shape index: {}]   ;;  %s1242_s1 = inlined_call_operand.vmem [shape: f32[9,16,3], index: 1, kind: input, shape index: {}]   ;;  %s1243_s2 = inlined_call_operand.vmem [shape: f32[2,16,256], index: 2, kind: output, shape index: {}]  }
   0x1 LB: > { %s927_s10 = sadd.s32 4294967295, %s1034_s9   ;;  %p931_p0 = scmp.ge.s32.totalorder %s1034_s9, 1  ;;  %s1034_s9 = sphi %s1059_s9, %s12_s9  }
   0x2   : > { %p112_p1 = scmp.lt.s32.totalorder %s1034_s9, 3 }
   0x4   : > { %p113_p2 = pnand %p931_p0, %p112_p1 }
   0x5   : > { %p134_p3 = scmp.lt.s32.totalorder (!%p113_p2), %s927_s10, 1  ;;  %s1036_s15 = smov (!%p113_p2), 17  }
   0x6   : > { %116 = sbr.rel (%p113_p2) target bundleno = 357 (0x165), region = 28  ;;  %s1037_s16 = smov (!%p113_p2), 16  }
   0x7   : > { %s1038_s17 = smov (!%p113_p2), 15   ;;  %s1039_s18 = smov (!%p113_p2), 1  }
   0x8   : > { %s1040_s19 = smov (!%p113_p2), 127   ;;  %s1041_s20 = smov (!%p113_p2), 113  }
   0x9   : > { %s1042_s21 = smov (!%p113_p2), 112   ;;  %s1043_s22 = smov (!%p113_p2), 111  }
   0xb   : > { %s1253_s10 = smov (!%p134_p3, %s927_s10), 1  ;;  %v145_v19 = vlaneseq  ;;  %vm184_vm0 = vcmask 138240   ;;  %vm335_vm1 = vcmask 121856   ;;  %vm204_vm2 = vcmask 130048   ;;  %v937_v30 = vld [vmem:[%s1242_s1 + $0x18] sm:$0xff]  ;;  %v936_v32 = vld [vmem:[%s1242_s1 + $0x10] sm:$0xff] }
   0xc   : > { %s1008_s11 = sshll.u32 %s1253_s10, 3  ;;  %vm218_vm5 = vcmask 1042432   ;;  %vm211_vm6 = vcmask 23552   ;;  %v195_v43 = vld [vmem:[%s1242_s1] sm:$0xff]  ;;  %vm418_vm9 = vcmask 7168   ;;  %v196_v51 = vld [vmem:[%s1242_s1 + $0x8] sm:$0xff] }
   0xd   : > { %s138_s14 = scalar_lea.vmem %s1241_s0, %s1008_s11  ;;  %v146_v21 = vand.u32 127, %v145_v19  ;;  %v950_v48 = vld [vmem:[%s1242_s1 + $0x20] sm:$0xff]  ;;  %vm642_vm10 = vcmask 924672   ;;  %v951_v57 = vld [vmem:[%s1242_s1 + $0x28] sm:$0xff]  ;;  %v958_v60 = vld [vmem:[%s1242_s1 + $0x30] sm:$0xff]  ;;  %vm563_vm11 = vcmask 1039360  }
   0xe   : > { %v144_v0 = vld [vmem:[%s138_s14] sm:$0x77]  ;;  %v959_v63 = vld [vmem:[%s1242_s1 + $0x38] sm:$0xff]  ;;  %vm721_vm12 = vcmask 916480   ;;  %vm796_vm13 = vcmask 908288   ;;  %s1009_s5 = sshll.u32 %s1253_s10, 5 }
   0xf   : > { %177 = vst [vmem:[#allocation1] ss:$2 sm:$0xff] %v144_v0  ;;  %v152_v23 = vand.u32 15, %v146_v21  ;;  %v147_v24 = vadd.s32 128, %v146_v21  ;;  %v966_v61 = vld [vmem:[%s1242_s1 + $0x40] sm:$0xff]  ;;  %s143_s8 = scalar_lea.vmem %s1243_s2, %s1009_s5 }
  0x11   : > { %vm1077_vm3 = vcmp.ge.s32.totalorder %v152_v23, 1  ;;  %vm1081_vm4 = vcmp.le.s32.totalorder %v152_v23, 14  ;;  %v159_v36 = vand.u32 15, %v147_v24  ;;  %v998_v23 = vld [vmem:[%s1242_s1 + $0x80] sm:$0xff]  ;;  %v991_v24 = vld [vmem:[%s1242_s1 + $0x78] sm:$0xff] }
  0x13   : > { %vm1105_vm7 = vcmp.ge.s32.totalorder %v159_v36, 1  ;;  %vm1109_vm8 = vcmp.le.s32.totalorder %v159_v36, 14 }
  0x16   : > { %v178_v1 = vld.sshfl [vmem:[#allocation1] sm:$0xff pattern:$0x75316420]  ;;  %v179_v2 = vld.sshfl [vmem:[#allocation1 + $0x8] sm:$0xff pattern:$0x75316420] }
  0x17   : > { %180 = vrot.lane.b32.xlu1 %v178_v1, %s1036_s15  ;;  %197 = vst [vmem:[#allocation1] ss:$2 sm:$0xff] %v144_v0 }
  0x1e   : > { %v198_v3 = vld.sshfl [vmem:[#allocation1] sm:$0xff pattern:$0x75316420]  ;;  %v199_v4 = vld.sshfl [vmem:[#allocation1 + $0x8] sm:$0xff pattern:$0x75316420] }
  0x1f   : > { %182 = vrot.lane.b32.xlu1 %v179_v2, %s1036_s15  ;;  %200 = vrot.lane.b32.xlu0 %v198_v3, %s1037_s16  ;;  %328 = vst [vmem:[#allocation1] ss:$2 sm:$0xff] %v144_v0 }
  0x26   : > { %v329_v5 = vld.sshfl [vmem:[#allocation1] sm:$0xff pattern:$0x75316420]  ;;  %v330_v6 = vld.sshfl [vmem:[#allocation1 + $0x8] sm:$0xff pattern:$0x75316420] }
  0x27   : > { %202 = vrot.lane.b32.xlu0 %v199_v4, %s1037_s16  ;;  %411 = vst [vmem:[#allocation1] ss:$2 sm:$0xff] %v144_v0  ;;  %331 = vrot.lane.b32.xlu2 %v329_v5, %s1038_s17  ;;  %v967_v4 = vld [vmem:[%s1242_s1 + $0x48] sm:$0xff] }
  0x2e   : > { %v413_v7 = vld.sshfl [vmem:[#allocation1 + $0x8] sm:$0xff pattern:$0x75316420]  ;;  %v412_v8 = vld.sshfl [vmem:[#allocation1] sm:$0xff pattern:$0x75316420] }
  0x2f   : > { %416 = vrot.lane.b32.xlu1 %v413_v7, %s1039_s18  ;;  %414 = vrot.lane.b32.xlu0 %v412_v8, %s1039_s18  ;;  %493 = vst [vmem:[#allocation1] ss:$2 sm:$0xff] %v144_v0 }
  0x30   : > { %333 = vrot.lane.b32.xlu2 %v330_v6, %s1038_s17  ;;  %v974_v6 = vld [vmem:[%s1242_s1 + $0x50] sm:$0xff] }
  0x36   : > { %v494_v9 = vld.sshfl [vmem:[#allocation1] sm:$0xff pattern:$0x75316420]  ;;  %v1073_v10 = vld.sshfl [vmem:[#allocation1 + $0x8] sm:$0xff pattern:$0x75316420] }
  0x37   : > { %556 = vst [vmem:[#allocation1] ss:$2 sm:$0xff] %v144_v0 }
  0x3e   : > { %v558_v11 = vld.sshfl [vmem:[#allocation1 + $0x8] sm:$0xff pattern:$0x75316420]  ;;  %v557_v12 = vld.sshfl [vmem:[#allocation1] sm:$0xff pattern:$0x75316420] }
  0x3f   : > { %561 = vrot.lane.b32.xlu0 %v558_v11, %s1040_s19  ;;  %635 = vst [vmem:[#allocation1] ss:$2 sm:$0xff] %v144_v0  ;;  %559 = vrot.lane.b32.xlu2 %v557_v12, %s1040_s19  ;;  %v975_v12 = vld [vmem:[%s1242_s1 + $0x58] sm:$0xff] }
  0x46   : > { %v636_v13 = vld.sshfl [vmem:[#allocation1] sm:$0xff pattern:$0x75316420]  ;;  %v637_v14 = vld.sshfl [vmem:[#allocation1 + $0x8] sm:$0xff pattern:$0x75316420] }
  0x47   : > { %638 = vrot.lane.b32.xlu1 %v636_v13, %s1041_s20  ;;  %714 = vst [vmem:[#allocation1] ss:$2 sm:$0xff] %v144_v0  ;;  %640 = vrot.lane.b32.xlu2 %v637_v14, %s1041_s20 }
  0x4e   : > { %v716_v15 = vld.sshfl [vmem:[#allocation1 + $0x8] sm:$0xff pattern:$0x75316420]  ;;  %v715_v16 = vld.sshfl [vmem:[#allocation1] sm:$0xff pattern:$0x75316420] }
  0x4f   : > { %719 = vrot.lane.b32.xlu1 %v716_v15, %s1042_s21  ;;  %717 = vrot.lane.b32.xlu0 %v715_v16, %s1042_s21  ;;  %789 = vst [vmem:[#allocation1] ss:$2 sm:$0xff] %v144_v0  ;;  %v983_v15 = vld [vmem:[%s1242_s1 + $0x68] sm:$0xff] }
  0x56   : > { %v791_v17 = vld.sshfl [vmem:[#allocation1 + $0x8] sm:$0xff pattern:$0x75316420]  ;;  %v790_v18 = vld.sshfl [vmem:[#allocation1] sm:$0xff pattern:$0x75316420] }
  0x57   : > { %794 = vrot.lane.b32.xlu0 %v791_v17, %s1043_s22  ;;  %792 = vrot.lane.b32.xlu2 %v790_v18, %s1043_s22  ;;  %v990_v18 = vld [vmem:[%s1242_s1 + $0x70] sm:$0xff] }
  0x81   : > { %v332_v20 = vpop.permute.xlu2 %331 }
  0x82   : > { %v339_v26 = vsel %vm335_vm1, 0.0, %v332_v20 }
  0x83   : > { %v344_v35 = vsel %vm1081_vm4, %v339_v26, 0.0 }
  0x89   : > { %v181_v22 = vpop.permute.xlu1 %180 }
  0x8a   : > { %v188_v25 = vsel %vm184_vm0, 0.0, %v181_v22  ;;  %v334_v31 = vpop.permute.xlu2 %333 }
  0x8b   : > { %v193_v34 = vsel %vm1077_vm3, %v188_v25, 0.0  ;;  %v336_v39 = vsel %vm335_vm1, %v332_v20, %v334_v31  ;;  %v999_v25 = vld [vmem:[%s1242_s1 + $0x88] sm:$0xff] }
  0x8c   : > { %v345_v47 = vsel %vm1109_vm8, %v336_v39, 0.0 }
  0x91   : > { %v201_v29 = vpop.permute.xlu0 %200  ;;  %v183_v37 = vpop.permute.xlu1 %182 }
  0x92   : > { %v207_v33 = vsel %vm204_vm2, 0.0, %v201_v29  ;;  %v185_v38 = vsel %vm184_vm0, %v181_v22, %v183_v37 }
  0x93   : > { %938 = vmatpush.msk.msra.mxu0 %vm218_vm5, %v207_v33  ;;  %1010 = vmatpush.msk.msra.mxu2 %vm218_vm5, %v207_v33  ;;  %v194_v46 = vsel %vm1105_vm7, %v185_v38, 0.0 }
  0x94   : > { %940 = vmatmul.msk.f32.vlgmr.msra.gmra.mxu2 %vm211_vm6, %v937_v30  ;;  %939 = vmatmul.msk.f32.vlgmr.msra.gmra.mxu0 %vm211_vm6, %v936_v32 }
  0x95   : > { %944 = vmatpush.msk.msrb.mxu2 %vm218_vm5, %v193_v34  ;;  %952 = vmatpush.msk.msrb.mxu0 %vm218_vm5, %v344_v35 }
  0x97   : > { %968 = vmatpush.msk.msra.mxu0 %vm218_vm5, %v494_v9  ;;  %v982_v9 = vld [vmem:[%s1242_s1 + $0x60] sm:$0xff] }
  0x99   : > { %v203_v42 = vpop.permute.xlu0 %202  ;;  %v560_v44 = vpop.permute.xlu2 %559 }
  0x9a   : > { %v205_v45 = vsel %vm204_vm2, %v201_v29, %v203_v42 }
  0x9b   : > { %941 = vmatpush.msk.msra.mxu1 %vm218_vm5, %v205_v45  ;;  %1011 = vmatpush.msk.msra.mxu3 %vm218_vm5, %v205_v45 }
  0x9c   : > { %943 = vmatmul.msk.f32.vlgmr.msra.gmra.mxu3 %vm211_vm6, %v937_v30  ;;  %945 = vmatmul.msk.f32.vlgmr.msrb.gmra.mxu2 %vm211_vm6, %v195_v43 }
  0x9d   : > { %947 = vmatpush.msk.msrb.mxu3 %vm218_vm5, %v194_v46  ;;  %955 = vmatpush.msk.msrb.mxu1 %vm218_vm5, %v345_v47 }
  0x9e   : > { %942 = vmatmul.msk.f32.vlgmr.msra.gmra.mxu1 %vm211_vm6, %v936_v32  ;;  %953 = vmatmul.msk.f32.vlgmr.msrb.gmra.mxu0 %vm211_vm6, %v950_v48 }
  0x9f   : > { %971 = vmatpush.msk.msra.mxu1 %vm218_vm5, %v1073_v10 }
  0xa1   : > { %v417_v49 = vpop.permute.xlu1 %416  ;;  %v415_v50 = vpop.permute.xlu0 %414 }
  0xa2   : > { %v419_v52 = vsel %vm418_vm9, %v415_v50, %v417_v49  ;;  %v422_v53 = vsel %vm418_vm9, 0.0, %v415_v50  ;;  %v641_v54 = vpop.permute.xlu2 %640 }
  0xa3   : > { %v423_v55 = vsel %vm1077_vm3, %v422_v53, 0.0  ;;  %v424_v56 = vsel %vm1105_vm7, %v419_v52, 0.0  ;;  %v646_v58 = vsel %vm642_vm10, %v641_v54, 0.0 }
  0xa4   : > { %946 = vmatmul.msk.f32.gmra.mxu2 %vm211_vm6, %v196_v51  ;;  %948 = vmatmul.msk.f32.vlgmr.msrb.gmra.mxu3 %vm211_vm6, %v195_v43  ;;  %v648_v59 = vsel %vm1105_vm7, %v646_v58, 0.0 }
  0xa5   : > { %960 = vmatpush.msk.msra.mxu2 %vm218_vm5, %v423_v55  ;;  %963 = vmatpush.msk.msra.mxu3 %vm218_vm5, %v424_v56 }
  0xa6   : > { %954 = vmatmul.msk.f32.gmra.mxu0 %vm211_vm6, %v951_v57  ;;  %956 = vmatmul.msk.f32.vlgmr.msrb.gmra.mxu1 %vm211_vm6, %v950_v48 }
  0xa7   : > { %987 = vmatpush.msk.msrb.mxu1 %vm218_vm5, %v648_v59 }
  0xac   : > { %949 = vmatmul.msk.f32.gmra.mxu3 %vm211_vm6, %v196_v51  ;;  %961 = vmatmul.msk.f32.vlgmr.msra.gmra.mxu2 %vm211_vm6, %v958_v60 }
  0xae   : > { %957 = vmatmul.msk.f32.gmra.mxu1 %vm211_vm6, %v951_v57  ;;  %969 = vmatmul.msk.f32.vlgmr.msra.gmra.mxu0 %vm211_vm6, %v966_v61 }
  0xb1   : > { %v562_v62 = vpop.permute.xlu0 %561  ;;  %v793_v16 = vpop.permute.xlu2 %792 }
  0xb2   : > { %v567_v0 = vsel %vm563_vm11, %v562_v62, 0.0  ;;  %v564_v1 = vsel %vm563_vm11, %v560_v44, %v562_v62 }
  0xb3   : > { %v569_v2 = vsel %vm1109_vm8, %v567_v0, 0.0  ;;  %v568_v3 = vsel %vm1081_vm4, %v564_v1, 0.0 }
  0xb4   : > { %962 = vmatmul.msk.f32.gmra.mxu2 %vm211_vm6, %v959_v63  ;;  %964 = vmatmul.msk.f32.vlgmr.msra.gmra.mxu3 %vm211_vm6, %v958_v60 }
  0xb5   : > { %976 = vmatpush.msk.msrb.mxu2 %vm218_vm5, %v568_v3  ;;  %979 = vmatpush.msk.msrb.mxu3 %vm218_vm5, %v569_v2 }
  0xb6   : > { %970 = vmatmul.msk.f32.gmra.mxu0 %vm211_vm6, %v967_v4  ;;  %972 = vmatmul.msk.f32.vlgmr.msra.gmra.mxu1 %vm211_vm6, %v966_v61 }
  0xb9   : > { %v639_v5 = vpop.permute.xlu1 %638 }
  0xba   : > { %v643_v7 = vsel %vm642_vm10, %v639_v5, %v641_v54 }
  0xbb   : > { %v647_v8 = vsel %vm1077_vm3, %v643_v7, 0.0 }
  0xbc   : > { %965 = vmatmul.msk.f32.gmra.mxu3 %vm211_vm6, %v959_v63  ;;  %977 = vmatmul.msk.f32.vlgmr.msrb.gmra.mxu2 %vm211_vm6, %v974_v6 }
  0xbd   : > { %984 = vmatpush.msk.msrb.mxu0 %vm218_vm5, %v647_v8 }
  0xbe   : > { %973 = vmatmul.msk.f32.gmra.mxu1 %vm211_vm6, %v967_v4  ;;  %985 = vmatmul.msk.f32.vlgmr.msrb.gmra.mxu0 %vm211_vm6, %v982_v9 }
  0xc1   : > { %v720_v10 = vpop.permute.xlu1 %719  ;;  %v718_v11 = vpop.permute.xlu0 %717 }
  0xc2   : > { %v724_v13 = vsel %vm721_vm12, %v720_v10, 0.0  ;;  %v722_v14 = vsel %vm721_vm12, %v718_v11, %v720_v10 }
  0xc3   : > { %992 = vmatpush.msk.msra.mxu2 %vm218_vm5, %v722_v14  ;;  %995 = vmatpush.msk.msra.mxu3 %vm218_vm5, %v724_v13 }
  0xc4   : > { %978 = vmatmul.msk.f32.gmra.mxu2 %vm211_vm6, %v975_v12  ;;  %980 = vmatmul.msk.f32.vlgmr.msrb.gmra.mxu3 %vm211_vm6, %v974_v6 }
  0xc6   : > { %986 = vmatmul.msk.f32.gmra.mxu0 %vm211_vm6, %v983_v15  ;;  %988 = vmatmul.msk.f32.vlgmr.msrb.gmra.mxu1 %vm211_vm6, %v982_v9 }
  0xc9   : > { %v795_v17 = vpop.permute.xlu0 %794 }
  0xca   : > { %v800_v19 = vsel %vm796_vm13, %v795_v17, 0.0  ;;  %v797_v20 = vsel %vm796_vm13, %v793_v16, %v795_v17 }
  0xcb   : > { %v802_v21 = vsel %vm1109_vm8, %v800_v19, 0.0  ;;  %v801_v22 = vsel %vm1081_vm4, %v797_v20, 0.0 }
  0xcc   : > { %981 = vmatmul.msk.f32.gmra.mxu3 %vm211_vm6, %v975_v12  ;;  %993 = vmatmul.msk.f32.vlgmr.msra.gmra.mxu2 %vm211_vm6, %v990_v18 }
  0xcd   : > { %1000 = vmatpush.msk.msra.mxu0 %vm218_vm5, %v801_v22  ;;  %1003 = vmatpush.msk.msra.mxu1 %vm218_vm5, %v802_v21 }
  0xce   : > { %989 = vmatmul.msk.f32.gmra.mxu1 %vm211_vm6, %v983_v15  ;;  %1001 = vmatmul.msk.f32.vlgmr.msra.gmra.mxu0 %vm211_vm6, %v998_v23 }
  0xd4   : > { %994 = vmatmul.msk.f32.gmra.mxu2 %vm211_vm6, %v991_v24  ;;  %996 = vmatmul.msk.f32.vlgmr.msra.gmra.mxu3 %vm211_vm6, %v990_v18 }
  0xd6   : > { %1002 = vmatmul.msk.f32.gmra.mxu0 %vm211_vm6, %v999_v25  ;;  %1004 = vmatmul.msk.f32.vlgmr.msra.gmra.mxu1 %vm211_vm6, %v998_v23 }
  0xdc   : > { %997 = vmatmul.msk.f32.gmra.mxu3 %vm211_vm6, %v991_v24 }
  0xde   : > { %1005 = vmatmul.msk.f32.gmra.mxu1 %vm211_vm6, %v999_v25 }
 0x111   : > { %v241_v26 = vpop.f32.mrf.mxu0 }
 0x117   : > { %v244_v27 = vpop.f32.mrf.mxu2 }
 0x11b   : > { %v264_v28 = vpop.f32.mrf.mxu1  ;;  %v378_v29 = vpop.f32.mrf.mxu0 }
 0x11f   : > { %v267_v30 = vpop.f32.mrf.mxu3  ;;  %v299_v31 = vpop.f32.mrf.mxu2 }
 0x120   : > { %v300_v46 = vadd.f32 %v299_v31, %v241_v26 }
 0x122   : > { %v407_v49 = vadd.f32 %v378_v29, %v300_v46 }
 0x123   : > { %v381_v32 = vpop.f32.mrf.mxu0  ;;  %v401_v33 = vpop.f32.mrf.mxu1 }
 0x127   : > { %v302_v34 = vpop.f32.mrf.mxu2  ;;  %v322_v35 = vpop.f32.mrf.mxu3 }
 0x128   : > { %v303_v53 = vadd.f32 %v302_v34, %v244_v27  ;;  %v323_v54 = vadd.f32 %v322_v35, %v264_v28 }
 0x12a   : > { %v409_v58 = vadd.f32 %v381_v32, %v303_v53  ;;  %v408_v59 = vadd.f32 %v401_v33, %v323_v54 }
 0x12b   : > { %v404_v36 = vpop.f32.mrf.mxu1  ;;  %v523_v37 = vpop.f32.mrf.mxu0 }
 0x12f   : > { %v325_v38 = vpop.f32.mrf.mxu3  ;;  %v457_v39 = vpop.f32.mrf.mxu2 }
 0x130   : > { %v486_v52 = vadd.f32 %v457_v39, %v407_v49  ;;  %v326_v1 = vadd.f32 %v325_v38, %v267_v30 }
 0x132   : > { %v552_v57 = vadd.f32 %v523_v37, %v486_v52  ;;  %v410_v8 = vadd.f32 %v404_v36, %v326_v1 }
 0x133   : > { %v526_v40 = vpop.f32.mrf.mxu0  ;;  %v546_v41 = vpop.f32.mrf.mxu1 }
 0x137   : > { %v460_v42 = vpop.f32.mrf.mxu2  ;;  %v480_v43 = vpop.f32.mrf.mxu3 }
 0x138   : > { %v488_v62 = vadd.f32 %v460_v42, %v409_v58  ;;  %v487_v63 = vadd.f32 %v480_v43, %v408_v59 }
 0x13a   : > { %v554_v5 = vadd.f32 %v526_v40, %v488_v62  ;;  %v553_v6 = vadd.f32 %v546_v41, %v487_v63 }
 0x13b   : > { %v549_v44 = vpop.f32.mrf.mxu1  ;;  %v681_v45 = vpop.f32.mrf.mxu0 }
 0x13f   : > { %v483_v47 = vpop.f32.mrf.mxu3  ;;  %v602_v48 = vpop.f32.mrf.mxu2 }
 0x140   : > { %v631_v60 = vadd.f32 %v602_v48, %v552_v57  ;;  %v489_v12 = vadd.f32 %v483_v47, %v410_v8 }
 0x142   : > { %v710_v2 = vadd.f32 %v681_v45, %v631_v60  ;;  %v555_v19 = vadd.f32 %v549_v44, %v489_v12 }
 0x143   : > { %v684_v50 = vpop.f32.mrf.mxu0  ;;  %v704_v51 = vpop.f32.mrf.mxu1 }
 0x147   : > { %v605_v55 = vpop.f32.mrf.mxu2  ;;  %v625_v56 = vpop.f32.mrf.mxu3 }
 0x148   : > { %v633_v9 = vadd.f32 %v605_v55, %v554_v5  ;;  %v632_v10 = vadd.f32 %v625_v56, %v553_v6 }
 0x14a   : > { %v712_v14 = vadd.f32 %v684_v50, %v633_v9  ;;  %v711_v15 = vadd.f32 %v704_v51, %v632_v10 }
 0x14b   : > { %v707_v61 = vpop.f32.mrf.mxu1  ;;  %v835_v0 = vpop.f32.mrf.mxu0 }
 0x14f   : > { %v628_v3 = vpop.f32.mrf.mxu3  ;;  %v756_v4 = vpop.f32.mrf.mxu2 }
 0x150   : > { %v785_v7 = vadd.f32 %v756_v4, %v710_v2  ;;  %v634_v22 = vadd.f32 %v628_v3, %v555_v19 }
 0x152   : > { %v864_v11 = vadd.f32 %v835_v0, %v785_v7  ;;  %v713_v25 = vadd.f32 %v707_v61, %v634_v22 }
 0x153   : > { %v858_v13 = vpop.f32.mrf.mxu1  ;;  %v838_v16 = vpop.f32.mrf.mxu0 }
 0x154   : > { %868 = vst [vmem:[%s143_s8] sm:$0xff] %v864_v11 }
 0x157   : > { %v759_v17 = vpop.f32.mrf.mxu2  ;;  %v779_v18 = vpop.f32.mrf.mxu3 }
 0x158   : > { %v787_v20 = vadd.f32 %v759_v17, %v712_v14  ;;  %v786_v21 = vadd.f32 %v779_v18, %v711_v15 }
 0x15a   : > { %v866_v23 = vadd.f32 %v838_v16, %v787_v20  ;;  %v865_v24 = vadd.f32 %v858_v13, %v786_v21 }
 0x15b   : > { %v861_v27 = vpop.f32.mrf.mxu1 }
 0x15c   : > { %870 = vst [vmem:[%s143_s8 + $0x10] sm:$0xff] %v866_v23 }
 0x15d   : > { %869 = vst [vmem:[%s143_s8 + $0x8] sm:$0xff] %v865_v24 }
 0x15f   : > { %v782_v26 = vpop.f32.mrf.mxu3 }
 0x160   : > { %v788_v28 = vadd.f32 %v782_v26, %v713_v25 }
 0x162   : > { %v867_v29 = vadd.f32 %v861_v27, %v788_v28 }
 0x164   : > { %871 = vst [vmem:[%s143_s8 + $0x18] sm:$0xff] %v867_v29 }
 0x165 PF: > { %s12_s9 = sadd.s32 1, %s1034_s9  }
 0x166   : > { %p9_p4 = scmp.ge.s32.totalorder %s12_s9, 4  }
 0x168   :  { %11 = sbr.rel (!%p9_p4) target bundleno = 1 (0x1), region = 66 }

// kernel: pix2pix_rdn_forward.6
= control target key start
LH: loop header
LB: loop body
LE: loop exit
PB: predicated region body
PF: predicated region fallthrough
CT: control target
= control target key end

     0   :  { %s1356_s9 = smov 0   ;;  %s1732_s0 = inlined_call_operand.vmem [shape: f32[2,16,256], index: 0, kind: input, shape index: {}]   ;;  %s1733_s1 = inlined_call_operand.vmem [shape: f32[9,32,16], index: 1, kind: input, shape index: {}]   ;;  %s1734_s2 = inlined_call_operand.vmem [shape: f32[2,32,256], index: 2, kind: output, shape index: {}]  }
   0x1 LB: > { %s1148_s10 = sadd.s32 4294967295, %s1331_s9   ;;  %p1152_p0 = scmp.ge.s32.totalorder %s1331_s9, 1  ;;  %s1331_s9 = sphi %s1356_s9, %s12_s9  }
   0x2   : > { %p112_p1 = scmp.lt.s32.totalorder %s1331_s9, 3 }
   0x4   : > { %p113_p2 = pnand %p1152_p0, %p112_p1 }
   0x5   : > { %p134_p3 = scmp.lt.s32.totalorder (!%p113_p2), %s1148_s10, 1  ;;  %s1333_s15 = smov (!%p113_p2), 16  }
   0x6   : > { %116 = sbr.rel (%p113_p2) target bundleno = 420 (0x1a4), region = 28  ;;  %s1334_s16 = smov (!%p113_p2), 17  }
   0x7   : > { %s1335_s17 = smov (!%p113_p2), 15   ;;  %s1336_s18 = smov (!%p113_p2), 1  }
   0x8   : > { %s1337_s19 = smov (!%p113_p2), 127   ;;  %s1338_s20 = smov (!%p113_p2), 113  }
   0x9   : > { %s1339_s21 = smov (!%p113_p2), 112   ;;  %s1340_s22 = smov (!%p113_p2), 111  }
   0xb   : > { %s1744_s10 = smov (!%p134_p3, %s1148_s10), 1  ;;  %vm224_vm0 = vcmask 130048   ;;  %v152_v12 = vlaneseq  ;;  %v1159_v16 = vld [vmem:[%s1733_s1 + $0x30] sm:$0xff]  ;;  %v1157_v17 = vld [vmem:[%s1733_s1 + $0x20] sm:$0xff]  ;;  %vm195_vm2 = vcmask 138240   ;;  %v1160_v26 = vld [vmem:[%s1733_s1 + $0x38] sm:$0xff] }
   0xc   : > { %s1293_s11 = sshll.u32 %s1744_s10, 5  ;;  %vm1161_vm1 = vmneg %vm224_vm0  ;;  %vm494_vm4 = vcmask 7168   ;;  %v1158_v32 = vld [vmem:[%s1733_s1 + $0x28] sm:$0xff]  ;;  %vm386_vm6 = vcmask 121856   ;;  %v212_v42 = vld [vmem:[%s1733_s1] sm:$0xff]  ;;  %vm681_vm9 = vcmask 1039360  }
   0xd   : > { %s138_s14 = scalar_lea.vmem %s1732_s0, %s1293_s11  ;;  %v153_v13 = vand.u32 127, %v152_v12  ;;  %v1185_v47 = vld [vmem:[%s1733_s1 + $0x40] sm:$0xff]  ;;  %v213_v50 = vld [vmem:[%s1733_s1 + $0x8] sm:$0xff]  ;;  %v214_v56 = vld [vmem:[%s1733_s1 + $0x10] sm:$0xff]  ;;  %vm785_vm10 = vcmask 924672   ;;  %vm889_vm11 = vcmask 916480  }
   0xe   : > { %v146_v0 = vld [vmem:[%s138_s14 + $0x10] sm:$0xff]  ;;  %v144_v1 = vld [vmem:[%s138_s14] sm:$0xff]  ;;  %v145_v2 = vld [vmem:[%s138_s14 + $0x8] sm:$0xff]  ;;  %vm989_vm12 = vcmask 908288  }
   0xf   : > { %v1370_v3 = vmax.f32 %v146_v0, 0.0  ;;  %v1372_v4 = vmax.f32 %v144_v1, 0.0  ;;  %v147_v5 = vld [vmem:[%s138_s14 + $0x18] sm:$0xff]  ;;  %v1378_v7 = vmax.f32 %v145_v2, 0.0  ;;  %v159_v19 = vand.u32 15, %v153_v13  ;;  %v1186_v53 = vld [vmem:[%s1733_s1 + $0x48] sm:$0xff] }
  0x10   : > { %v1374_v6 = vmax.f32 %v147_v5, 0.0  ;;  %v154_v20 = vadd.s32 128, %v153_v13  ;;  %v1187_v60 = vld [vmem:[%s1733_s1 + $0x50] sm:$0xff]  ;;  %v215_v63 = vld [vmem:[%s1733_s1 + $0x18] sm:$0xff] }
  0x11   : > { %220 = vrot.lane.b32.xlu0 %v1370_v3, %s1333_s15  ;;  %216 = vrot.lane.b32.xlu1 %v1372_v4, %s1333_s15  ;;  %v1320_v9 = vpack.i.bf16 %v1372_v4, %v1370_v3  ;;  %vm1419_vm3 = vcmp.ge.s32.totalorder %v159_v19, 1  ;;  %vm1446_vm7 = vcmp.le.s32.totalorder %v159_v19, 14  ;;  %v1231_v37 = vld [vmem:[%s1733_s1 + $0xb0] sm:$0xff] }
  0x12   : > { %193 = vrot.lane.b32.xlu2 %v1374_v6, %s1334_s16  ;;  %v1315_v8 = vpack.i.bf16 %v1378_v7, %v1374_v6  ;;  %v166_v28 = vand.u32 15, %v154_v20  ;;  %v1218_v20 = vld [vmem:[%s1733_s1 + $0x88] sm:$0xff]  ;;  %v1247_v38 = vld [vmem:[%s1733_s1 + $0xd0] sm:$0xff] }
  0x14   : > { %vm1439_vm5 = vcmp.ge.s32.totalorder %v166_v28, 1  ;;  %vm1450_vm8 = vcmp.le.s32.totalorder %v166_v28, 14 }
  0x19   : > { %1316 = vrot.lane.b32.xlu0 %v1315_v8, %s1333_s15  ;;  %191 = vrot.lane.b32.xlu1 %v1370_v3, %s1334_s16 }
  0x1a   : > { %187 = vrot.lane.b32.xlu2 %v1372_v4, %s1334_s16 }
  0x21   : > { %189 = vrot.lane.b32.xlu0 %v1378_v7, %s1334_s16  ;;  %382 = vrot.lane.b32.xlu1 %v1370_v3, %s1335_s17 }
  0x22   : > { %384 = vrot.lane.b32.xlu2 %v1374_v6, %s1335_s17 }
  0x29   : > { %378 = vrot.lane.b32.xlu0 %v1372_v4, %s1335_s17  ;;  %380 = vrot.lane.b32.xlu1 %v1378_v7, %s1335_s17  ;;  %s1294_s17 = sshll.u32 %s1744_s10, 6 }
  0x2a   : > { %490 = vrot.lane.b32.xlu2 %v1370_v3, %s1336_s18 }
  0x31   : > { %492 = vrot.lane.b32.xlu0 %v1374_v6, %s1336_s18  ;;  %486 = vrot.lane.b32.xlu1 %v1372_v4, %s1336_s18 }
  0x32   : > { %488 = vrot.lane.b32.xlu2 %v1378_v7, %s1336_s18 }
  0x39   : > { %677 = vrot.lane.b32.xlu0 %v1370_v3, %s1337_s19  ;;  %679 = vrot.lane.b32.xlu1 %v1374_v6, %s1337_s19 }
  0x3a   : > { %673 = vrot.lane.b32.xlu2 %v1372_v4, %s1337_s19 }
  0x41   : > { %675 = vrot.lane.b32.xlu0 %v1378_v7, %s1337_s19  ;;  %781 = vrot.lane.b32.xlu1 %v1370_v3, %s1338_s20 }
  0x42   : > { %783 = vrot.lane.b32.xlu2 %v1374_v6, %s1338_s20 }
  0x49   : > { %777 = vrot.lane.b32.xlu0 %v1372_v4, %s1338_s20  ;;  %779 = vrot.lane.b32.xlu1 %v1378_v7, %s1338_s20  ;;  %s1709_s20 = scalar_lea.vmem %s1734_s2, %s1294_s17 }
  0x4a   : > { %1321 = vrot.lane.b32.xlu2 %v1320_v9, %s1339_s21 }
  0x51   : > { %887 = vrot.lane.b32.xlu0 %v1374_v6, %s1339_s21  ;;  %883 = vrot.lane.b32.xlu1 %v1378_v7, %s1339_s21 }
  0x52   : > { %985 = vrot.lane.b32.xlu2 %v1370_v3, %s1340_s22 }
  0x59   : > { %987 = vrot.lane.b32.xlu0 %v1374_v6, %s1340_s22  ;;  %981 = vrot.lane.b32.xlu1 %v1372_v4, %s1340_s22 }
  0x5a   : > { %983 = vrot.lane.b32.xlu2 %v1378_v7, %s1340_s22 }
  0x6c   : > { %v194_v10 = vpop.permute.xlu2 %193 }
  0x74   : > { %v188_v11 = vpop.permute.xlu2 %187 }
  0x75   : > { %v202_v29 = vsel %vm195_vm2, 0.0, %v188_v11 }
  0x7c   : > { %v385_v18 = vpop.permute.xlu2 %384 }
  0x83   : > { %v221_v14 = vpop.permute.xlu0 %220  ;;  %v217_v15 = vpop.permute.xlu1 %216 }
  0x84   : > { %1162 = vmatpush.msk.msra.mxu0 %vm1161_vm1, %v221_v14  ;;  %1295 = vmatpush.msk.msra.mxu2 %vm1161_vm1, %v221_v14  ;;  %v491_v30 = vpop.permute.xlu2 %490 }
  0x85   : > { %v502_v34 = vsel %vm494_vm4, 0.0, %v491_v30 }
  0x86   : > { %1296 = vmatpush.msk.msra.mxu2 %vm1161_vm1, %v217_v15  ;;  %1164 = vmatpush.msk.msra.mxu0 %vm1161_vm1, %v217_v15 }
  0x87   : > { %1167 = vmatmul.msk.f32.vlgmr.msra.gmra.mxu2 %vm224_vm0, %v1159_v16  ;;  %1165 = vmatmul.msk.f32.vlgmr.msra.gmra.mxu0 %vm224_vm0, %v1157_v17 }
  0x8b   : > { %v1317_v22 = vpop.permute.xlu0 %1316  ;;  %v192_v23 = vpop.permute.xlu1 %191 }
  0x8c   : > { %v1319_v24 = vunpack.i.h.bf16 %v1317_v22  ;;  %v1318_v25 = vunpack.i.l.bf16 %v1317_v22  ;;  %v203_v27 = vsel %vm195_vm2, 0.0, %v192_v23  ;;  %v197_v36 = vsel %vm195_vm2, %v192_v23, %v194_v10  ;;  %v489_v51 = vpop.permute.xlu2 %488  ;;  %v1203_v23 = vld [vmem:[%s1733_s1 + $0x70] sm:$0xff] }
  0x8d   : > { %1173 = vmatpush.msk.msrb.mxu2 %vm1419_vm3, %v203_v27 }
  0x8e   : > { %v226_v31 = vsel %vm224_vm0, %v221_v14, %v1318_v25  ;;  %v225_v33 = vsel %vm224_vm0, %v217_v15, %v1319_v24  ;;  %v1202_v14 = vld [vmem:[%s1733_s1 + $0x68] sm:$0xff] }
  0x8f   : > { %1168 = vmatmul.msk.f32.gmra.mxu2 %vm224_vm0, %v1160_v26  ;;  %293 = vmatpush.msra.mxu1 %v226_v31 }
  0x90   : > { %1297 = vmatpush.msra.mxu3 %v226_v31  ;;  %1174 = vmatpush.msk.msrb.mxu2 %vm1419_vm3, %v202_v29  ;;  %v1204_v29 = vld [vmem:[%s1733_s1 + $0x78] sm:$0xff] }
  0x91   : > { %294 = vmatpush.msra.mxu1 %v225_v33  ;;  %1166 = vmatmul.msk.f32.gmra.mxu0 %vm224_vm0, %v1158_v32 }
  0x92   : > { %1298 = vmatpush.msra.mxu3 %v225_v33  ;;  %1169 = vmatmul.msk.f32.vlgmr.msra.gmra.mxu1 %vm224_vm0, %v1157_v17  ;;  %v1229_v33 = vld [vmem:[%s1733_s1 + $0xa0] sm:$0xff] }
  0x93   : > { %1171 = vmatmul.msk.f32.vlgmr.msra.gmra.mxu3 %vm224_vm0, %v1159_v16  ;;  %v190_v39 = vpop.permute.xlu0 %189  ;;  %v383_v40 = vpop.permute.xlu1 %382  ;;  %1205 = vmatpush.msk.msra.mxu2 %vm1419_vm3, %v502_v34  ;;  %v1245_v34 = vld [vmem:[%s1733_s1 + $0xc0] sm:$0xff] }
  0x94   : > { %1179 = vmatpush.msk.msrb.mxu3 %vm1439_vm5, %v197_v36  ;;  %v196_v41 = vsel %vm195_vm2, %v188_v11, %v190_v39  ;;  %v394_v43 = vsel %vm386_vm6, 0.0, %v383_v40  ;;  %v388_v44 = vsel %vm386_vm6, %v383_v40, %v385_v18  ;;  %v674_v59 = vpop.permute.xlu2 %673  ;;  %v1217_v11 = vld [vmem:[%s1733_s1 + $0x80] sm:$0xff]  ;;  %v1230_v39 = vld [vmem:[%s1733_s1 + $0xa8] sm:$0xff] }
  0x95   : > { %1189 = vmatpush.msk.msrb.mxu0 %vm1446_vm7, %v394_v43  ;;  %1195 = vmatpush.msk.msrb.mxu1 %vm1450_vm8, %v388_v44  ;;  %v1232_v43 = vld [vmem:[%s1733_s1 + $0xb8] sm:$0xff] }
  0x96   : > { %1180 = vmatpush.msk.msrb.mxu3 %vm1439_vm5, %v196_v41  ;;  %v1248_v44 = vld [vmem:[%s1733_s1 + $0xd8] sm:$0xff] }
  0x97   : > { %1175 = vmatmul.msk.f32.vlgmr.msrb.gmra.mxu2 %vm224_vm0, %v212_v42 }
  0x9a   : > { %1170 = vmatmul.msk.f32.gmra.mxu1 %vm224_vm0, %v1158_v32  ;;  %v1220_v32 = vld [vmem:[%s1733_s1 + $0x98] sm:$0xff] }
  0x9b   : > { %1172 = vmatmul.msk.f32.gmra.mxu3 %vm224_vm0, %v1160_v26  ;;  %v379_v45 = vpop.permute.xlu0 %378  ;;  %v381_v46 = vpop.permute.xlu1 %380  ;;  %v1219_v26 = vld [vmem:[%s1733_s1 + $0x90] sm:$0xff] }
  0x9c   : > { %v393_v48 = vsel %vm386_vm6, 0.0, %v379_v45  ;;  %v387_v49 = vsel %vm386_vm6, %v379_v45, %v381_v46  ;;  %v784_v2 = vpop.permute.xlu2 %783  ;;  %v1261_v45 = vld [vmem:[%s1733_s1 + $0xe0] sm:$0xff] }
  0x9d   : > { %1190 = vmatpush.msk.msrb.mxu0 %vm1446_vm7, %v393_v48  ;;  %1196 = vmatpush.msk.msrb.mxu1 %vm1450_vm8, %v387_v49  ;;  %v1275_v46 = vld [vmem:[%s1733_s1 + $0x100] sm:$0xff]  ;;  %v1276_v48 = vld [vmem:[%s1733_s1 + $0x108] sm:$0xff]  ;;  %v1263_v49 = vld [vmem:[%s1733_s1 + $0xf0] sm:$0xff] }
  0x9e   : > { %1191 = vmatmul.msk.f32.vlgmr.msrb.gmra.mxu0 %vm224_vm0, %v1185_v47 }
  0x9f   : > { %650 = vmatpush.msra.mxu1 %v1374_v6  ;;  %1176 = vmatmul.msk.f32.gmra.mxu2 %vm224_vm0, %v213_v50 }
  0xa0   : > { %621 = vmatpush.msra.mxu0 %v1370_v3  ;;  %v793_v3 = vsel %vm785_vm10, %v784_v2, 0.0 }
  0xa1   : > { %651 = vmatpush.msra.mxu1 %v1378_v7  ;;  %v1201_v7 = vld [vmem:[%s1733_s1 + $0x60] sm:$0xff] }
  0xa2   : > { %622 = vmatpush.msra.mxu0 %v1372_v4  ;;  %1197 = vmatmul.msk.f32.vlgmr.msrb.gmra.mxu1 %vm224_vm0, %v1185_v47  ;;  %v1188_v4 = vld [vmem:[%s1733_s1 + $0x58] sm:$0xff]  ;;  %v1262_v47 = vld [vmem:[%s1733_s1 + $0xe8] sm:$0xff] }
  0xa3   : > { %1181 = vmatmul.msk.f32.vlgmr.msrb.gmra.mxu3 %vm224_vm0, %v212_v42  ;;  %v493_v52 = vpop.permute.xlu0 %492  ;;  %v487_v54 = vpop.permute.xlu1 %486  ;;  %1255 = vmatpush.msk.msrb.mxu1 %vm1439_vm5, %v793_v3  ;;  %v1246_v42 = vld [vmem:[%s1733_s1 + $0xc8] sm:$0xff] }
  0xa4   : > { %v496_v55 = vsel %vm494_vm4, %v491_v30, %v493_v52  ;;  %v495_v57 = vsel %vm494_vm4, %v487_v54, %v489_v51  ;;  %v501_v58 = vsel %vm494_vm4, 0.0, %v487_v54  ;;  %v1322_v17 = vpop.permute.xlu2 %1321  ;;  %v1277_v52 = vld [vmem:[%s1733_s1 + $0x110] sm:$0xff] }
  0xa5   : > { %1211 = vmatpush.msk.msra.mxu3 %vm1439_vm5, %v496_v55  ;;  %1206 = vmatpush.msk.msra.mxu2 %vm1419_vm3, %v501_v58  ;;  %v1324_v18 = vunpack.i.h.bf16 %v1322_v17  ;;  %v1323_v19 = vunpack.i.l.bf16 %v1322_v17 }
  0xa6   : > { %1192 = vmatmul.msk.f32.gmra.mxu0 %vm224_vm0, %v1186_v53 }
  0xa7   : > { %1177 = vmatmul.msk.f32.gmra.mxu2 %vm224_vm0, %v214_v56  ;;  %1212 = vmatpush.msk.msra.mxu3 %vm1439_vm5, %v495_v57  ;;  %v1278_v57 = vld [vmem:[%s1733_s1 + $0x118] sm:$0xff] }
  0xaa   : > { %1198 = vmatmul.msk.f32.gmra.mxu1 %vm224_vm0, %v1186_v53  ;;  %v1264_v53 = vld [vmem:[%s1733_s1 + $0xf8] sm:$0xff] }
  0xab   : > { %1182 = vmatmul.msk.f32.gmra.mxu3 %vm224_vm0, %v213_v50  ;;  %v678_v61 = vpop.permute.xlu0 %677  ;;  %v680_v62 = vpop.permute.xlu1 %679 }
  0xac   : > { %v683_v0 = vsel %vm681_vm9, %v678_v61, %v680_v62  ;;  %v689_v1 = vsel %vm681_vm9, %v680_v62, 0.0  ;;  %v986_v28 = vpop.permute.xlu2 %985 }
  0xad   : > { %1233 = vmatpush.msk.msrb.mxu2 %vm1446_vm7, %v683_v0  ;;  %1239 = vmatpush.msk.msrb.mxu3 %vm1450_vm8, %v689_v1 }
  0xae   : > { %1193 = vmatmul.msk.f32.gmra.mxu0 %vm224_vm0, %v1187_v60 }
  0xaf   : > { %1178 = vmatmul.msk.f32.gmra.mxu2 %vm224_vm0, %v215_v63 }
  0xb2   : > { %1199 = vmatmul.msk.f32.gmra.mxu1 %vm224_vm0, %v1187_v60 }
  0xb3   : > { %1183 = vmatmul.msk.f32.gmra.mxu3 %vm224_vm0, %v214_v56  ;;  %v676_v5 = vpop.permute.xlu0 %675  ;;  %v782_v6 = vpop.permute.xlu1 %781 }
  0xb4   : > { %v688_v8 = vsel %vm681_vm9, %v676_v5, 0.0  ;;  %v682_v9 = vsel %vm681_vm9, %v674_v59, %v676_v5  ;;  %v787_v10 = vsel %vm785_vm10, %v782_v6, %v784_v2  ;;  %v984_v35 = vpop.permute.xlu2 %983 }
  0xb5   : > { %1234 = vmatpush.msk.msrb.mxu2 %vm1446_vm7, %v682_v9  ;;  %1249 = vmatpush.msk.msrb.mxu0 %vm1419_vm3, %v787_v10  ;;  %v996_v40 = vsel %vm989_vm12, %v984_v35, 0.0 }
  0xb6   : > { %1194 = vmatmul.msk.f32.gmra.mxu0 %vm224_vm0, %v1188_v4  ;;  %1240 = vmatpush.msk.msrb.mxu3 %vm1450_vm8, %v688_v8 }
  0xb7   : > { %1207 = vmatmul.msk.f32.vlgmr.msra.gmra.mxu2 %vm224_vm0, %v1201_v7 }
  0xba   : > { %1200 = vmatmul.msk.f32.gmra.mxu1 %vm224_vm0, %v1188_v4 }
  0xbb   : > { %1184 = vmatmul.msk.f32.gmra.mxu3 %vm224_vm0, %v215_v63  ;;  %v778_v12 = vpop.permute.xlu0 %777  ;;  %v780_v13 = vpop.permute.xlu1 %779 }
  0xbc   : > { %v786_v15 = vsel %vm785_vm10, %v778_v12, %v780_v13  ;;  %v792_v16 = vsel %vm785_vm10, %v780_v13, 0.0 }
  0xbd   : > { %1250 = vmatpush.msk.msrb.mxu0 %vm1419_vm3, %v786_v15  ;;  %1256 = vmatpush.msk.msrb.mxu1 %vm1439_vm5, %v792_v16 }
  0xbe   : > { %1221 = vmatmul.msk.f32.vlgmr.msra.gmra.mxu0 %vm224_vm0, %v1217_v11 }
  0xbf   : > { %1208 = vmatmul.msk.f32.gmra.mxu2 %vm224_vm0, %v1202_v14 }
  0xc2   : > { %1225 = vmatmul.msk.f32.vlgmr.msra.gmra.mxu1 %vm224_vm0, %v1217_v11 }
  0xc3   : > { %1213 = vmatmul.msk.f32.vlgmr.msra.gmra.mxu3 %vm224_vm0, %v1201_v7  ;;  %v888_v21 = vpop.permute.xlu0 %887  ;;  %v884_v22 = vpop.permute.xlu1 %883 }
  0xc4   : > { %v891_v24 = vsel %vm889_vm11, %v1323_v19, %v888_v21  ;;  %1269 = vmatpush.msk.msra.mxu3 %vm889_vm11, %v888_v21  ;;  %v890_v25 = vsel %vm889_vm11, %v1324_v18, %v884_v22 }
  0xc5   : > { %929 = vmatpush.msra.mxu2 %v891_v24 }
  0xc6   : > { %1222 = vmatmul.msk.f32.gmra.mxu0 %vm224_vm0, %v1218_v20  ;;  %1270 = vmatpush.msk.msra.mxu3 %vm889_vm11, %v884_v22 }
  0xc7   : > { %1209 = vmatmul.msk.f32.gmra.mxu2 %vm224_vm0, %v1203_v23 }
  0xc8   : > { %930 = vmatpush.msra.mxu2 %v890_v25 }
  0xca   : > { %1226 = vmatmul.msk.f32.gmra.mxu1 %vm224_vm0, %v1218_v20 }
  0xcb   : > { %1214 = vmatmul.msk.f32.gmra.mxu3 %vm224_vm0, %v1202_v14  ;;  %v988_v27 = vpop.permute.xlu0 %987  ;;  %v982_v36 = vpop.permute.xlu1 %981 }
  0xcc   : > { %v997_v30 = vsel %vm989_vm12, %v988_v27, 0.0  ;;  %v991_v31 = vsel %vm989_vm12, %v986_v28, %v988_v27  ;;  %v990_v41 = vsel %vm989_vm12, %v982_v36, %v984_v35 }
  0xcd   : > { %1279 = vmatpush.msk.msra.mxu0 %vm1446_vm7, %v991_v31  ;;  %1285 = vmatpush.msk.msra.mxu1 %vm1450_vm8, %v997_v30 }
  0xce   : > { %1223 = vmatmul.msk.f32.gmra.mxu0 %vm224_vm0, %v1219_v26 }
  0xcf   : > { %1210 = vmatmul.msk.f32.gmra.mxu2 %vm224_vm0, %v1204_v29  ;;  %1280 = vmatpush.msk.msra.mxu0 %vm1446_vm7, %v990_v41 }
  0xd0   : > { %1286 = vmatpush.msk.msra.mxu1 %vm1450_vm8, %v996_v40 }
  0xd2   : > { %1227 = vmatmul.msk.f32.gmra.mxu1 %vm224_vm0, %v1219_v26 }
  0xd3   : > { %1215 = vmatmul.msk.f32.gmra.mxu3 %vm224_vm0, %v1203_v23 }
  0xd6   : > { %1224 = vmatmul.msk.f32.gmra.mxu0 %vm224_vm0, %v1220_v32 }
  0xd7   : > { %1235 = vmatmul.msk.f32.vlgmr.msrb.gmra.mxu2 %vm224_vm0, %v1229_v33 }
  0xda   : > { %1228 = vmatmul.msk.f32.gmra.mxu1 %vm224_vm0, %v1220_v32 }
  0xdb   : > { %1216 = vmatmul.msk.f32.gmra.mxu3 %vm224_vm0, %v1204_v29 }
  0xde   : > { %1251 = vmatmul.msk.f32.vlgmr.msrb.gmra.mxu0 %vm224_vm0, %v1245_v34 }
  0xdf   : > { %1236 = vmatmul.msk.f32.gmra.mxu2 %vm224_vm0, %v1230_v39 }
  0xe2   : > { %1257 = vmatmul.msk.f32.vlgmr.msrb.gmra.mxu1 %vm224_vm0, %v1245_v34 }
  0xe3   : > { %1241 = vmatmul.msk.f32.vlgmr.msrb.gmra.mxu3 %vm224_vm0, %v1229_v33 }
  0xe6   : > { %1252 = vmatmul.msk.f32.gmra.mxu0 %vm224_vm0, %v1246_v42 }
  0xe7   : > { %1237 = vmatmul.msk.f32.gmra.mxu2 %vm224_vm0, %v1231_v37 }
  0xea   : > { %1258 = vmatmul.msk.f32.gmra.mxu1 %vm224_vm0, %v1246_v42 }
  0xeb   : > { %1242 = vmatmul.msk.f32.gmra.mxu3 %vm224_vm0, %v1230_v39 }
  0xee   : > { %1253 = vmatmul.msk.f32.gmra.mxu0 %vm224_vm0, %v1247_v38 }
  0xef   : > { %1238 = vmatmul.msk.f32.gmra.mxu2 %vm224_vm0, %v1232_v43 }
  0xf2   : > { %1259 = vmatmul.msk.f32.gmra.mxu1 %vm224_vm0, %v1247_v38 }
  0xf3   : > { %1243 = vmatmul.msk.f32.gmra.mxu3 %vm224_vm0, %v1231_v37 }
  0xf6   : > { %1254 = vmatmul.msk.f32.gmra.mxu0 %vm224_vm0, %v1248_v44 }
  0xf7   : > { %1265 = vmatmul.msk.f32.vlgmr.msra.gmra.mxu2 %vm224_vm0, %v1261_v45 }
  0xfa   : > { %1260 = vmatmul.msk.f32.gmra.mxu1 %vm224_vm0, %v1248_v44 }
  0xfb   : > { %1244 = vmatmul.msk.f32.gmra.mxu3 %vm224_vm0, %v1232_v43 }
  0xfe   : > { %1281 = vmatmul.msk.f32.vlgmr.msra.gmra.mxu0 %vm224_vm0, %v1275_v46 }
  0xff   : > { %1266 = vmatmul.msk.f32.gmra.mxu2 %vm224_vm0, %v1262_v47 }
 0x102   : > { %1287 = vmatmul.msk.f32.vlgmr.msra.gmra.mxu1 %vm224_vm0, %v1275_v46 }
 0x103   : > { %1271 = vmatmul.msk.f32.vlgmr.msra.gmra.mxu3 %vm224_vm0, %v1261_v45 }
 0x104   : > { %v267_v50 = vpop.f32.mrf.mxu0 }
 0x106   : > { %1282 = vmatmul.msk.f32.gmra.mxu0 %vm224_vm0, %v1276_v48 }
 0x107   : > { %1267 = vmatmul.msk.f32.gmra.mxu2 %vm224_vm0, %v1263_v49 }
 0x10a   : > { %v273_v51 = vpop.f32.mrf.mxu2  ;;  %1288 = vmatmul.msk.f32.gmra.mxu1 %vm224_vm0, %v1276_v48 }
 0x10b   : > { %1272 = vmatmul.msk.f32.gmra.mxu3 %vm224_vm0, %v1262_v47 }
 0x10e   : > { %1283 = vmatmul.msk.f32.gmra.mxu0 %vm224_vm0, %v1277_v52  ;;  %v270_v55 = vpop.f32.mrf.mxu0 }
 0x10f   : > { %1268 = vmatmul.msk.f32.gmra.mxu2 %vm224_vm0, %v1264_v53  ;;  %v296_v54 = vpop.f32.mrf.mxu1 }
 0x112   : > { %v276_v56 = vpop.f32.mrf.mxu2  ;;  %1289 = vmatmul.msk.f32.gmra.mxu1 %vm224_vm0, %v1277_v52 }
 0x113   : > { %1273 = vmatmul.msk.f32.gmra.mxu3 %vm224_vm0, %v1263_v49 }
 0x116   : > { %v302_v58 = vpop.f32.mrf.mxu3  ;;  %1284 = vmatmul.msk.f32.gmra.mxu0 %vm224_vm0, %v1278_v57 }
 0x117   : > { %v299_v59 = vpop.f32.mrf.mxu1 }
 0x11a   : > { %v337_v60 = vpop.f32.mrf.mxu2  ;;  %1290 = vmatmul.msk.f32.gmra.mxu1 %vm224_vm0, %v1278_v57 }
 0x11b   : > { %v338_v61 = vadd.f32 %v337_v60, %v267_v50  ;;  %1274 = vmatmul.msk.f32.gmra.mxu3 %vm224_vm0, %v1264_v53  ;;  %v437_v62 = vpop.f32.mrf.mxu0 }
 0x11d   : > { %v478_v63 = vadd.f32 %v437_v62, %v338_v61 }
 0x11e   : > { %v305_v0 = vpop.f32.mrf.mxu3 }
 0x11f   : > { %v466_v1 = vpop.f32.mrf.mxu1 }
 0x122   : > { %v340_v2 = vpop.f32.mrf.mxu2 }
 0x123   : > { %v341_v3 = vadd.f32 %v340_v2, %v270_v55  ;;  %v440_v4 = vpop.f32.mrf.mxu0 }
 0x125   : > { %v480_v5 = vadd.f32 %v440_v4, %v341_v3 }
 0x126   : > { %v366_v6 = vpop.f32.mrf.mxu3 }
 0x127   : > { %v367_v7 = vadd.f32 %v366_v6, %v296_v54  ;;  %v469_v8 = vpop.f32.mrf.mxu1 }
 0x129   : > { %v479_v9 = vadd.f32 %v466_v1, %v367_v7 }
 0x12a   : > { %v343_v10 = vpop.f32.mrf.mxu2 }
 0x12b   : > { %v344_v11 = vadd.f32 %v343_v10, %v273_v51  ;;  %v443_v12 = vpop.f32.mrf.mxu0 }
 0x12d   : > { %v1685_v13 = vadd.f32 %v443_v12, %v344_v11 }
 0x12e   : > { %v369_v14 = vpop.f32.mrf.mxu3 }
 0x12f   : > { %v370_v15 = vadd.f32 %v369_v14, %v299_v59  ;;  %v472_v16 = vpop.f32.mrf.mxu1 }
 0x131   : > { %v1687_v17 = vadd.f32 %v469_v8, %v370_v15 }
 0x132   : > { %v346_v18 = vpop.f32.mrf.mxu2 }
 0x133   : > { %v347_v19 = vadd.f32 %v346_v18, %v276_v56  ;;  %v446_v20 = vpop.f32.mrf.mxu0 }
 0x135   : > { %v1689_v21 = vadd.f32 %v446_v20, %v347_v19 }
 0x136   : > { %v372_v22 = vpop.f32.mrf.mxu3 }
 0x137   : > { %v373_v23 = vadd.f32 %v372_v22, %v302_v58  ;;  %v475_v24 = vpop.f32.mrf.mxu1 }
 0x139   : > { %v1691_v25 = vadd.f32 %v472_v16, %v373_v23 }
 0x13a   : > { %v541_v26 = vpop.f32.mrf.mxu2 }
 0x13b   : > { %v624_v27 = vpop.f32.mrf.mxu0  ;;  %v582_v55 = vadd.f32 %v541_v26, %v478_v63 }
 0x13d   : > { %v665_v58 = vadd.f32 %v624_v27, %v582_v55 }
 0x13e   : > { %v375_v28 = vpop.f32.mrf.mxu3 }
 0x13f   : > { %v376_v29 = vadd.f32 %v375_v28, %v305_v0  ;;  %v653_v30 = vpop.f32.mrf.mxu1 }
 0x141   : > { %v1693_v31 = vadd.f32 %v475_v24, %v376_v29 }
 0x142   : > { %v544_v32 = vpop.f32.mrf.mxu2 }
 0x143   : > { %v627_v33 = vpop.f32.mrf.mxu0  ;;  %v584_v62 = vadd.f32 %v544_v32, %v480_v5 }
 0x145   : > { %v667_v3 = vadd.f32 %v627_v33, %v584_v62 }
 0x146   : > { %v570_v34 = vpop.f32.mrf.mxu3 }
 0x147   : > { %v656_v35 = vpop.f32.mrf.mxu1  ;;  %v583_v4 = vadd.f32 %v570_v34, %v479_v9 }
 0x149   : > { %v666_v11 = vadd.f32 %v653_v30, %v583_v4 }
 0x14a   : > { %v547_v36 = vpop.f32.mrf.mxu2 }
 0x14b   : > { %v630_v39 = vpop.f32.mrf.mxu0  ;;  %v586_v5 = vadd.f32 %v547_v36, %v1685_v13 }
 0x14d   : > { %v669_v16 = vadd.f32 %v630_v39, %v586_v5 }
 0x14e   : > { %v573_v40 = vpop.f32.mrf.mxu3 }
 0x14f   : > { %v1695_v41 = vpop.f32.mrf.mxu1  ;;  %v585_v18 = vadd.f32 %v573_v40, %v1687_v17 }
 0x151   : > { %v668_v27 = vadd.f32 %v656_v35, %v585_v18 }
 0x152   : > { %v550_v42 = vpop.f32.mrf.mxu2 }
 0x153   : > { %v633_v37 = vpop.f32.mrf.mxu0  ;;  %v588_v28 = vadd.f32 %v550_v42, %v1689_v21 }
 0x155   : > { %v671_v36 = vadd.f32 %v633_v37, %v588_v28 }
 0x156   : > { %v576_v38 = vpop.f32.mrf.mxu3 }
 0x157   : > { %v1697_v43 = vpop.f32.mrf.mxu1  ;;  %v587_v17 = vadd.f32 %v576_v38, %v1691_v25 }
 0x159   : > { %v670_v21 = vadd.f32 %v1695_v41, %v587_v17 }
 0x15a   : > { %v728_v44 = vpop.f32.mrf.mxu2 }
 0x15b   : > { %v832_v45 = vpop.f32.mrf.mxu0  ;;  %v769_v60 = vadd.f32 %v728_v44, %v665_v58 }
 0x15d   : > { %v873_v1 = vadd.f32 %v832_v45, %v769_v60 }
 0x15e   : > { %v1699_v46 = vpop.f32.mrf.mxu3 }
 0x15f   : > { %v861_v47 = vpop.f32.mrf.mxu1  ;;  %v589_v25 = vadd.f32 %v1699_v46, %v1693_v31 }
 0x161   : > { %v672_v55 = vadd.f32 %v1697_v43, %v589_v25 }
 0x162   : > { %v731_v48 = vpop.f32.mrf.mxu2 }
 0x163   : > { %v835_v49 = vpop.f32.mrf.mxu0  ;;  %v771_v63 = vadd.f32 %v731_v48, %v667_v3 }
 0x165   : > { %v875_v14 = vadd.f32 %v835_v49, %v771_v63 }
 0x166   : > { %v757_v50 = vpop.f32.mrf.mxu3 }
 0x167   : > { %v864_v51 = vpop.f32.mrf.mxu1  ;;  %v770_v15 = vadd.f32 %v757_v50, %v666_v11 }
 0x169   : > { %v874_v22 = vadd.f32 %v861_v47, %v770_v15 }
 0x16a   : > { %v734_v52 = vpop.f32.mrf.mxu2 }
 0x16b   : > { %v838_v53 = vpop.f32.mrf.mxu0  ;;  %v773_v23 = vadd.f32 %v734_v52, %v669_v16 }
 0x16d   : > { %v877_v29 = vadd.f32 %v838_v53, %v773_v23 }
 0x16e   : > { %v760_v54 = vpop.f32.mrf.mxu3 }
 0x16f   : > { %v1701_v56 = vpop.f32.mrf.mxu1  ;;  %v772_v30 = vadd.f32 %v760_v54, %v668_v27 }
 0x171   : > { %v876_v44 = vadd.f32 %v864_v51, %v772_v30 }
 0x172   : > { %v737_v57 = vpop.f32.mrf.mxu2 }
 0x173   : > { %v841_v59 = vpop.f32.mrf.mxu0  ;;  %v775_v45 = vadd.f32 %v737_v57, %v671_v36 }
 0x175   : > { %v879_v48 = vadd.f32 %v841_v59, %v775_v45 }
 0x176   : > { %v763_v61 = vpop.f32.mrf.mxu3 }
 0x177   : > { %v1703_v0 = vpop.f32.mrf.mxu1  ;;  %v774_v49 = vadd.f32 %v763_v61, %v670_v21 }
 0x179   : > { %v878_v53 = vadd.f32 %v1701_v56, %v774_v49 }
 0x17a   : > { %v932_v2 = vpop.f32.mrf.mxu2 }
 0x17b   : > { %v973_v6 = vadd.f32 %v932_v2, %v873_v1  ;;  %v1036_v7 = vpop.f32.mrf.mxu0 }
 0x17d   : > { %v1077_v8 = vadd.f32 %v1036_v7, %v973_v6 }
 0x17e   : > { %v766_v10 = vpop.f32.mrf.mxu3 }
 0x17f   : > { %1085 = vst [vmem:[%s1709_s20] sm:$0xff] %v1077_v8  ;;  %v1065_v12 = vpop.f32.mrf.mxu1  ;;  %v776_v58 = vadd.f32 %v766_v10, %v672_v55 }
 0x181   : > { %v880_v60 = vadd.f32 %v1703_v0, %v776_v58 }
 0x182   : > { %v935_v9 = vpop.f32.mrf.mxu2 }
 0x183   : > { %v975_v19 = vadd.f32 %v935_v9, %v875_v14  ;;  %v1039_v20 = vpop.f32.mrf.mxu0 }
 0x185   : > { %v1079_v24 = vadd.f32 %v1039_v20, %v975_v19 }
 0x186   : > { %v961_v26 = vpop.f32.mrf.mxu3 }
 0x187   : > { %1087 = vst [vmem:[%s1709_s20 + $0x10] sm:$0xff] %v1079_v24  ;;  %v974_v13 = vadd.f32 %v961_v26, %v874_v22  ;;  %v1068_v34 = vpop.f32.mrf.mxu1 }
 0x189   : > { %v1078_v32 = vadd.f32 %v1065_v12, %v974_v13 }
 0x18a   : > { %v938_v33 = vpop.f32.mrf.mxu2 }
 0x18b   : > { %1086 = vst [vmem:[%s1709_s20 + $0x8] sm:$0xff] %v1078_v32  ;;  %v977_v39 = vadd.f32 %v938_v33, %v877_v29  ;;  %v1042_v40 = vpop.f32.mrf.mxu0 }
 0x18d   : > { %v1081_v35 = vadd.f32 %v1042_v40, %v977_v39 }
 0x18e   : > { %v964_v47 = vpop.f32.mrf.mxu3 }
 0x18f   : > { %1089 = vst [vmem:[%s1709_s20 + $0x20] sm:$0xff] %v1081_v35  ;;  %v976_v42 = vadd.f32 %v964_v47, %v876_v44  ;;  %v1071_v51 = vpop.f32.mrf.mxu1 }
 0x191   : > { %v1080_v50 = vadd.f32 %v1068_v34, %v976_v42 }
 0x192   : > { %v941_v37 = vpop.f32.mrf.mxu2 }
 0x193   : > { %1088 = vst [vmem:[%s1709_s20 + $0x18] sm:$0xff] %v1080_v50  ;;  %v979_v38 = vadd.f32 %v941_v37, %v879_v48  ;;  %v1045_v52 = vpop.f32.mrf.mxu0 }
 0x195   : > { %v1083_v54 = vadd.f32 %v1045_v52, %v979_v38 }
 0x196   : > { %v967_v41 = vpop.f32.mrf.mxu3 }
 0x197   : > { %1091 = vst [vmem:[%s1709_s20 + $0x30] sm:$0xff] %v1083_v54  ;;  %v978_v57 = vadd.f32 %v967_v41, %v878_v53  ;;  %v1074_v31 = vpop.f32.mrf.mxu1 }
 0x199   : > { %v1082_v59 = vadd.f32 %v1071_v51, %v978_v57 }
 0x19b   : > { %1090 = vst [vmem:[%s1709_s20 + $0x28] sm:$0xff] %v1082_v59 }
 0x19e   : > { %v970_v61 = vpop.f32.mrf.mxu3 }
 0x19f   : > { %v980_v46 = vadd.f32 %v970_v61, %v880_v60 }
 0x1a1   : > { %v1084_v62 = vadd.f32 %v1074_v31, %v980_v46 }
 0x1a3   : > { %1092 = vst [vmem:[%s1709_s20 + $0x38] sm:$0xff] %v1084_v62 }
 0x1a4 PF: > { %s12_s9 = sadd.s32 1, %s1331_s9  }
 0x1a5   : > { %p9_p4 = scmp.ge.s32.totalorder %s12_s9, 4  }
 0x1a7   :  { %11 = sbr.rel (!%p9_p4) target bundleno = 1 (0x1), region = 66 }

// kernel: pix2pix_rdn_forward.9
= control target key start
LH: loop header
LB: loop body
LE: loop exit
PB: predicated region body
PF: predicated region fallthrough
CT: control target
= control target key end

     0   :  { %s955_s9 = smov 0   ;;  %s1166_s0 = inlined_call_operand.vmem [shape: f32[2,16,256], index: 0, kind: input, shape index: {}]   ;;  %s1167_s1 = inlined_call_operand.vmem [shape: f32[9,1,16], index: 1, kind: input, shape index: {}]   ;;  %s1168_s2 = inlined_call_operand.vmem [shape: f32[2,1,256], index: 2, kind: output, shape index: {}]  }
   0x1 LB: > { %s831_s10 = sadd.s32 4294967295, %s930_s9   ;;  %p835_p0 = scmp.ge.s32.totalorder %s930_s9, 1  ;;  %s930_s9 = sphi %s955_s9, %s12_s9  }
   0x2   : > { %p112_p1 = scmp.lt.s32.totalorder %s930_s9, 3 }
   0x4   : > { %p113_p2 = pnand %p835_p0, %p112_p1 }
   0x5   : > { %p133_p3 = scmp.lt.s32.totalorder (!%p113_p2), %s831_s10, 1  ;;  %s932_s15 = smov (!%p113_p2), 16  }
   0x6   : > { %116 = sbr.rel (%p113_p2) target bundleno = 336 (0x150), region = 28  ;;  %s933_s16 = smov (!%p113_p2), 17  }
   0x7   : > { %s934_s17 = smov (!%p113_p2), 15   ;;  %s935_s18 = smov (!%p113_p2), 1  }
   0x8   : > { %s936_s19 = smov (!%p113_p2), 127   ;;  %s937_s20 = smov (!%p113_p2), 113  }
   0x9   : > { %s938_s21 = smov (!%p113_p2), 112   ;;  %s939_s22 = smov (!%p113_p2), 111  }
   0xb   : > { %s1180_s10 = smov (!%p133_p3, %s831_s10), 1  ;;  %v146_v8 = vlaneseq  ;;  %vm215_vm0 = vcmask 130048   ;;  %vm189_vm2 = vcmask 138240   ;;  %v206_v21 = vld [vmem:[%s1167_s1] sm:$0x1]  ;;  %vm320_vm5 = vcmask 121856  }
   0xc   : > { %s897_s11 = sshll.u32 %s1180_s10, 5  ;;  %vm1011_vm1 = vmneg %vm215_vm0  ;;  %v839_v39 = vld [vmem:[%s1167_s1 + $0x1] sm:$0x1]  ;;  %vm392_vm8 = vcmask 7168   ;;  %v852_v45 = vld [vmem:[%s1167_s1 + $0x2] sm:$0x1] }
   0xd   : > { %s137_s14 = scalar_lea.vmem %s1166_s0, %s897_s11  ;;  %v147_v9 = vand.u32 127, %v146_v8  ;;  %v859_v52 = vld [vmem:[%s1167_s1 + $0x3] sm:$0x1]  ;;  %v866_v53 = vld [vmem:[%s1167_s1 + $0x4] sm:$0x1]  ;;  %vm507_vm9 = vcmask 1039360  }
   0xe   : > { %v969_v0 = vld [vmem:[%s137_s14 + $0x10] sm:$0xff]  ;;  %v973_v1 = vld [vmem:[%s137_s14] sm:$0xff]  ;;  %v975_v2 = vld [vmem:[%s137_s14 + $0x18] sm:$0xff]  ;;  %vm643_vm10 = vcmask 916480   ;;  %vm575_vm11 = vcmask 924672   ;;  %vm707_vm12 = vcmask 908288  }
   0xf   : > { %211 = vrot.lane.b32.xlu1 %v969_v0, %s932_s15  ;;  %185 = vrot.lane.b32.xlu0 %v969_v0, %s933_s16  ;;  %v977_v3 = vld [vmem:[%s137_s14 + $0x8] sm:$0xff]  ;;  %v919_v5 = vpack.i.bf16 %v973_v1, %v969_v0  ;;  %v153_v11 = vand.u32 15, %v147_v9  ;;  %v148_v14 = vadd.s32 128, %v147_v9  ;;  %v869_v58 = vld [vmem:[%s1167_s1 + $0x5] sm:$0x1]  ;;  %vm770_vm13 = vcmask 1040384  }
  0x10   : > { %181 = vrot.lane.b32.xlu2 %v973_v1, %s933_s16  ;;  %v914_v4 = vpack.i.bf16 %v977_v3, %v975_v2  ;;  %v883_v12 = vld [vmem:[%s1167_s1 + $0x7] sm:$0x1]  ;;  %vm775_vm14 = vcmp.lt.s32.totalorder %v146_v8, 256 }
  0x11   : > { %vm1015_vm3 = vcmp.ge.s32.totalorder %v153_v11, 1  ;;  %v160_v20 = vand.u32 15, %v148_v14  ;;  %vm1043_vm6 = vcmp.le.s32.totalorder %v153_v11, 14 }
  0x13   : > { %vm1031_vm4 = vcmp.ge.s32.totalorder %v160_v20, 1  ;;  %vm1047_vm7 = vcmp.le.s32.totalorder %v160_v20, 14 }
  0x17   : > { %187 = vrot.lane.b32.xlu0 %v975_v2, %s933_s16  ;;  %915 = vrot.lane.b32.xlu1 %v914_v4, %s932_s15 }
  0x18   : > { %183 = vrot.lane.b32.xlu2 %v977_v3, %s933_s16 }
  0x1f   : > { %316 = vrot.lane.b32.xlu1 %v969_v0, %s934_s17  ;;  %207 = vrot.lane.b32.xlu0 %v973_v1, %s932_s15  ;;  %s838_s15 = sshll.u32 %s1180_s10, 1 }
  0x20   : > { %318 = vrot.lane.b32.xlu2 %v975_v2, %s934_s17 }
  0x27   : > { %390 = vrot.lane.b32.xlu1 %v975_v2, %s935_s18  ;;  %388 = vrot.lane.b32.xlu0 %v969_v0, %s935_s18 }
  0x28   : > { %312 = vrot.lane.b32.xlu2 %v973_v1, %s934_s17 }
  0x2f   : > { %384 = vrot.lane.b32.xlu1 %v973_v1, %s935_s18  ;;  %314 = vrot.lane.b32.xlu0 %v977_v3, %s934_s17 }
  0x30   : > { %386 = vrot.lane.b32.xlu2 %v977_v3, %s935_s18  ;;  %s141_s18 = scalar_lea.vmem %s1168_s2, %s838_s15 }
  0x37   : > { %501 = vrot.lane.b32.xlu1 %v977_v3, %s936_s19  ;;  %505 = vrot.lane.b32.xlu0 %v975_v2, %s936_s19 }
  0x38   : > { %503 = vrot.lane.b32.xlu2 %v969_v0, %s936_s19 }
  0x3f   : > { %573 = vrot.lane.b32.xlu1 %v975_v2, %s937_s20  ;;  %499 = vrot.lane.b32.xlu0 %v973_v1, %s936_s19 }
  0x40   : > { %641 = vrot.lane.b32.xlu2 %v975_v2, %s938_s21 }
  0x47   : > { %571 = vrot.lane.b32.xlu1 %v969_v0, %s937_s20  ;;  %569 = vrot.lane.b32.xlu0 %v977_v3, %s937_s20 }
  0x48   : > { %920 = vrot.lane.b32.xlu2 %v919_v5, %s938_s21 }
  0x4f   : > { %567 = vrot.lane.b32.xlu1 %v973_v1, %s937_s20  ;;  %637 = vrot.lane.b32.xlu0 %v977_v3, %s938_s21 }
  0x50   : > { %705 = vrot.lane.b32.xlu2 %v975_v2, %s939_s22 }
  0x57   : > { %703 = vrot.lane.b32.xlu1 %v969_v0, %s939_s22  ;;  %701 = vrot.lane.b32.xlu0 %v977_v3, %s939_s22 }
  0x58   : > { %699 = vrot.lane.b32.xlu2 %v973_v1, %s939_s22 }
  0x6a   : > { %v182_v6 = vpop.permute.xlu2 %181 }
  0x6b   : > { %v196_v18 = vsel %vm189_vm2, 0.0, %v182_v6 }
  0x72   : > { %v184_v7 = vpop.permute.xlu2 %183 }
  0x73   : > { %v190_v28 = vsel %vm189_vm2, %v182_v6, %v184_v7  ;;  %v876_v6 = vld [vmem:[%s1167_s1 + $0x6] sm:$0x1] }
  0x7a   : > { %v319_v10 = vpop.permute.xlu2 %318 }
  0x81   : > { %v212_v15 = vpop.permute.xlu1 %211  ;;  %v186_v16 = vpop.permute.xlu0 %185 }
  0x82   : > { %841 = vmatpush.msk.msra.mxu0 %vm1011_vm1, %v212_v15  ;;  %v197_v17 = vsel %vm189_vm2, 0.0, %v186_v16  ;;  %v313_v19 = vpop.permute.xlu2 %312 }
  0x83   : > { %846 = vmatpush.msk.msra.mxu2 %vm1015_vm3, %v197_v17  ;;  %v327_v38 = vsel %vm320_vm5, 0.0, %v313_v19 }
  0x85   : > { %847 = vmatpush.msk.msra.mxu2 %vm1015_vm3, %v196_v18 }
  0x86   : > { %848 = vmatmul.msk.f32.vlgmr.msra.gmra.mxu2 %vm215_vm0, %v206_v21 }
  0x89   : > { %v188_v23 = vpop.permute.xlu0 %187  ;;  %v916_v24 = vpop.permute.xlu1 %915 }
  0x8a   : > { %v917_v25 = vunpack.i.l.bf16 %v916_v24  ;;  %v191_v26 = vsel %vm189_vm2, %v186_v16, %v188_v23  ;;  %v387_v29 = vpop.permute.xlu2 %386  ;;  %v918_v30 = vunpack.i.h.bf16 %v916_v24 }
  0x8b   : > { %849 = vmatpush.msk.msra.mxu3 %vm1031_vm4, %v191_v26 }
  0x8c   : > { %v217_v27 = vsel %vm215_vm0, %v212_v15, %v917_v25 }
  0x8d   : > { %263 = vmatpush.msra.mxu1 %v217_v27  ;;  %850 = vmatpush.msk.msra.mxu3 %vm1031_vm4, %v190_v28 }
  0x8e   : > { %851 = vmatmul.msk.f32.vlgmr.msra.gmra.mxu3 %vm215_vm0, %v206_v21  ;;  %v888_v21 = vld [vmem:[%s1167_s1 + $0x8] sm:$0x1] }
  0x91   : > { %v317_v32 = vpop.permute.xlu1 %316  ;;  %v208_v33 = vpop.permute.xlu0 %207 }
  0x92   : > { %843 = vmatpush.msk.msra.mxu0 %vm1011_vm1, %v208_v33  ;;  %v216_v35 = vsel %vm215_vm0, %v208_v33, %v918_v30  ;;  %v328_v36 = vsel %vm320_vm5, 0.0, %v317_v32  ;;  %v322_v37 = vsel %vm320_vm5, %v317_v32, %v319_v10  ;;  %v504_v40 = vpop.permute.xlu2 %503 }
  0x93   : > { %264 = vmatpush.msra.mxu1 %v216_v35  ;;  %844 = vmatmul.msk.f32.vlgmr.msra.gmra.mxu0 %vm215_vm0, %v839_v39 }
  0x94   : > { %853 = vmatpush.msk.msrb.mxu0 %vm1043_vm6, %v328_v36  ;;  %845 = vmatmul.msk.f32.vlgmr.msra.gmra.mxu1 %vm215_vm0, %v839_v39 }
  0x95   : > { %856 = vmatpush.msk.msrb.mxu1 %vm1047_vm7, %v322_v37 }
  0x96   : > { %854 = vmatpush.msk.msrb.mxu0 %vm1043_vm6, %v327_v38 }
  0x98   : > { %471 = vmatpush.msra.mxu0 %v969_v0 }
  0x99   : > { %v391_v41 = vpop.permute.xlu1 %390  ;;  %v389_v42 = vpop.permute.xlu0 %388 }
  0x9a   : > { %472 = vmatpush.msra.mxu0 %v973_v1  ;;  %v394_v43 = vsel %vm392_vm8, %v389_v42, %v391_v41  ;;  %v400_v44 = vsel %vm392_vm8, 0.0, %v389_v42  ;;  %v642_v46 = vpop.permute.xlu2 %641 }
  0x9b   : > { %863 = vmatpush.msk.msrb.mxu3 %vm1031_vm4, %v394_v43  ;;  %860 = vmatpush.msk.msrb.mxu2 %vm1015_vm3, %v400_v44 }
  0x9c   : > { %855 = vmatmul.msk.f32.vlgmr.msrb.gmra.mxu0 %vm215_vm0, %v852_v45 }
  0xa1   : > { %v385_v47 = vpop.permute.xlu1 %384  ;;  %v315_v48 = vpop.permute.xlu0 %314 }
  0xa2   : > { %v321_v49 = vsel %vm320_vm5, %v313_v19, %v315_v48  ;;  %v399_v50 = vsel %vm392_vm8, 0.0, %v385_v47  ;;  %v393_v51 = vsel %vm392_vm8, %v385_v47, %v387_v29  ;;  %v921_v59 = vpop.permute.xlu2 %920 }
  0xa3   : > { %857 = vmatpush.msk.msrb.mxu1 %vm1047_vm7, %v321_v49  ;;  %861 = vmatpush.msk.msrb.mxu2 %vm1015_vm3, %v399_v50  ;;  %v922_v61 = vunpack.i.l.bf16 %v921_v59  ;;  %v923_v11 = vunpack.i.h.bf16 %v921_v59 }
  0xa4   : > { %864 = vmatpush.msk.msrb.mxu3 %vm1031_vm4, %v393_v51  ;;  %858 = vmatmul.msk.f32.vlgmr.msrb.gmra.mxu1 %vm215_vm0, %v852_v45 }
  0xa5   : > { %865 = vmatmul.msk.f32.vlgmr.msrb.gmra.mxu3 %vm215_vm0, %v859_v52  ;;  %862 = vmatmul.msk.f32.vlgmr.msrb.gmra.mxu2 %vm215_vm0, %v859_v52 }
  0xa6   : > { %491 = vmatpush.msra.mxu1 %v975_v2  ;;  %867 = vmatmul.msk.f32.vlgmr.msra.gmra.mxu0 %vm215_vm0, %v866_v53  ;;  %v645_v2 = vsel %vm643_vm10, %v922_v61, %v642_v46 }
  0xa8   : > { %492 = vmatpush.msra.mxu1 %v977_v3 }
  0xa9   : > { %v502_v54 = vpop.permute.xlu1 %501  ;;  %v506_v55 = vpop.permute.xlu0 %505 }
  0xaa   : > { %v509_v56 = vsel %vm507_vm9, %v504_v40, %v506_v55  ;;  %v515_v57 = vsel %vm507_vm9, %v506_v55, 0.0  ;;  %v514_v60 = vsel %vm507_vm9, %v502_v54, 0.0  ;;  %v706_v3 = vpop.permute.xlu2 %705 }
  0xab   : > { %873 = vmatpush.msk.msra.mxu3 %vm1047_vm7, %v515_v57  ;;  %870 = vmatpush.msk.msra.mxu2 %vm1043_vm6, %v509_v56  ;;  %v715_v10 = vsel %vm707_vm12, %v706_v3, 0.0 }
  0xac   : > { %868 = vmatmul.msk.f32.vlgmr.msra.gmra.mxu1 %vm215_vm0, %v866_v53 }
  0xad   : > { %874 = vmatpush.msk.msra.mxu3 %vm1047_vm7, %v514_v60 }
  0xae   : > { %875 = vmatmul.msk.f32.vlgmr.msra.gmra.mxu3 %vm215_vm0, %v869_v58 }
  0xaf   : > { %885 = vmatpush.msk.msrb.mxu3 %vm643_vm10, %v642_v46 }
  0xb1   : > { %v574_v62 = vpop.permute.xlu1 %573  ;;  %v500_v63 = vpop.permute.xlu0 %499 }
  0xb2   : > { %v583_v0 = vsel %vm575_vm11, %v574_v62, 0.0  ;;  %v508_v1 = vsel %vm507_vm9, %v500_v63, %v502_v54  ;;  %v700_v18 = vpop.permute.xlu2 %699 }
  0xb3   : > { %871 = vmatpush.msk.msra.mxu2 %vm1043_vm6, %v508_v1  ;;  %880 = vmatpush.msk.msrb.mxu1 %vm1031_vm4, %v583_v0 }
  0xb4   : > { %872 = vmatmul.msk.f32.vlgmr.msra.gmra.mxu2 %vm215_vm0, %v869_v58 }
  0xb5   : > { %671 = vmatpush.msrb.mxu2 %v645_v2 }
  0xb9   : > { %v572_v4 = vpop.permute.xlu1 %571  ;;  %v570_v5 = vpop.permute.xlu0 %569 }
  0xba   : > { %v577_v7 = vsel %vm575_vm11, %v572_v4, %v574_v62  ;;  %v582_v9 = vsel %vm575_vm11, %v570_v5, 0.0 }
  0xbb   : > { %877 = vmatpush.msk.msrb.mxu0 %vm1015_vm3, %v577_v7  ;;  %881 = vmatpush.msk.msrb.mxu1 %vm1031_vm4, %v582_v9 }
  0xbc   : > { %882 = vmatmul.msk.f32.vlgmr.msrb.gmra.mxu1 %vm215_vm0, %v876_v6 }
  0xbd   : > { %892 = vmatpush.msk.msra.mxu1 %vm1047_vm7, %v715_v10 }
  0xc1   : > { %v568_v14 = vpop.permute.xlu1 %567  ;;  %v638_v15 = vpop.permute.xlu0 %637 }
  0xc2   : > { %v576_v16 = vsel %vm575_vm11, %v568_v14, %v570_v5  ;;  %886 = vmatpush.msk.msrb.mxu3 %vm643_vm10, %v638_v15  ;;  %v644_v17 = vsel %vm643_vm10, %v923_v11, %v638_v15 }
  0xc3   : > { %878 = vmatpush.msk.msrb.mxu0 %vm1015_vm3, %v576_v16  ;;  %887 = vmatmul.msk.f32.vlgmr.msrb.gmra.mxu3 %vm215_vm0, %v883_v12 }
  0xc4   : > { %672 = vmatpush.msrb.mxu2 %v644_v17  ;;  %879 = vmatmul.msk.f32.vlgmr.msrb.gmra.mxu0 %vm215_vm0, %v876_v6 }
  0xc5   : > { %884 = vmatmul.msk.f32.vlgmr.msrb.gmra.mxu2 %vm215_vm0, %v883_v12 }
  0xc9   : > { %v704_v19 = vpop.permute.xlu1 %703  ;;  %v702_v20 = vpop.permute.xlu0 %701 }
  0xca   : > { %v709_v22 = vsel %vm707_vm12, %v704_v19, %v706_v3  ;;  %v714_v23 = vsel %vm707_vm12, %v702_v20, 0.0  ;;  %v708_v13 = vsel %vm707_vm12, %v700_v18, %v702_v20 }
  0xcb   : > { %889 = vmatpush.msk.msra.mxu0 %vm1043_vm6, %v709_v22  ;;  %893 = vmatpush.msk.msra.mxu1 %vm1047_vm7, %v714_v23 }
  0xcc   : > { %894 = vmatmul.msk.f32.vlgmr.msra.gmra.mxu1 %vm215_vm0, %v888_v21 }
  0xcd   : > { %890 = vmatpush.msk.msra.mxu0 %vm1043_vm6, %v708_v13 }
  0xce   : > { %891 = vmatmul.msk.f32.vlgmr.msra.gmra.mxu0 %vm215_vm0, %v888_v21 }
 0x109   : > { %v289_v27 = vpop.f32.mrf.mxu2 }
 0x110   : > { %v246_v25 = vpop.f32.mrf.mxu0 }
 0x111   : > { %v266_v24 = vpop.f32.mrf.mxu1  ;;  %v309_v26 = vpop.f32.mrf.mxu3  ;;  %v290_v35 = vadd.f32 %v289_v27, %v246_v25 }
 0x112   : > { %v310_v30 = vadd.f32 %v309_v26, %v266_v24 }
 0x119   : > { %v359_v29 = vpop.f32.mrf.mxu0 }
 0x11a   : > { %v382_v39 = vadd.f32 %v359_v29, %v290_v35 }
 0x121   : > { %v379_v28 = vpop.f32.mrf.mxu1 }
 0x122   : > { %v383_v34 = vadd.f32 %v379_v28, %v310_v30 }
 0x123   : > { %v474_v38 = vpop.f32.mrf.mxu0 }
 0x128   : > { %v447_v32 = vpop.f32.mrf.mxu3  ;;  %v427_v33 = vpop.f32.mrf.mxu2 }
 0x129   : > { %v494_v36 = vpop.f32.mrf.mxu1  ;;  %v451_v37 = vadd.f32 %v447_v32, %v383_v34  ;;  %v450_v41 = vadd.f32 %v427_v33, %v382_v39 }
 0x12b   : > { %v498_v40 = vadd.f32 %v494_v36, %v451_v37  ;;  %v497_v46 = vadd.f32 %v474_v38, %v450_v41 }
 0x131   : > { %v562_v31 = vpop.f32.mrf.mxu3 }
 0x132   : > { %v566_v44 = vadd.f32 %v562_v31, %v498_v40 }
 0x137   : > { %v542_v42 = vpop.f32.mrf.mxu2 }
 0x138   : > { %v565_v48 = vadd.f32 %v542_v42, %v497_v46 }
 0x139   : > { %v630_v43 = vpop.f32.mrf.mxu1 }
 0x13a   : > { %v634_v47 = vadd.f32 %v630_v43, %v566_v44 }
 0x141   : > { %v610_v45 = vpop.f32.mrf.mxu0 }
 0x142   : > { %v633_v51 = vadd.f32 %v610_v45, %v565_v48 }
 0x146   : > { %v694_v49 = vpop.f32.mrf.mxu3 }
 0x147   : > { %v698_v50 = vadd.f32 %v694_v49, %v634_v47 }
 0x148   : > { %v674_v52 = vpop.f32.mrf.mxu2 }
 0x149   : > { %v762_v53 = vpop.f32.mrf.mxu1  ;;  %v697_v54 = vadd.f32 %v674_v52, %v633_v51 }
 0x14a   : > { %v766_v55 = vadd.f32 %v762_v53, %v698_v50 }
 0x14b   : > { %v742_v56 = vpop.f32.mrf.mxu0 }
 0x14c   : > { %v769_v57 = vrot.slane %v766_v55, 7  ;;  %v765_v58 = vadd.f32 %v742_v56, %v697_v54 }
 0x14e   : > { %v771_v59 = vsel %vm770_vm13, %v765_v58, %v769_v57 }
 0x14f   : > { %777 = vst.msk [vmem:[%s141_s18] sm:$0x3] %vm775_vm14, %v771_v59 }
 0x150 PF: > { %s12_s9 = sadd.s32 1, %s930_s9  }
 0x151   : > { %p9_p4 = scmp.ge.s32.totalorder %s12_s9, 4  }
 0x153   :  { %11 = sbr.rel (!%p9_p4) target bundleno = 1 (0x1), region = 66 }

// kernel: pix2pix_rdn_forward.8
= control target key start
LH: loop header
LB: loop body
LE: loop exit
PB: predicated region body
PF: predicated region fallthrough
CT: control target
= control target key end

     0   :  { %s3557_s18 = smov 0   ;;  %s4654_s0 = inlined_call_operand.vmem [shape: f32[2,16,256], index: 0, kind: input, shape index: {}]   ;;  %s4655_s1 = inlined_call_operand.vmem [shape: f32[4,16,32], index: 1, kind: input, shape index: {}]   ;;  %s4656_s2 = inlined_call_operand.vmem [shape: f32[36,8,16], index: 2, kind: input, shape index: {}]   ;;  %s4657_s3 = inlined_call_operand.vmem [shape: f32[2,16,32], index: 3, kind: input, shape index: {}]   ;;  %s4658_s4 = inlined_call_operand.vmem [shape: f32[2,16,16], index: 4, kind: input, shape index: {}]   ;;  %s4659_s5 = inlined_call_operand.vmem [shape: f32[2,16,256], index: 5, kind: output, shape index: {}]  }
   0x1 LB: > { %s3169_s19 = sadd.s32 4294967295, %s3517_s18   ;;  %p3173_p0 = scmp.ge.s32.totalorder %s3517_s18, 1  ;;  %s3517_s18 = sphi %s3557_s18, %s15_s18  }
   0x2   : > { %p187_p1 = scmp.lt.s32.totalorder %s3517_s18, 3 }
   0x4   : > { %p188_p2 = pnand %p3173_p0, %p187_p1 }
   0x5   : > { %p215_p3 = scmp.lt.s32.totalorder (!%p188_p2), %s3169_s19, 1  ;;  %s3519_s28 = smov (!%p188_p2), 17  }
   0x6   : > { %191 = sbr.rel (%p188_p2) target bundleno = 2293 (0x8f5), region = 40  ;;  %s3520_s29 = smov (!%p188_p2), 16  }
   0x7   : > { %s3521_s30 = smov (!%p188_p2), 15   ;;  %s3522_s6 = smov (!%p188_p2), 1  }
   0x8   : > { %s3523_s7 = smov (!%p188_p2), 127   ;;  %s3524_s8 = smov (!%p188_p2), 113  }
   0x9   : > { %s3525_s9 = smov (!%p188_p2), 112   ;;  %s3526_s10 = smov (!%p188_p2), 111  }
   0xb   : > { %s4671_s19 = smov (!%p215_p3, %s3169_s19), 1  ;;  %v276_v12 = vld [vmem:[%s4655_s1] sm:$0xff]  ;;  %vm278_vm0 = vcmask 130048   ;;  %v277_v13 = vld [vmem:[%s4655_s1 + $0x8] sm:$0xff]  ;;  %v225_v32 = vlaneseq  ;;  %vm477_vm3 = vcmask 121856   ;;  %vm347_vm6 = vcmask 138240  }
   0xc   : > { %s3449_s20 = sshll.u32 %s4671_s19, 5  ;;  %vm3694_vm1 = vmneg %vm278_vm0  ;;  %v3195_v53 = vld [vmem:[%s4656_s2 + $0x10] sm:$0xff]  ;;  %v3182_v54 = vld [vmem:[%s4656_s2 + $0x8] sm:$0xff]  ;;  %vm732_vm7 = vcmask 924672   ;;  %vm549_vm9 = vcmask 7168   ;;  %vm664_vm10 = vcmask 1039360  }
   0xd   : > { %s219_s23 = scalar_lea.vmem %s4654_s0, %s3449_s20  ;;  %v226_v34 = vand.u32 127, %v225_v32  ;;  %vm800_vm11 = vcmask 916480   ;;  %v3212_v32 = vld [vmem:[%s4656_s2 + $0x28] sm:$0xff]  ;;  %vm864_vm12 = vcmask 908288   ;;  %vm941_vm13 = vcmask 195584   ;;  %v3419_v45 = vld [vmem:[%s4656_s2 + $0x110] sm:$0xff]  ;;  %s224_s13 = scalar_lea.vmem %s4659_s5, %s3449_s20 }
   0xe   : > { %v258_v0 = vld [vmem:[%s219_s23 + $0x10] sm:$0xff]  ;;  %v259_v1 = vld [vmem:[%s219_s23 + $0x18] sm:$0xff]  ;;  %v256_v2 = vld [vmem:[%s219_s23] sm:$0xff]  ;;  %vm1585_vm14 = vcmask 261120  }
   0xf   : > { %v3573_v3 = vmax.f32 %v258_v0, 0.0  ;;  %v3575_v4 = vmax.f32 %v259_v1, 0.0  ;;  %v3577_v5 = vmax.f32 %v256_v2, 0.0  ;;  %v257_v6 = vld [vmem:[%s219_s23 + $0x8] sm:$0xff]  ;;  %v227_v37 = vadd.s32 128, %v226_v34  ;;  %v364_v0 = vld [vmem:[%s4656_s2] sm:$0xff] }
  0x10   : > { %v3579_v7 = vmax.f32 %v257_v6, 0.0  ;;  %v232_v39 = vand.u32 15, %v226_v34  ;;  %v3209_v2 = vld [vmem:[%s4656_s2 + $0x20] sm:$0xff] }
  0x11   : > { %v3582_v8 = vmax.f32 %v3573_v3, 0.0  ;;  %v3585_v9 = vmax.f32 %v3575_v4, 0.0  ;;  %v3588_v10 = vmax.f32 %v3577_v5, 0.0  ;;  %v239_v40 = vand.u32 15, %v227_v37 }
  0x12   : > { %v3591_v11 = vmax.f32 %v3579_v7, 0.0  ;;  %vm3698_vm2 = vcmp.le.s32.totalorder %v232_v39, 14  ;;  %vm3714_vm5 = vcmp.ge.s32.totalorder %v232_v39, 1 }
  0x13   : > { %299 = vmatpush.msra.mxu0 %v3582_v8  ;;  %3451 = vmatpush.msra.mxu2 %v3582_v8  ;;  %vm3704_vm4 = vcmp.le.s32.totalorder %v239_v40, 14  ;;  %vm3744_vm8 = vcmp.ge.s32.totalorder %v239_v40, 1 }
  0x14   : > { %322 = vmatpush.msra.mxu1 %v3585_v9  ;;  %3453 = vmatpush.msra.mxu3 %v3585_v9 }
  0x15   : > { %300 = vmatpush.msra.mxu0 %v3588_v10  ;;  %3452 = vmatpush.msra.mxu2 %v3588_v10 }
  0x16   : > { %323 = vmatpush.msra.mxu1 %v3591_v11  ;;  %3454 = vmatpush.msra.mxu3 %v3591_v11 }
  0x17   : > { %3178 = vmatmul.msk.f32.vlgmr.msra.gmra.mxu0 %vm278_vm0, %v276_v12  ;;  %3179 = vmatmul.msk.f32.vlgmr.msra.gmra.mxu2 %vm278_vm0, %v277_v13 }
  0x18   : > { %3180 = vmatmul.msk.f32.vlgmr.msra.gmra.mxu1 %vm278_vm0, %v276_v12  ;;  %3181 = vmatmul.msk.f32.vlgmr.msra.gmra.mxu3 %vm278_vm0, %v277_v13 }
  0x94   : > { %v302_v14 = vpop.f32.mrf.mxu0 }
  0x95   : > { %v3611_v15 = vmax.f32 %v302_v14, 0.0  ;;  %v325_v16 = vpop.f32.mrf.mxu1 }
  0x96   : > { %v3613_v17 = vmax.f32 %v325_v16, 0.0  ;;  %v3219_v16 = vld [vmem:[%s4656_s2 + $0x30] sm:$0xff] }
  0x97   : > { %339 = vrot.lane.b32.xlu2 %v3611_v15, %s3519_s28  ;;  %365 = vrot.lane.b32.xlu1 %v3611_v15, %s3520_s29 }
  0x98   : > { %341 = vrot.lane.b32.xlu0 %v3613_v17, %s3519_s28 }
  0x9a   : > { %v305_v18 = vpop.f32.mrf.mxu2 }
  0x9b   : > { %v3627_v19 = vmax.f32 %v305_v18, 0.0  ;;  %v328_v20 = vpop.f32.mrf.mxu3 }
  0x9c   : > { %v3641_v21 = vmax.f32 %v328_v20, 0.0 }
  0x9d   : > { %v3476_v23 = vpack.i.bf16 %v3611_v15, %v3627_v19 }
  0x9e   : > { %v3471_v22 = vpack.i.bf16 %v3613_v17, %v3641_v21 }
  0x9f   : > { %469 = vrot.lane.b32.xlu2 %v3611_v15, %s3521_s30  ;;  %541 = vrot.lane.b32.xlu1 %v3611_v15, %s3522_s6 }
  0xa0   : > { %471 = vrot.lane.b32.xlu0 %v3613_v17, %s3521_s30 }
  0xa7   : > { %543 = vrot.lane.b32.xlu2 %v3613_v17, %s3522_s6  ;;  %343 = vrot.lane.b32.xlu1 %v3627_v19, %s3519_s28 }
  0xa8   : > { %658 = vrot.lane.b32.xlu0 %v3613_v17, %s3523_s7 }
  0xaf   : > { %656 = vrot.lane.b32.xlu2 %v3611_v15, %s3523_s7  ;;  %473 = vrot.lane.b32.xlu1 %v3627_v19, %s3521_s30 }
  0xb0   : > { %369 = vrot.lane.b32.xlu0 %v3627_v19, %s3520_s29 }
  0xb7   : > { %345 = vrot.lane.b32.xlu2 %v3641_v21, %s3519_s28  ;;  %547 = vrot.lane.b32.xlu1 %v3641_v21, %s3522_s6 }
  0xb8   : > { %3472 = vrot.lane.b32.xlu0 %v3471_v22, %s3520_s29 }
  0xbf   : > { %475 = vrot.lane.b32.xlu2 %v3641_v21, %s3521_s30  ;;  %662 = vrot.lane.b32.xlu1 %v3641_v21, %s3523_s7 }
  0xc0   : > { %726 = vrot.lane.b32.xlu0 %v3613_v17, %s3524_s8 }
  0xc7   : > { %724 = vrot.lane.b32.xlu2 %v3611_v15, %s3524_s8  ;;  %728 = vrot.lane.b32.xlu1 %v3627_v19, %s3524_s8 }
  0xc8   : > { %545 = vrot.lane.b32.xlu0 %v3627_v19, %s3522_s6 }
  0xcf   : > { %730 = vrot.lane.b32.xlu2 %v3641_v21, %s3524_s8  ;;  %798 = vrot.lane.b32.xlu1 %v3641_v21, %s3525_s9 }
  0xd0   : > { %660 = vrot.lane.b32.xlu0 %v3627_v19, %s3523_s7 }
  0xd7   : > { %860 = vrot.lane.b32.xlu2 %v3627_v19, %s3526_s10  ;;  %794 = vrot.lane.b32.xlu1 %v3613_v17, %s3525_s9 }
  0xd8   : > { %3477 = vrot.lane.b32.xlu0 %v3476_v23, %s3525_s9  ;;  %v3202_v23 = vld [vmem:[%s4656_s2 + $0x18] sm:$0xff] }
  0xdf   : > { %858 = vrot.lane.b32.xlu2 %v3613_v17, %s3526_s10  ;;  %856 = vrot.lane.b32.xlu1 %v3611_v15, %s3526_s10 }
  0xe0   : > { %862 = vrot.lane.b32.xlu0 %v3641_v21, %s3526_s10 }
  0xf1   : > { %v3681_v24 = vpop.permute.xlu2 %339 }
  0xf2   : > { %v354_v55 = vsel %vm347_vm6, 0.0, %v3681_v24 }
  0xf9   : > { %v470_v25 = vpop.permute.xlu2 %469 }
  0xfa   : > { %v484_v50 = vsel %vm477_vm3, 0.0, %v470_v25 }
 0x101   : > { %v3683_v26 = vpop.permute.xlu2 %543 }
 0x109   : > { %v3685_v27 = vpop.permute.xlu2 %656  ;;  %v366_v28 = vpop.permute.xlu1 %365 }
 0x10a   : > { %v3687_v29 = vpop.permute.xlu0 %341 }
 0x10b   : > { %v348_v14 = vsel %vm347_vm6, %v3681_v24, %v3687_v29 }
 0x111   : > { %v346_v30 = vpop.permute.xlu2 %345  ;;  %v3689_v31 = vpop.permute.xlu1 %541 }
 0x112   : > { %v472_v33 = vpop.permute.xlu0 %471  ;;  %v550_v24 = vsel %vm549_vm9, %v3689_v31, %v3683_v26 }
 0x113   : > { %v478_v52 = vsel %vm477_vm3, %v470_v25, %v472_v33  ;;  %v556_v25 = vsel %vm549_vm9, 0.0, %v3689_v31 }
 0x119   : > { %v476_v35 = vpop.permute.xlu2 %475  ;;  %v344_v36 = vpop.permute.xlu1 %343 }
 0x11a   : > { %v3691_v38 = vpop.permute.xlu0 %658  ;;  %v355_v51 = vsel %vm347_vm6, 0.0, %v344_v36  ;;  %v349_v6 = vsel %vm347_vm6, %v344_v36, %v346_v30 }
 0x11b   : > { %v671_v26 = vsel %vm664_vm10, %v3691_v38, 0.0  ;;  %v665_v33 = vsel %vm664_vm10, %v3685_v27, %v3691_v38  ;;  %v3226_v27 = vld [vmem:[%s4656_s2 + $0x38] sm:$0xff] }
 0x121   : > { %v3702_v43 = vpop.permute.xlu2 %724  ;;  %v474_v44 = vpop.permute.xlu1 %473 }
 0x122   : > { %v370_v46 = vpop.permute.xlu0 %369  ;;  %v485_v47 = vsel %vm477_vm3, 0.0, %v474_v44  ;;  %v479_v48 = vsel %vm477_vm3, %v474_v44, %v476_v35 }
 0x123   : > { %3184 = vmatpush.msk.msrb.mxu2 %vm3694_vm1, %v370_v46  ;;  %3196 = vmatpush.msk.msrb.mxu0 %vm3698_vm2, %v485_v47 }
 0x124   : > { %3199 = vmatpush.msk.msrb.mxu1 %vm3704_vm4, %v479_v48 }
 0x125   : > { %3186 = vmatpush.msk.msrb.mxu2 %vm3694_vm1, %v366_v28  ;;  %3197 = vmatpush.msk.msrb.mxu0 %vm3698_vm2, %v484_v50  ;;  %v3231_v50 = vld [vmem:[%s4656_s2 + $0x40] sm:$0xff] }
 0x126   : > { %3200 = vmatpush.msk.msrb.mxu1 %vm3704_vm4, %v478_v52  ;;  %3187 = vmatmul.msk.f32.vlgmr.msrb.gmra.mxu2 %vm278_vm0, %v3182_v54 }
 0x127   : > { %3189 = vmatpush.msk.msra.mxu2 %vm3714_vm5, %v355_v51  ;;  %628 = vmatpush.msra.mxu0 %v3627_v19 }
 0x128   : > { %648 = vmatpush.msra.mxu1 %v3641_v21  ;;  %3198 = vmatmul.msk.f32.vlgmr.msrb.gmra.mxu0 %vm278_vm0, %v3195_v53 }
 0x129   : > { %3190 = vmatpush.msk.msra.mxu2 %vm3714_vm5, %v354_v55  ;;  %3201 = vmatmul.msk.f32.vlgmr.msrb.gmra.mxu1 %vm278_vm0, %v3195_v53  ;;  %v731_v57 = vpop.permute.xlu2 %730  ;;  %v548_v58 = vpop.permute.xlu1 %547 }
 0x12a   : > { %629 = vmatpush.msra.mxu0 %v3611_v15  ;;  %649 = vmatpush.msra.mxu1 %v3613_v17  ;;  %v3473_v59 = vpop.permute.xlu0 %3472  ;;  %v740_v60 = vsel %vm732_vm7, %v731_v57, 0.0 }
 0x12b   : > { %v3475_v61 = vunpack.i.h.bf16 %v3473_v59  ;;  %v3474_v62 = vunpack.i.l.bf16 %v3473_v59 }
 0x12c   : > { %3223 = vmatpush.msk.msrb.mxu1 %vm3744_vm8, %v740_v60 }
 0x12d   : > { %v374_v63 = vsel %vm278_vm0, %v370_v46, %v3474_v62  ;;  %v373_v1 = vsel %vm278_vm0, %v366_v28, %v3475_v61 }
 0x12e   : > { %420 = vmatpush.msrb.mxu3 %v374_v63  ;;  %3191 = vmatmul.msk.f32.vlgmr.msra.gmra.mxu2 %vm278_vm0, %v364_v0 }
 0x130   : > { %421 = vmatpush.msrb.mxu3 %v373_v1  ;;  %3210 = vmatmul.msk.f32.vlgmr.msra.gmra.mxu0 %vm278_vm0, %v3209_v2 }
 0x131   : > { %3211 = vmatmul.msk.f32.vlgmr.msra.gmra.mxu1 %vm278_vm0, %v3209_v2  ;;  %3188 = vmatmul.msk.f32.vlgmr.msrb.gmra.mxu3 %vm278_vm0, %v3182_v54  ;;  %v663_v12 = vpop.permute.xlu1 %662  ;;  %v861_v34 = vpop.permute.xlu2 %860 }
 0x132   : > { %3192 = vmatpush.msk.msra.mxu3 %vm3744_vm8, %v349_v6  ;;  %v727_v13 = vpop.permute.xlu0 %726  ;;  %v672_v28 = vsel %vm664_vm10, %v663_v12, 0.0 }
 0x133   : > { %v739_v15 = vsel %vm732_vm7, %v727_v13, 0.0  ;;  %v733_v22 = vsel %vm732_vm7, %v3702_v43, %v727_v13 }
 0x134   : > { %3193 = vmatpush.msk.msra.mxu3 %vm3744_vm8, %v348_v14  ;;  %3224 = vmatpush.msk.msrb.mxu1 %vm3744_vm8, %v739_v15 }
 0x139   : > { %3225 = vmatmul.msk.f32.vlgmr.msrb.gmra.mxu1 %vm278_vm0, %v3219_v16  ;;  %3194 = vmatmul.msk.f32.vlgmr.msra.gmra.mxu3 %vm278_vm0, %v364_v0  ;;  %v729_v17 = vpop.permute.xlu1 %728  ;;  %v859_v43 = vpop.permute.xlu2 %858 }
 0x13a   : > { %v546_v18 = vpop.permute.xlu0 %545  ;;  %v734_v19 = vsel %vm732_vm7, %v729_v17, %v731_v57  ;;  %v871_v51 = vsel %vm864_vm12, %v859_v43, 0.0 }
 0x13b   : > { %v551_v20 = vsel %vm549_vm9, %v546_v18, %v548_v58  ;;  %v557_v21 = vsel %vm549_vm9, 0.0, %v546_v18  ;;  %3220 = vmatpush.msk.msrb.mxu0 %vm3714_vm5, %v734_v19 }
 0x13c   : > { %3203 = vmatpush.msk.msrb.mxu2 %vm3714_vm5, %v557_v21  ;;  %3206 = vmatpush.msk.msrb.mxu3 %vm3744_vm8, %v551_v20 }
 0x13d   : > { %3221 = vmatpush.msk.msrb.mxu0 %vm3714_vm5, %v733_v22 }
 0x13e   : > { %3204 = vmatpush.msk.msrb.mxu2 %vm3714_vm5, %v556_v25  ;;  %3207 = vmatpush.msk.msrb.mxu3 %vm3744_vm8, %v550_v24 }
 0x13f   : > { %3205 = vmatmul.msk.f32.vlgmr.msrb.gmra.mxu2 %vm278_vm0, %v3202_v23  ;;  %3222 = vmatmul.msk.f32.vlgmr.msrb.gmra.mxu0 %vm278_vm0, %v3219_v16 }
 0x140   : > { %3216 = vmatpush.msk.msra.mxu3 %vm3704_vm4, %v672_v28 }
 0x141   : > { %3208 = vmatmul.msk.f32.vlgmr.msrb.gmra.mxu3 %vm278_vm0, %v3202_v23  ;;  %v799_v29 = vpop.permute.xlu1 %798 }
 0x142   : > { %3217 = vmatpush.msk.msra.mxu3 %vm3704_vm4, %v671_v26  ;;  %v661_v30 = vpop.permute.xlu0 %660 }
 0x143   : > { %v666_v31 = vsel %vm664_vm10, %v661_v30, %v663_v12 }
 0x144   : > { %3228 = vmatpush.msk.msrb.mxu3 %vm800_vm11, %v799_v29  ;;  %3213 = vmatpush.msk.msra.mxu2 %vm3698_vm2, %v666_v31 }
 0x146   : > { %3214 = vmatpush.msk.msra.mxu2 %vm3698_vm2, %v665_v33 }
 0x147   : > { %3215 = vmatmul.msk.f32.vlgmr.msra.gmra.mxu2 %vm278_vm0, %v3212_v32 }
 0x149   : > { %3218 = vmatmul.msk.f32.vlgmr.msra.gmra.mxu3 %vm278_vm0, %v3212_v32  ;;  %v795_v35 = vpop.permute.xlu1 %794 }
 0x14a   : > { %v3478_v36 = vpop.permute.xlu0 %3477  ;;  %3229 = vmatpush.msk.msrb.mxu3 %vm800_vm11, %v795_v35 }
 0x14b   : > { %v3480_v37 = vunpack.i.h.bf16 %v3478_v36  ;;  %v3479_v39 = vunpack.i.l.bf16 %v3478_v36  ;;  %v3239_v36 = vld [vmem:[%s4655_s1 + $0x18] sm:$0xff] }
 0x14d   : > { %v802_v40 = vsel %vm800_vm11, %v3479_v39, %v799_v29  ;;  %v801_v38 = vsel %vm800_vm11, %v3480_v37, %v795_v35  ;;  %v3238_v35 = vld [vmem:[%s4655_s1 + $0x10] sm:$0xff] }
 0x14e   : > { %828 = vmatpush.msrb.mxu2 %v802_v40 }
 0x150   : > { %829 = vmatpush.msrb.mxu2 %v801_v38 }
 0x151   : > { %3227 = vmatmul.msk.f32.vlgmr.msrb.gmra.mxu2 %vm278_vm0, %v3226_v27  ;;  %3230 = vmatmul.msk.f32.vlgmr.msrb.gmra.mxu3 %vm278_vm0, %v3226_v27  ;;  %v857_v46 = vpop.permute.xlu1 %856 }
 0x152   : > { %v863_v44 = vpop.permute.xlu0 %862  ;;  %v865_v52 = vsel %vm864_vm12, %v857_v46, %v859_v43 }
 0x153   : > { %v866_v47 = vsel %vm864_vm12, %v861_v34, %v863_v44  ;;  %v872_v48 = vsel %vm864_vm12, %v863_v44, 0.0 }
 0x154   : > { %3232 = vmatpush.msk.msra.mxu0 %vm3698_vm2, %v866_v47  ;;  %3235 = vmatpush.msk.msra.mxu1 %vm3704_vm4, %v872_v48 }
 0x156   : > { %3233 = vmatpush.msk.msra.mxu0 %vm3698_vm2, %v865_v52  ;;  %3236 = vmatpush.msk.msra.mxu1 %vm3704_vm4, %v871_v51 }
 0x157   : > { %3234 = vmatmul.msk.f32.vlgmr.msra.gmra.mxu0 %vm278_vm0, %v3231_v50  ;;  %3237 = vmatmul.msk.f32.vlgmr.msra.gmra.mxu1 %vm278_vm0, %v3231_v50 }
 0x1a5   : > { %v516_v58 = vpop.f32.mrf.mxu0 }
 0x1a6   : > { %v536_v55 = vpop.f32.mrf.mxu1 }
 0x1a9   : > { %v403_v53 = vpop.f32.mrf.mxu2 }
 0x1ad   : > { %v631_v0 = vpop.f32.mrf.mxu0 }
 0x1ae   : > { %v651_v60 = vpop.f32.mrf.mxu1 }
 0x1b1   : > { %v446_v57 = vpop.f32.mrf.mxu2 }
 0x1b2   : > { %v447_v62 = vadd.f32 %v446_v57, %v403_v53 }
 0x1b4   : > { %v423_v54 = vpop.f32.mrf.mxu3  ;;  %v539_v2 = vadd.f32 %v516_v58, %v447_v62 }
 0x1b6   : > { %v787_v14 = vpop.f32.mrf.mxu1 }
 0x1bc   : > { %v466_v59 = vpop.f32.mrf.mxu3  ;;  %v767_v19 = vpop.f32.mrf.mxu0 }
 0x1bd   : > { %v467_v63 = vadd.f32 %v466_v59, %v423_v54 }
 0x1bf   : > { %v540_v6 = vadd.f32 %v536_v55, %v467_v63 }
 0x1c2   : > { %v584_v61 = vpop.f32.mrf.mxu2 }
 0x1c3   : > { %v607_v12 = vadd.f32 %v584_v61, %v539_v2  ;;  %v3245_v2 = vld [vmem:[%s4656_s2 + $0x50] sm:$0xff] }
 0x1c4   : > { %v604_v1 = vpop.f32.mrf.mxu3 }
 0x1c5   : > { %v608_v13 = vadd.f32 %v604_v1, %v540_v6  ;;  %v654_v17 = vadd.f32 %v631_v0, %v607_v12 }
 0x1c7   : > { %v655_v18 = vadd.f32 %v651_v60, %v608_v13 }
 0x1ca   : > { %v699_v15 = vpop.f32.mrf.mxu2 }
 0x1cb   : > { %v722_v20 = vadd.f32 %v699_v15, %v654_v17 }
 0x1cc   : > { %v719_v16 = vpop.f32.mrf.mxu3 }
 0x1cd   : > { %v723_v21 = vadd.f32 %v719_v16, %v655_v18  ;;  %v790_v22 = vadd.f32 %v767_v19, %v722_v20 }
 0x1cf   : > { %v791_v23 = vadd.f32 %v787_v14, %v723_v21 }
 0x1d4   : > { %v831_v24 = vpop.f32.mrf.mxu2  ;;  %v851_v25 = vpop.f32.mrf.mxu3 }
 0x1d5   : > { %v854_v28 = vadd.f32 %v831_v24, %v790_v22  ;;  %v855_v26 = vadd.f32 %v851_v25, %v791_v23  ;;  %v899_v29 = vpop.f32.mrf.mxu0  ;;  %v919_v30 = vpop.f32.mrf.mxu1  ;;  %v3244_v24 = vld [vmem:[%s4656_s2 + $0x48] sm:$0xff] }
 0x1d7   : > { %v3857_v31 = vadd.f32 %v899_v29, %v854_v28  ;;  %v3859_v32 = vadd.f32 %v919_v30, %v855_v26  ;;  %v3258_v28 = vld [vmem:[%s4656_s2 + $0x58] sm:$0xff] }
 0x1d9   : > { %v936_v33 = vmax.f32 %v3857_v31, 0.0  ;;  %v937_v34 = vmax.f32 %v3859_v32, 0.0 }
 0x1db   : > { %961 = vmatpush.msra.mxu2 %v936_v33  ;;  %984 = vmatpush.msra.mxu3 %v937_v34 }
 0x1dd   : > { %962 = vmatpush.msra.mxu2 %v3582_v8  ;;  %985 = vmatpush.msra.mxu3 %v3585_v9 }
 0x1df   : > { %963 = vmatpush.msra.mxu2 %v3588_v10  ;;  %986 = vmatpush.msra.mxu3 %v3591_v11 }
 0x1e0   : > { %3240 = vmatmul.msk.f32.vlgmr.msra.gmra.mxu2 %vm941_vm13, %v3238_v35  ;;  %3242 = vmatmul.msk.f32.vlgmr.msra.gmra.mxu3 %vm941_vm13, %v3238_v35  ;;  %v3265_v35 = vld [vmem:[%s4656_s2 + $0x60] sm:$0xff] }
 0x1e8   : > { %3241 = vmatmul.msk.f32.gmra.mxu2 %vm941_vm13, %v3239_v36  ;;  %3243 = vmatmul.msk.f32.gmra.mxu3 %vm941_vm13, %v3239_v36  ;;  %v3272_v36 = vld [vmem:[%s4656_s2 + $0x68] sm:$0xff] }
 0x263   : > { %v965_v8 = vpop.f32.mrf.mxu2  ;;  %v988_v10 = vpop.f32.mrf.mxu3 }
 0x264   : > { %v3877_v9 = vmax.f32 %v965_v8, 0.0  ;;  %v3885_v11 = vmax.f32 %v988_v10, 0.0 }
 0x266   : > { %1195 = vrot.lane.b32.xlu1 %v3877_v9, %s3522_s6  ;;  %1002 = vrot.lane.b32.xlu0 %v3877_v9, %s3519_s28 }
 0x267   : > { %1024 = vrot.lane.b32.xlu2 %v3877_v9, %s3520_s29 }
 0x26b   : > { %v968_v37 = vpop.f32.mrf.mxu2  ;;  %v991_v40 = vpop.f32.mrf.mxu3 }
 0x26c   : > { %v3893_v39 = vmax.f32 %v968_v37, 0.0  ;;  %v3907_v27 = vmax.f32 %v991_v40, 0.0 }
 0x26e   : > { %1004 = vrot.lane.b32.xlu1 %v3885_v11, %s3519_s28  ;;  %1309 = vrot.lane.b32.xlu0 %v3877_v9, %s3523_s7  ;;  %v3481_v38 = vpack.i.bf16 %v3885_v11, %v3907_v27  ;;  %v3486_v43 = vpack.i.bf16 %v3877_v9, %v3893_v39 }
 0x26f   : > { %1128 = vrot.lane.b32.xlu2 %v3877_v9, %s3521_s30 }
 0x276   : > { %1130 = vrot.lane.b32.xlu0 %v3885_v11, %s3521_s30  ;;  %1006 = vrot.lane.b32.xlu1 %v3893_v39, %s3519_s28 }
 0x277   : > { %1376 = vrot.lane.b32.xlu2 %v3877_v9, %s3524_s8 }
 0x27e   : > { %1378 = vrot.lane.b32.xlu0 %v3885_v11, %s3524_s8  ;;  %1313 = vrot.lane.b32.xlu1 %v3893_v39, %s3523_s7 }
 0x27f   : > { %1197 = vrot.lane.b32.xlu2 %v3885_v11, %s3522_s6 }
 0x286   : > { %3482 = vrot.lane.b32.xlu1 %v3481_v38, %s3520_s29  ;;  %1028 = vrot.lane.b32.xlu0 %v3893_v39, %s3520_s29 }
 0x287   : > { %1199 = vrot.lane.b32.xlu2 %v3893_v39, %s3522_s6 }
 0x28e   : > { %1134 = vrot.lane.b32.xlu1 %v3907_v27, %s3521_s30  ;;  %1132 = vrot.lane.b32.xlu0 %v3893_v39, %s3521_s30 }
 0x28f   : > { %1008 = vrot.lane.b32.xlu2 %v3907_v27, %s3519_s28 }
 0x296   : > { %1311 = vrot.lane.b32.xlu1 %v3885_v11, %s3523_s7  ;;  %1380 = vrot.lane.b32.xlu0 %v3893_v39, %s3524_s8 }
 0x297   : > { %1510 = vrot.lane.b32.xlu2 %v3893_v39, %s3526_s10 }
 0x29e   : > { %1382 = vrot.lane.b32.xlu1 %v3907_v27, %s3524_s8  ;;  %1201 = vrot.lane.b32.xlu0 %v3907_v27, %s3522_s6 }
 0x29f   : > { %1315 = vrot.lane.b32.xlu2 %v3907_v27, %s3523_s7 }
 0x2a6   : > { %1506 = vrot.lane.b32.xlu1 %v3877_v9, %s3526_s10  ;;  %1512 = vrot.lane.b32.xlu0 %v3907_v27, %s3526_s10 }
 0x2a7   : > { %1508 = vrot.lane.b32.xlu2 %v3885_v11, %s3526_s10 }
 0x2ae   : > { %1449 = vrot.lane.b32.xlu1 %v3907_v27, %s3525_s9  ;;  %3487 = vrot.lane.b32.xlu0 %v3486_v43, %s3525_s9  ;;  %v3282_v43 = vld [vmem:[%s4656_s2 + $0x78] sm:$0xff] }
 0x2af   : > { %1445 = vrot.lane.b32.xlu2 %v3885_v11, %s3525_s9 }
 0x2c1   : > { %v1025_v44 = vpop.permute.xlu2 %1024 }
 0x2c9   : > { %v1129_v46 = vpop.permute.xlu2 %1128 }
 0x2ca   : > { %v1142_v25 = vsel %vm477_vm3, 0.0, %v1129_v46 }
 0x2d1   : > { %v3947_v47 = vpop.permute.xlu2 %1376 }
 0x2d8   : > { %v3949_v48 = vpop.permute.xlu1 %1195  ;;  %v1003_v50 = vpop.permute.xlu0 %1002 }
 0x2d9   : > { %v3951_v51 = vpop.permute.xlu2 %1197  ;;  %v1016_v14 = vsel %vm347_vm6, 0.0, %v1003_v50  ;;  %v1209_v20 = vsel %vm549_vm9, 0.0, %v3949_v48 }
 0x2e0   : > { %v1005_v52 = vpop.permute.xlu1 %1004  ;;  %v1310_v53 = vpop.permute.xlu0 %1309 }
 0x2e1   : > { %v3953_v54 = vpop.permute.xlu2 %1199  ;;  %v1010_v17 = vsel %vm347_vm6, %v1003_v50, %v1005_v52 }
 0x2e2   : > { %v1210_v16 = vsel %vm549_vm9, 0.0, %v3953_v54 }
 0x2e8   : > { %v1131_v55 = vpop.permute.xlu0 %1130  ;;  %v1007_v57 = vpop.permute.xlu1 %1006 }
 0x2e9   : > { %v1009_v58 = vpop.permute.xlu2 %1008  ;;  %v1017_v12 = vsel %vm347_vm6, 0.0, %v1007_v57  ;;  %v1136_v26 = vsel %vm477_vm3, %v1129_v46, %v1131_v55  ;;  %v3294_v55 = vld [vmem:[%s4656_s2 + $0x88] sm:$0xff] }
 0x2ea   : > { %v1011_v15 = vsel %vm347_vm6, %v1007_v57, %v1009_v58 }
 0x2f0   : > { %v3955_v59 = vpop.permute.xlu0 %1378  ;;  %v1314_v60 = vpop.permute.xlu1 %1313 }
 0x2f1   : > { %v3957_v61 = vpop.permute.xlu2 %1510  ;;  %v1384_v40 = vsel %vm732_vm7, %v3947_v47, %v3955_v59  ;;  %v1390_v38 = vsel %vm732_vm7, %v3955_v59, 0.0 }
 0x2f8   : > { %v3483_v62 = vpop.permute.xlu1 %3482  ;;  %v1029_v63 = vpop.permute.xlu0 %1028 }
 0x2f9   : > { %v3485_v0 = vunpack.i.h.bf16 %v3483_v62  ;;  %v3484_v1 = vunpack.i.l.bf16 %v3483_v62  ;;  %3247 = vmatpush.msk.msrb.mxu0 %vm3694_vm1, %v1029_v63  ;;  %v1316_v21 = vpop.permute.xlu2 %1315  ;;  %v3289_v62 = vld [vmem:[%s4656_s2 + $0x80] sm:$0xff] }
 0x2fa   : > { %v1318_v29 = vsel %vm664_vm10, %v1314_v60, %v1316_v21 }
 0x2fb   : > { %v1033_v6 = vsel %vm278_vm0, %v1029_v63, %v3484_v1  ;;  %3249 = vmatpush.msk.msrb.mxu0 %vm3694_vm1, %v1025_v44  ;;  %v1032_v13 = vsel %vm278_vm0, %v1025_v44, %v3485_v0  ;;  %v1324_v44 = vsel %vm664_vm10, %v1316_v21, 0.0 }
 0x2fc   : > { %3250 = vmatmul.msk.f32.vlgmr.msrb.gmra.mxu0 %vm278_vm0, %v3245_v2  ;;  %1079 = vmatpush.msrb.mxu1 %v1033_v6 }
 0x2fd   : > { %3252 = vmatpush.msk.msra.mxu0 %vm3714_vm5, %v1017_v12 }
 0x2fe   : > { %1080 = vmatpush.msrb.mxu1 %v1032_v13 }
 0x2ff   : > { %3253 = vmatpush.msk.msra.mxu0 %vm3714_vm5, %v1016_v14  ;;  %3251 = vmatmul.msk.f32.vlgmr.msrb.gmra.mxu1 %vm278_vm0, %v3245_v2 }
 0x300   : > { %3255 = vmatpush.msk.msra.mxu1 %vm3744_vm8, %v1011_v15  ;;  %v1135_v18 = vpop.permute.xlu1 %1134  ;;  %v1133_v19 = vpop.permute.xlu0 %1132 }
 0x301   : > { %3266 = vmatpush.msk.msrb.mxu0 %vm3714_vm5, %v1210_v16  ;;  %v1137_v22 = vsel %vm477_vm3, %v1133_v19, %v1135_v18  ;;  %v1143_v23 = vsel %vm477_vm3, 0.0, %v1133_v19  ;;  %v1509_v46 = vpop.permute.xlu2 %1508 }
 0x302   : > { %3256 = vmatpush.msk.msra.mxu1 %vm3744_vm8, %v1010_v17  ;;  %3259 = vmatpush.msk.msrb.mxu2 %vm3698_vm2, %v1143_v23 }
 0x303   : > { %3267 = vmatpush.msk.msrb.mxu0 %vm3714_vm5, %v1209_v20  ;;  %3262 = vmatpush.msk.msrb.mxu3 %vm3704_vm4, %v1137_v22 }
 0x304   : > { %3254 = vmatmul.msk.f32.vlgmr.msra.gmra.mxu0 %vm278_vm0, %v3244_v24  ;;  %3260 = vmatpush.msk.msrb.mxu2 %vm3698_vm2, %v1142_v25 }
 0x305   : > { %3263 = vmatpush.msk.msrb.mxu3 %vm3704_vm4, %v1136_v26  ;;  %3276 = vmatpush.msk.msra.mxu0 %vm3698_vm2, %v1318_v29 }
 0x306   : > { %3261 = vmatmul.msk.f32.vlgmr.msrb.gmra.mxu2 %vm278_vm0, %v3258_v28  ;;  %3264 = vmatmul.msk.f32.vlgmr.msrb.gmra.mxu3 %vm278_vm0, %v3258_v28 }
 0x307   : > { %1301 = vmatpush.msra.mxu3 %v3907_v27  ;;  %1281 = vmatpush.msra.mxu2 %v3893_v39  ;;  %v1203_v39 = vsel %vm549_vm9, %v3949_v48, %v3951_v51  ;;  %v3275_v27 = vld [vmem:[%s4656_s2 + $0x70] sm:$0xff] }
 0x308   : > { %v1312_v30 = vpop.permute.xlu1 %1311  ;;  %v1381_v33 = vpop.permute.xlu0 %1380  ;;  %3257 = vmatmul.msk.f32.vlgmr.msra.gmra.mxu1 %vm278_vm0, %v3244_v24 }
 0x309   : > { %1302 = vmatpush.msra.mxu3 %v3885_v11  ;;  %1282 = vmatpush.msra.mxu2 %v3877_v9  ;;  %v1317_v34 = vsel %vm664_vm10, %v1310_v53, %v1312_v30  ;;  %v1323_v47 = vsel %vm664_vm10, %v1312_v30, 0.0  ;;  %v1520_v53 = vsel %vm864_vm12, %v1509_v46, 0.0 }
 0x30a   : > { %3277 = vmatpush.msk.msra.mxu0 %vm3698_vm2, %v1317_v34 }
 0x30c   : > { %3268 = vmatmul.msk.f32.vlgmr.msrb.gmra.mxu0 %vm278_vm0, %v3265_v35 }
 0x30e   : > { %3273 = vmatmul.msk.f32.vlgmr.msra.gmra.mxu2 %vm278_vm0, %v3272_v36  ;;  %3274 = vmatmul.msk.f32.vlgmr.msra.gmra.mxu3 %vm278_vm0, %v3272_v36 }
 0x310   : > { %v1383_v8 = vpop.permute.xlu1 %1382  ;;  %v1202_v9 = vpop.permute.xlu0 %1201 }
 0x311   : > { %v1385_v10 = vsel %vm732_vm7, %v1381_v33, %v1383_v8  ;;  %v1391_v11 = vsel %vm732_vm7, %v1383_v8, 0.0  ;;  %v1204_v37 = vsel %vm549_vm9, %v3953_v54, %v1202_v9 }
 0x312   : > { %3269 = vmatpush.msk.msrb.mxu1 %vm3744_vm8, %v1204_v37  ;;  %3283 = vmatpush.msk.msrb.mxu2 %vm3714_vm5, %v1385_v10 }
 0x313   : > { %3286 = vmatpush.msk.msrb.mxu3 %vm3744_vm8, %v1391_v11 }
 0x314   : > { %3270 = vmatpush.msk.msrb.mxu1 %vm3744_vm8, %v1203_v39  ;;  %3284 = vmatpush.msk.msrb.mxu2 %vm3714_vm5, %v1384_v40 }
 0x315   : > { %3287 = vmatpush.msk.msrb.mxu3 %vm3744_vm8, %v1390_v38  ;;  %3271 = vmatmul.msk.f32.vlgmr.msrb.gmra.mxu1 %vm278_vm0, %v3265_v35 }
 0x316   : > { %3278 = vmatmul.msk.f32.vlgmr.msra.gmra.mxu0 %vm278_vm0, %v3275_v27  ;;  %3279 = vmatpush.msk.msra.mxu1 %vm3704_vm4, %v1324_v44 }
 0x317   : > { %3285 = vmatmul.msk.f32.vlgmr.msrb.gmra.mxu2 %vm278_vm0, %v3282_v43  ;;  %3288 = vmatmul.msk.f32.vlgmr.msrb.gmra.mxu3 %vm278_vm0, %v3282_v43  ;;  %v1575_v43 = vld [vmem:[%s4657_s3] sm:$0xff] }
 0x318   : > { %3280 = vmatpush.msk.msra.mxu1 %vm3704_vm4, %v1323_v47  ;;  %v1507_v48 = vpop.permute.xlu1 %1506  ;;  %v1513_v50 = vpop.permute.xlu0 %1512 }
 0x319   : > { %v1515_v51 = vsel %vm864_vm12, %v3957_v61, %v1513_v50  ;;  %v1521_v52 = vsel %vm864_vm12, %v1513_v50, 0.0  ;;  %v1514_v54 = vsel %vm864_vm12, %v1507_v48, %v1509_v46  ;;  %v1446_v61 = vpop.permute.xlu2 %1445 }
 0x31a   : > { %3295 = vmatpush.msk.msra.mxu2 %vm3698_vm2, %v1515_v51  ;;  %3298 = vmatpush.msk.msra.mxu3 %vm3704_vm4, %v1521_v52 }
 0x31c   : > { %3296 = vmatpush.msk.msra.mxu2 %vm3698_vm2, %v1514_v54  ;;  %3299 = vmatpush.msk.msra.mxu3 %vm3704_vm4, %v1520_v53 }
 0x31d   : > { %3281 = vmatmul.msk.f32.vlgmr.msra.gmra.mxu1 %vm278_vm0, %v3275_v27 }
 0x31f   : > { %3300 = vmatmul.msk.f32.vlgmr.msra.gmra.mxu3 %vm278_vm0, %v3294_v55  ;;  %3297 = vmatmul.msk.f32.vlgmr.msra.gmra.mxu2 %vm278_vm0, %v3294_v55 }
 0x320   : > { %v1450_v57 = vpop.permute.xlu1 %1449  ;;  %v3488_v58 = vpop.permute.xlu0 %3487 }
 0x321   : > { %v3490_v59 = vunpack.i.h.bf16 %v3488_v58  ;;  %v3489_v60 = vunpack.i.l.bf16 %v3488_v58  ;;  %3291 = vmatpush.msk.msrb.mxu1 %vm800_vm11, %v1450_v57 }
 0x323   : > { %3292 = vmatpush.msk.msrb.mxu1 %vm800_vm11, %v1446_v61  ;;  %v1452_v63 = vsel %vm800_vm11, %v3489_v60, %v1450_v57  ;;  %v1451_v0 = vsel %vm800_vm11, %v3490_v59, %v1446_v61  ;;  %v3305_v57 = vld [vmem:[%s4655_s1 + $0x20] sm:$0xff]  ;;  %v3306_v59 = vld [vmem:[%s4655_s1 + $0x28] sm:$0xff] }
 0x324   : > { %1478 = vmatpush.msrb.mxu0 %v1452_v63 }
 0x325   : > { %3293 = vmatmul.msk.f32.vlgmr.msrb.gmra.mxu1 %vm278_vm0, %v3289_v62 }
 0x326   : > { %1479 = vmatpush.msrb.mxu0 %v1451_v0 }
 0x327   : > { %3290 = vmatmul.msk.f32.vlgmr.msrb.gmra.mxu0 %vm278_vm0, %v3289_v62 }
 0x379   : > { %v1062_v1 = vpop.f32.mrf.mxu0 }
 0x37c   : > { %v1082_v2 = vpop.f32.mrf.mxu1 }
 0x381   : > { %v1105_v6 = vpop.f32.mrf.mxu0 }
 0x382   : > { %v1106_v20 = vadd.f32 %v1105_v6, %v1062_v1 }
 0x385   : > { %v1125_v12 = vpop.f32.mrf.mxu1 }
 0x386   : > { %v1126_v15 = vadd.f32 %v1125_v12, %v1082_v2 }
 0x389   : > { %v1170_v13 = vpop.f32.mrf.mxu2  ;;  %v1190_v14 = vpop.f32.mrf.mxu3 }
 0x38a   : > { %v1237_v16 = vpop.f32.mrf.mxu0  ;;  %v1194_v21 = vadd.f32 %v1190_v14, %v1126_v15  ;;  %v1193_v22 = vadd.f32 %v1170_v13, %v1106_v20 }
 0x38c   : > { %v1260_v25 = vadd.f32 %v1237_v16, %v1193_v22 }
 0x391   : > { %v1284_v17 = vpop.f32.mrf.mxu2  ;;  %v1304_v19 = vpop.f32.mrf.mxu3 }
 0x392   : > { %v1257_v18 = vpop.f32.mrf.mxu1  ;;  %v1307_v33 = vadd.f32 %v1284_v17, %v1260_v25 }
 0x393   : > { %v1261_v23 = vadd.f32 %v1257_v18, %v1194_v21  ;;  %v1351_v29 = vpop.f32.mrf.mxu0 }
 0x394   : > { %v1374_v35 = vadd.f32 %v1351_v29, %v1307_v33 }
 0x395   : > { %v1308_v28 = vadd.f32 %v1304_v19, %v1261_v23  ;;  %v3312_v23 = vld [vmem:[%s4656_s2 + $0x98] sm:$0xff] }
 0x39a   : > { %v1371_v24 = vpop.f32.mrf.mxu1  ;;  %v1438_v26 = vpop.f32.mrf.mxu3 }
 0x39b   : > { %v1418_v30 = vpop.f32.mrf.mxu2  ;;  %v1375_v34 = vadd.f32 %v1371_v24, %v1308_v28 }
 0x39c   : > { %v1441_v9 = vadd.f32 %v1418_v30, %v1374_v35  ;;  %v3311_v30 = vld [vmem:[%s4656_s2 + $0x90] sm:$0xff]  ;;  %v3325_v35 = vld [vmem:[%s4656_s2 + $0xa0] sm:$0xff] }
 0x39d   : > { %v1442_v36 = vadd.f32 %v1438_v26, %v1375_v34 }
 0x3a2   : > { %v1501_v8 = vpop.f32.mrf.mxu1  ;;  %v1568_v11 = vpop.f32.mrf.mxu3 }
 0x3a3   : > { %v1505_v10 = vadd.f32 %v1501_v8, %v1442_v36  ;;  %v1548_v39 = vpop.f32.mrf.mxu2 }
 0x3a4   : > { %v1481_v37 = vpop.f32.mrf.mxu0 }
 0x3a5   : > { %v1504_v40 = vadd.f32 %v1481_v37, %v1441_v9  ;;  %v1572_v27 = vadd.f32 %v1568_v11, %v1505_v10  ;;  %v3332_v37 = vld [vmem:[%s4656_s2 + $0xa8] sm:$0xff] }
 0x3a7   : > { %v1571_v38 = vadd.f32 %v1548_v39, %v1504_v40  ;;  %1627 = vmatpush.msra.mxu1 %v1572_v27  ;;  %v3339_v27 = vld [vmem:[%s4656_s2 + $0xb0] sm:$0xff] }
 0x3a9   : > { %1604 = vmatpush.msra.mxu0 %v1571_v38  ;;  %1628 = vmatpush.msra.mxu1 %v3859_v32 }
 0x3ab   : > { %1605 = vmatpush.msra.mxu0 %v3857_v31  ;;  %1629 = vmatpush.msra.mxu1 %v3575_v4  ;;  %v1576_v31 = vld [vmem:[%s4657_s3 + $0x8] sm:$0xff] }
 0x3ad   : > { %1606 = vmatpush.msra.mxu0 %v3573_v3  ;;  %1630 = vmatpush.msra.mxu1 %v3579_v7 }
 0x3ae   : > { %3303 = vmatmul.msk.f32.vlgmr.msra.gmra.mxu1 %vm1585_vm14, %v1575_v43 }
 0x3af   : > { %1607 = vmatpush.msra.mxu0 %v3577_v5 }
 0x3b0   : > { %3301 = vmatmul.msk.f32.vlgmr.msra.gmra.mxu0 %vm1585_vm14, %v1575_v43 }
 0x3b6   : > { %3304 = vmatmul.msk.f32.gmra.mxu1 %vm1585_vm14, %v1576_v31 }
 0x3b8   : > { %3302 = vmatmul.msk.f32.gmra.mxu0 %vm1585_vm14, %v1576_v31 }
 0x42b   : > { %v1632_v32 = vpop.f32.mrf.mxu1 }
 0x42c   : > { %v4116_v46 = vadd.f32 %v1632_v32, %v3579_v7 }
 0x42d   : > { %v1609_v44 = vpop.f32.mrf.mxu0 }
 0x42e   : > { %v4122_v51 = vadd.f32 %v1609_v44, %v3577_v5  ;;  %v1649_v54 = vmax.f32 %v4116_v46, 0.0 }
 0x430   : > { %v1648_v58 = vmax.f32 %v4122_v51, 0.0 }
 0x433   : > { %v1635_v47 = vpop.f32.mrf.mxu1 }
 0x434   : > { %v4119_v48 = vadd.f32 %v1635_v47, %v3575_v4 }
 0x435   : > { %v1612_v50 = vpop.f32.mrf.mxu0 }
 0x436   : > { %v4125_v52 = vadd.f32 %v1612_v50, %v3573_v3  ;;  %v1651_v53 = vmax.f32 %v4119_v48, 0.0 }
 0x438   : > { %1698 = vmatpush.msrb.mxu3 %v1651_v53  ;;  %v1650_v55 = vmax.f32 %v4125_v52, 0.0 }
 0x43a   : > { %1675 = vmatpush.msrb.mxu2 %v1650_v55  ;;  %1699 = vmatpush.msrb.mxu3 %v1649_v54 }
 0x43b   : > { %3309 = vmatmul.msk.f32.vlgmr.msrb.gmra.mxu3 %vm278_vm0, %v3305_v57 }
 0x43c   : > { %1676 = vmatpush.msrb.mxu2 %v1648_v58 }
 0x43d   : > { %3307 = vmatmul.msk.f32.vlgmr.msrb.gmra.mxu2 %vm278_vm0, %v3305_v57 }
 0x443   : > { %3310 = vmatmul.msk.f32.gmra.mxu3 %vm278_vm0, %v3306_v59 }
 0x445   : > { %3308 = vmatmul.msk.f32.gmra.mxu2 %vm278_vm0, %v3306_v59 }
 0x4be   : > { %v1701_v62 = vpop.f32.mrf.mxu3 }
 0x4bf   : > { %v4157_v63 = vmax.f32 %v1701_v62, 0.0 }
 0x4c0   : > { %v1678_v60 = vpop.f32.mrf.mxu2 }
 0x4c1   : > { %v4149_v61 = vmax.f32 %v1678_v60, 0.0 }
 0x4c3   : > { %1841 = vrot.lane.b32.xlu2 %v4149_v61, %s3521_s30  ;;  %1737 = vrot.lane.b32.xlu0 %v4149_v61, %s3520_s29 }
 0x4c4   : > { %1715 = vrot.lane.b32.xlu1 %v4149_v61, %s3519_s28 }
 0x4c6   : > { %v1704_v2 = vpop.f32.mrf.mxu3 }
 0x4c7   : > { %v4169_v6 = vmax.f32 %v1704_v2, 0.0 }
 0x4c8   : > { %v1681_v0 = vpop.f32.mrf.mxu2 }
 0x4c9   : > { %v1709_v1 = vmax.f32 %v1681_v0, 0.0  ;;  %v3491_v12 = vpack.i.bf16 %v4157_v63, %v4169_v6 }
 0x4cb   : > { %2022 = vrot.lane.b32.xlu2 %v4149_v61, %s3523_s7  ;;  %1843 = vrot.lane.b32.xlu0 %v4157_v63, %s3521_s30  ;;  %v3496_v13 = vpack.i.bf16 %v4149_v61, %v1709_v1 }
 0x4cc   : > { %1908 = vrot.lane.b32.xlu1 %v4149_v61, %s3522_s6 }
 0x4d3   : > { %1717 = vrot.lane.b32.xlu2 %v4157_v63, %s3519_s28  ;;  %1719 = vrot.lane.b32.xlu0 %v1709_v1, %s3519_s28 }
 0x4d4   : > { %1845 = vrot.lane.b32.xlu1 %v1709_v1, %s3521_s30 }
 0x4db   : > { %1910 = vrot.lane.b32.xlu2 %v4157_v63, %s3522_s6  ;;  %1912 = vrot.lane.b32.xlu0 %v1709_v1, %s3522_s6 }
 0x4dc   : > { %1721 = vrot.lane.b32.xlu1 %v4169_v6, %s3519_s28 }
 0x4e3   : > { %1741 = vrot.lane.b32.xlu2 %v1709_v1, %s3520_s29  ;;  %2026 = vrot.lane.b32.xlu0 %v1709_v1, %s3523_s7 }
 0x4e4   : > { %2093 = vrot.lane.b32.xlu1 %v1709_v1, %s3524_s8 }
 0x4eb   : > { %1847 = vrot.lane.b32.xlu2 %v4169_v6, %s3521_s30  ;;  %3492 = vrot.lane.b32.xlu0 %v3491_v12, %s3520_s29 }
 0x4ec   : > { %1914 = vrot.lane.b32.xlu1 %v4169_v6, %s3522_s6 }
 0x4f3   : > { %2089 = vrot.lane.b32.xlu2 %v4149_v61, %s3524_s8  ;;  %2024 = vrot.lane.b32.xlu0 %v4157_v63, %s3523_s7 }
 0x4f4   : > { %2028 = vrot.lane.b32.xlu1 %v4169_v6, %s3523_s7 }
 0x4fb   : > { %2095 = vrot.lane.b32.xlu2 %v4169_v6, %s3524_s8  ;;  %3497 = vrot.lane.b32.xlu0 %v3496_v13, %s3525_s9 }
 0x4fc   : > { %2162 = vrot.lane.b32.xlu1 %v4169_v6, %s3525_s9 }
 0x503   : > { %2223 = vrot.lane.b32.xlu2 %v1709_v1, %s3526_s10  ;;  %2091 = vrot.lane.b32.xlu0 %v4157_v63, %s3524_s8 }
 0x504   : > { %2158 = vrot.lane.b32.xlu1 %v4157_v63, %s3525_s9 }
 0x50b   : > { %2221 = vrot.lane.b32.xlu2 %v4157_v63, %s3526_s10  ;;  %2225 = vrot.lane.b32.xlu0 %v4169_v6, %s3526_s10 }
 0x50c   : > { %2219 = vrot.lane.b32.xlu1 %v4149_v61, %s3526_s10 }
 0x51d   : > { %v4209_v14 = vpop.permute.xlu2 %1841 }
 0x51e   : > { %v1855_v34 = vsel %vm477_vm3, 0.0, %v4209_v14 }
 0x525   : > { %v4211_v15 = vpop.permute.xlu2 %2022 }
 0x52d   : > { %v1718_v16 = vpop.permute.xlu2 %1717 }
 0x535   : > { %v1911_v17 = vpop.permute.xlu2 %1910  ;;  %v1738_v18 = vpop.permute.xlu0 %1737 }
 0x536   : > { %v1716_v19 = vpop.permute.xlu1 %1715 }
 0x537   : > { %v1729_v33 = vsel %vm347_vm6, 0.0, %v1716_v19  ;;  %v1723_v40 = vsel %vm347_vm6, %v1716_v19, %v1718_v16 }
 0x53d   : > { %v4213_v20 = vpop.permute.xlu0 %1843  ;;  %v1742_v21 = vpop.permute.xlu2 %1741 }
 0x53e   : > { %v1909_v22 = vpop.permute.xlu1 %1908  ;;  %3314 = vmatpush.msk.msrb.mxu0 %vm3694_vm1, %v1742_v21  ;;  %v1849_v2 = vsel %vm477_vm3, %v4209_v14, %v4213_v20 }
 0x53f   : > { %v1922_v39 = vsel %vm549_vm9, 0.0, %v1909_v22 }
 0x540   : > { %3316 = vmatpush.msk.msrb.mxu0 %vm3694_vm1, %v1738_v18 }
 0x541   : > { %3317 = vmatmul.msk.f32.vlgmr.msrb.gmra.mxu0 %vm278_vm0, %v3312_v23 }
 0x545   : > { %v1848_v24 = vpop.permute.xlu2 %1847  ;;  %v1720_v25 = vpop.permute.xlu0 %1719 }
 0x546   : > { %v1846_v28 = vpop.permute.xlu1 %1845  ;;  %v1730_v26 = vsel %vm347_vm6, 0.0, %v1720_v25 }
 0x547   : > { %v1856_v29 = vsel %vm477_vm3, 0.0, %v1846_v28  ;;  %3319 = vmatpush.msk.msra.mxu2 %vm3714_vm5, %v1730_v26  ;;  %v1850_v0 = vsel %vm477_vm3, %v1846_v28, %v1848_v24  ;;  %v3349_v26 = vld [vmem:[%s4656_s2 + $0xc0] sm:$0xff] }
 0x548   : > { %3326 = vmatpush.msk.msra.mxu0 %vm3698_vm2, %v1856_v29  ;;  %v3356_v29 = vld [vmem:[%s4656_s2 + $0xc8] sm:$0xff] }
 0x549   : > { %3320 = vmatpush.msk.msra.mxu2 %vm3714_vm5, %v1729_v33 }
 0x54a   : > { %3327 = vmatpush.msk.msra.mxu0 %vm3698_vm2, %v1855_v34  ;;  %3321 = vmatmul.msk.f32.vlgmr.msra.gmra.mxu2 %vm278_vm0, %v3311_v30 }
 0x54b   : > { %3328 = vmatmul.msk.f32.vlgmr.msra.gmra.mxu0 %vm278_vm0, %v3325_v35 }
 0x54c   : > { %1994 = vmatpush.msrb.mxu0 %v1709_v1 }
 0x54d   : > { %v4245_v36 = vpop.permute.xlu2 %2089  ;;  %v1913_v8 = vpop.permute.xlu0 %1912 }
 0x54e   : > { %1995 = vmatpush.msrb.mxu0 %v4149_v61  ;;  %v1722_v9 = vpop.permute.xlu1 %1721  ;;  %v1923_v10 = vsel %vm549_vm9, 0.0, %v1913_v8  ;;  %v1916_v61 = vsel %vm549_vm9, %v1909_v22, %v1911_v17  ;;  %v3342_v17 = vld [vmem:[%s4656_s2 + $0xb8] sm:$0xff] }
 0x54f   : > { %v1724_v11 = vsel %vm347_vm6, %v1720_v25, %v1722_v9  ;;  %3333 = vmatpush.msk.msrb.mxu2 %vm3714_vm5, %v1923_v10  ;;  %v3361_v9 = vld [vmem:[%s4656_s2 + $0xd0] sm:$0xff] }
 0x550   : > { %3322 = vmatpush.msk.msra.mxu3 %vm3744_vm8, %v1724_v11 }
 0x551   : > { %3334 = vmatpush.msk.msrb.mxu2 %vm3714_vm5, %v1922_v39 }
 0x552   : > { %3323 = vmatpush.msk.msra.mxu3 %vm3744_vm8, %v1723_v40  ;;  %3335 = vmatmul.msk.f32.vlgmr.msrb.gmra.mxu2 %vm278_vm0, %v3332_v37 }
 0x553   : > { %3324 = vmatmul.msk.f32.vlgmr.msra.gmra.mxu3 %vm278_vm0, %v3311_v30  ;;  %3340 = vmatmul.msk.f32.vlgmr.msrb.gmra.mxu0 %vm278_vm0, %v3339_v27 }
 0x555   : > { %v2096_v38 = vpop.permute.xlu2 %2095  ;;  %v2027_v43 = vpop.permute.xlu0 %2026 }
 0x556   : > { %v2094_v31 = vpop.permute.xlu1 %2093 }
 0x557   : > { %v2098_v32 = vsel %vm732_vm7, %v2094_v31, %v2096_v38 }
 0x558   : > { %3350 = vmatpush.msk.msra.mxu0 %vm3714_vm5, %v2098_v32 }
 0x55d   : > { %v3493_v44 = vpop.permute.xlu0 %3492 }
 0x55e   : > { %v1915_v47 = vpop.permute.xlu1 %1914  ;;  %v3495_v50 = vunpack.i.h.bf16 %v3493_v44  ;;  %v3494_v57 = vunpack.i.l.bf16 %v3493_v44 }
 0x55f   : > { %v1917_v59 = vsel %vm549_vm9, %v1913_v8, %v1915_v47 }
 0x560   : > { %3336 = vmatpush.msk.msrb.mxu3 %vm3744_vm8, %v1917_v59  ;;  %v1746_v60 = vsel %vm278_vm0, %v1742_v21, %v3494_v57  ;;  %v1745_v62 = vsel %vm278_vm0, %v1738_v18, %v3495_v50  ;;  %v2224_v21 = vpop.permute.xlu2 %2223 }
 0x561   : > { %1792 = vmatpush.msrb.mxu1 %v1746_v60 }
 0x562   : > { %3337 = vmatpush.msk.msrb.mxu3 %vm3744_vm8, %v1916_v61 }
 0x563   : > { %1793 = vmatpush.msrb.mxu1 %v1745_v62  ;;  %3338 = vmatmul.msk.f32.vlgmr.msrb.gmra.mxu3 %vm278_vm0, %v3332_v37 }
 0x564   : > { %3318 = vmatmul.msk.f32.vlgmr.msrb.gmra.mxu1 %vm278_vm0, %v3312_v23 }
 0x565   : > { %3329 = vmatpush.msk.msra.mxu1 %vm3704_vm4, %v1850_v0  ;;  %v2025_v1 = vpop.permute.xlu0 %2024 }
 0x566   : > { %v2029_v12 = vpop.permute.xlu1 %2028  ;;  %v2030_v14 = vsel %vm664_vm10, %v4211_v15, %v2025_v1  ;;  %v2036_v18 = vsel %vm664_vm10, %v2025_v1, 0.0 }
 0x567   : > { %v2031_v13 = vsel %vm664_vm10, %v2027_v43, %v2029_v12  ;;  %v2037_v16 = vsel %vm664_vm10, %v2029_v12, 0.0  ;;  %3330 = vmatpush.msk.msra.mxu1 %vm3704_vm4, %v1849_v2 }
 0x568   : > { %3343 = vmatpush.msk.msra.mxu2 %vm3698_vm2, %v2031_v13  ;;  %3346 = vmatpush.msk.msra.mxu3 %vm3704_vm4, %v2037_v16  ;;  %v2222_v33 = vpop.permute.xlu2 %2221 }
 0x569   : > { %2014 = vmatpush.msrb.mxu1 %v4169_v6  ;;  %v2104_v6 = vsel %vm732_vm7, %v2096_v38, 0.0  ;;  %v2233_v10 = vsel %vm864_vm12, %v2222_v33, 0.0 }
 0x56a   : > { %3344 = vmatpush.msk.msra.mxu2 %vm3698_vm2, %v2030_v14  ;;  %3347 = vmatpush.msk.msra.mxu3 %vm3704_vm4, %v2036_v18 }
 0x56b   : > { %2015 = vmatpush.msrb.mxu1 %v4157_v63  ;;  %3345 = vmatmul.msk.f32.vlgmr.msra.gmra.mxu2 %vm278_vm0, %v3342_v17 }
 0x56c   : > { %3331 = vmatmul.msk.f32.vlgmr.msra.gmra.mxu1 %vm278_vm0, %v3325_v35  ;;  %3348 = vmatmul.msk.f32.vlgmr.msra.gmra.mxu3 %vm278_vm0, %v3342_v17 }
 0x56d   : > { %3353 = vmatpush.msk.msra.mxu1 %vm3744_vm8, %v2104_v6  ;;  %v3498_v15 = vpop.permute.xlu0 %3497 }
 0x56e   : > { %v2163_v19 = vpop.permute.xlu1 %2162  ;;  %v3499_v63 = vunpack.i.l.bf16 %v3498_v15  ;;  %v3500_v22 = vunpack.i.h.bf16 %v3498_v15 }
 0x56f   : > { %3358 = vmatpush.msk.msrb.mxu3 %vm800_vm11, %v2163_v19 }
 0x570   : > { %v2165_v20 = vsel %vm800_vm11, %v3499_v63, %v2163_v19 }
 0x571   : > { %2191 = vmatpush.msrb.mxu2 %v2165_v20 }
 0x574   : > { %3341 = vmatmul.msk.f32.vlgmr.msrb.gmra.mxu1 %vm278_vm0, %v3339_v27 }
 0x575   : > { %v2092_v23 = vpop.permute.xlu0 %2091 }
 0x576   : > { %v2159_v24 = vpop.permute.xlu1 %2158  ;;  %v2097_v25 = vsel %vm732_vm7, %v4245_v36, %v2092_v23  ;;  %v2103_v28 = vsel %vm732_vm7, %v2092_v23, 0.0 }
 0x577   : > { %3359 = vmatpush.msk.msrb.mxu3 %vm800_vm11, %v2159_v24  ;;  %3351 = vmatpush.msk.msra.mxu0 %vm3714_vm5, %v2097_v25  ;;  %v2164_v30 = vsel %vm800_vm11, %v3500_v22, %v2159_v24 }
 0x578   : > { %3354 = vmatpush.msk.msra.mxu1 %vm3744_vm8, %v2103_v28  ;;  %2192 = vmatpush.msrb.mxu2 %v2164_v30 }
 0x579   : > { %3352 = vmatmul.msk.f32.vlgmr.msra.gmra.mxu0 %vm278_vm0, %v3349_v26  ;;  %3357 = vmatmul.msk.f32.vlgmr.msrb.gmra.mxu2 %vm278_vm0, %v3356_v29 }
 0x57a   : > { %3360 = vmatmul.msk.f32.vlgmr.msrb.gmra.mxu3 %vm278_vm0, %v3356_v29 }
 0x57c   : > { %3355 = vmatmul.msk.f32.vlgmr.msra.gmra.mxu1 %vm278_vm0, %v3349_v26  ;;  %v3368_v26 = vld [vmem:[%s4655_s1 + $0x30] sm:$0xff] }
 0x57d   : > { %v2226_v34 = vpop.permute.xlu0 %2225 }
 0x57e   : > { %v2220_v35 = vpop.permute.xlu1 %2219  ;;  %v2228_v36 = vsel %vm864_vm12, %v2224_v21, %v2226_v34  ;;  %v2234_v8 = vsel %vm864_vm12, %v2226_v34, 0.0 }
 0x57f   : > { %3362 = vmatpush.msk.msrb.mxu0 %vm3698_vm2, %v2228_v36  ;;  %3365 = vmatpush.msk.msrb.mxu1 %vm3704_vm4, %v2234_v8  ;;  %v2227_v11 = vsel %vm864_vm12, %v2220_v35, %v2222_v33 }
 0x581   : > { %3363 = vmatpush.msk.msrb.mxu0 %vm3698_vm2, %v2227_v11  ;;  %3366 = vmatpush.msk.msrb.mxu1 %vm3704_vm4, %v2233_v10 }
 0x582   : > { %3364 = vmatmul.msk.f32.vlgmr.msrb.gmra.mxu0 %vm278_vm0, %v3361_v9 }
 0x584   : > { %3367 = vmatmul.msk.f32.vlgmr.msrb.gmra.mxu1 %vm278_vm0, %v3361_v9 }
 0x5be   : > { %v1775_v37 = vpop.f32.mrf.mxu0 }
 0x5c8   : > { %v1883_v38 = vpop.f32.mrf.mxu0 }
 0x5cd   : > { %v1818_v27 = vpop.f32.mrf.mxu2 }
 0x5ce   : > { %v1819_v32 = vadd.f32 %v1818_v27, %v1775_v37 }
 0x5d0   : > { %v1997_v50 = vpop.f32.mrf.mxu0  ;;  %v1906_v57 = vadd.f32 %v1883_v38, %v1819_v32 }
 0x5d5   : > { %v1950_v47 = vpop.f32.mrf.mxu2 }
 0x5d6   : > { %v1838_v39 = vpop.f32.mrf.mxu3  ;;  %v1973_v62 = vadd.f32 %v1950_v47, %v1906_v57 }
 0x5d8   : > { %v2020_v13 = vadd.f32 %v1997_v50, %v1973_v62 }
 0x5e1   : > { %v1795_v40 = vpop.f32.mrf.mxu1 }
 0x5e2   : > { %v1839_v44 = vadd.f32 %v1838_v39, %v1795_v40 }
 0x5e6   : > { %v1970_v31 = vpop.f32.mrf.mxu3 }
 0x5e9   : > { %v1903_v43 = vpop.f32.mrf.mxu1 }
 0x5ea   : > { %v1907_v59 = vadd.f32 %v1903_v43, %v1839_v44 }
 0x5ec   : > { %v1974_v0 = vadd.f32 %v1970_v31, %v1907_v59 }
 0x5ee   : > { %v2064_v1 = vpop.f32.mrf.mxu2 }
 0x5ef   : > { %v2084_v61 = vpop.f32.mrf.mxu3  ;;  %v2087_v17 = vadd.f32 %v2064_v1, %v2020_v13 }
 0x5f1   : > { %v2017_v60 = vpop.f32.mrf.mxu1 }
 0x5f2   : > { %v2021_v2 = vadd.f32 %v2017_v60, %v1974_v0  ;;  %v3375_v0 = vld [vmem:[%s4656_s2 + $0xe0] sm:$0xff] }
 0x5f4   : > { %v2088_v14 = vadd.f32 %v2084_v61, %v2021_v2 }
 0x5f6   : > { %v2131_v12 = vpop.f32.mrf.mxu0 }
 0x5f7   : > { %v2154_v18 = vadd.f32 %v2131_v12, %v2087_v17 }
 0x5f9   : > { %v2151_v16 = vpop.f32.mrf.mxu1 }
 0x5fa   : > { %v2155_v6 = vadd.f32 %v2151_v16, %v2088_v14 }
 0x5fc   : > { %v2194_v15 = vpop.f32.mrf.mxu2 }
 0x5fd   : > { %v2214_v19 = vpop.f32.mrf.mxu3  ;;  %v2217_v63 = vadd.f32 %v2194_v15, %v2154_v18 }
 0x5fe   : > { %v2218_v21 = vadd.f32 %v2214_v19, %v2155_v6 }
 0x5ff   : > { %v2261_v20 = vpop.f32.mrf.mxu0 }
 0x600   : > { %v4352_v22 = vadd.f32 %v2261_v20, %v2217_v63  ;;  %v3374_v20 = vld [vmem:[%s4656_s2 + $0xd8] sm:$0xff] }
 0x601   : > { %v2281_v23 = vpop.f32.mrf.mxu1 }
 0x602   : > { %v2298_v24 = vmax.f32 %v4352_v22, 0.0  ;;  %v4355_v25 = vadd.f32 %v2281_v23, %v2218_v21  ;;  %v3388_v23 = vld [vmem:[%s4656_s2 + $0xe8] sm:$0xff] }
 0x604   : > { %v2299_v28 = vmax.f32 %v4355_v25, 0.0  ;;  %2322 = vmatpush.msra.mxu2 %v2298_v24 }
 0x606   : > { %2323 = vmatpush.msra.mxu2 %v1650_v55  ;;  %2345 = vmatpush.msra.mxu3 %v2299_v28  ;;  %v3369_v55 = vld [vmem:[%s4655_s1 + $0x38] sm:$0xff] }
 0x608   : > { %2324 = vmatpush.msra.mxu2 %v1648_v58  ;;  %2346 = vmatpush.msra.mxu3 %v1651_v53 }
 0x609   : > { %3370 = vmatmul.msk.f32.vlgmr.msra.gmra.mxu2 %vm941_vm13, %v3368_v26 }
 0x60a   : > { %2347 = vmatpush.msra.mxu3 %v1649_v54 }
 0x60b   : > { %3372 = vmatmul.msk.f32.vlgmr.msra.gmra.mxu3 %vm941_vm13, %v3368_v26 }
 0x611   : > { %3371 = vmatmul.msk.f32.gmra.mxu2 %vm941_vm13, %v3369_v55 }
 0x613   : > { %3373 = vmatmul.msk.f32.gmra.mxu3 %vm941_vm13, %v3369_v55 }
 0x68c   : > { %v2326_v29 = vpop.f32.mrf.mxu2 }
 0x68d   : > { %v4376_v58 = vmax.f32 %v2326_v29, 0.0 }
 0x68e   : > { %v2349_v53 = vpop.f32.mrf.mxu3 }
 0x68f   : > { %2556 = vrot.lane.b32.xlu1 %v4376_v58, %s3522_s6  ;;  %2363 = vrot.lane.b32.xlu0 %v4376_v58, %s3519_s28  ;;  %v4384_v54 = vmax.f32 %v2349_v53, 0.0  ;;  %v3395_v53 = vld [vmem:[%s4656_s2 + $0xf0] sm:$0xff] }
 0x690   : > { %2385 = vrot.lane.b32.xlu2 %v4376_v58, %s3520_s29 }
 0x694   : > { %v2329_v30 = vpop.f32.mrf.mxu2 }
 0x695   : > { %v4392_v33 = vmax.f32 %v2329_v30, 0.0  ;;  %v3402_v30 = vld [vmem:[%s4656_s2 + $0xf8] sm:$0xff] }
 0x696   : > { %v2352_v34 = vpop.f32.mrf.mxu3 }
 0x697   : > { %2670 = vrot.lane.b32.xlu0 %v4376_v58, %s3523_s7  ;;  %2365 = vrot.lane.b32.xlu1 %v4384_v54, %s3519_s28  ;;  %v4406_v35 = vmax.f32 %v2352_v34, 0.0  ;;  %v3506_v8 = vpack.i.bf16 %v4376_v58, %v4392_v33 }
 0x698   : > { %2489 = vrot.lane.b32.xlu2 %v4376_v58, %s3521_s30 }
 0x699   : > { %v3501_v36 = vpack.i.bf16 %v4384_v54, %v4406_v35 }
 0x69f   : > { %2367 = vrot.lane.b32.xlu1 %v4392_v33, %s3519_s28  ;;  %2491 = vrot.lane.b32.xlu0 %v4384_v54, %s3521_s30 }
 0x6a0   : > { %2737 = vrot.lane.b32.xlu2 %v4376_v58, %s3524_s8 }
 0x6a7   : > { %2674 = vrot.lane.b32.xlu1 %v4392_v33, %s3523_s7  ;;  %2739 = vrot.lane.b32.xlu0 %v4384_v54, %s3524_s8 }
 0x6a8   : > { %2558 = vrot.lane.b32.xlu2 %v4384_v54, %s3522_s6 }
 0x6af   : > { %2389 = vrot.lane.b32.xlu0 %v4392_v33, %s3520_s29  ;;  %3502 = vrot.lane.b32.xlu1 %v3501_v36, %s3520_s29 }
 0x6b0   : > { %2560 = vrot.lane.b32.xlu2 %v4392_v33, %s3522_s6 }
 0x6b7   : > { %2493 = vrot.lane.b32.xlu0 %v4392_v33, %s3521_s30  ;;  %2495 = vrot.lane.b32.xlu1 %v4406_v35, %s3521_s30 }
 0x6b8   : > { %2369 = vrot.lane.b32.xlu2 %v4406_v35, %s3519_s28 }
 0x6bf   : > { %2741 = vrot.lane.b32.xlu0 %v4392_v33, %s3524_s8  ;;  %2672 = vrot.lane.b32.xlu1 %v4384_v54, %s3523_s7 }
 0x6c0   : > { %2871 = vrot.lane.b32.xlu2 %v4392_v33, %s3526_s10 }
 0x6c7   : > { %2562 = vrot.lane.b32.xlu0 %v4406_v35, %s3522_s6  ;;  %2743 = vrot.lane.b32.xlu1 %v4406_v35, %s3524_s8 }
 0x6c8   : > { %2676 = vrot.lane.b32.xlu2 %v4406_v35, %s3523_s7 }
 0x6cf   : > { %2873 = vrot.lane.b32.xlu0 %v4406_v35, %s3526_s10  ;;  %2867 = vrot.lane.b32.xlu1 %v4376_v58, %s3526_s10 }
 0x6d0   : > { %2869 = vrot.lane.b32.xlu2 %v4384_v54, %s3526_s10 }
 0x6d7   : > { %3507 = vrot.lane.b32.xlu0 %v3506_v8, %s3525_s9  ;;  %2810 = vrot.lane.b32.xlu1 %v4406_v35, %s3525_s9 }
 0x6d8   : > { %2806 = vrot.lane.b32.xlu2 %v4384_v54, %s3525_s9 }
 0x6ea   : > { %v2386_v9 = vpop.permute.xlu2 %2385 }
 0x6f2   : > { %v2490_v10 = vpop.permute.xlu2 %2489 }
 0x6f3   : > { %v2503_v21 = vsel %vm477_vm3, 0.0, %v2490_v10 }
 0x6fa   : > { %v4446_v11 = vpop.permute.xlu2 %2737 }
 0x701   : > { %v4448_v37 = vpop.permute.xlu1 %2556  ;;  %v2364_v39 = vpop.permute.xlu0 %2363 }
 0x702   : > { %v4450_v40 = vpop.permute.xlu2 %2558  ;;  %v2377_v13 = vsel %vm347_vm6, 0.0, %v2364_v39  ;;  %v2570_v6 = vsel %vm549_vm9, 0.0, %v4448_v37 }
 0x703   : > { %v2564_v36 = vsel %vm549_vm9, %v4448_v37, %v4450_v40 }
 0x709   : > { %v2671_v27 = vpop.permute.xlu0 %2670  ;;  %v2366_v38 = vpop.permute.xlu1 %2365 }
 0x70a   : > { %v4452_v43 = vpop.permute.xlu2 %2560  ;;  %v2371_v17 = vsel %vm347_vm6, %v2364_v39, %v2366_v38 }
 0x70b   : > { %v2571_v41 = vsel %vm549_vm9, 0.0, %v4452_v43 }
 0x711   : > { %v2368_v31 = vpop.permute.xlu1 %2367  ;;  %v2492_v32 = vpop.permute.xlu0 %2491 }
 0x712   : > { %v2370_v44 = vpop.permute.xlu2 %2369  ;;  %v2378_v2 = vsel %vm347_vm6, 0.0, %v2368_v31  ;;  %v2497_v24 = vsel %vm477_vm3, %v2490_v10, %v2492_v32  ;;  %v3424_v32 = vld [vmem:[%s4656_s2 + $0x118] sm:$0xff] }
 0x713   : > { %v2372_v16 = vsel %vm347_vm6, %v2368_v31, %v2370_v44 }
 0x719   : > { %v2675_v47 = vpop.permute.xlu1 %2674  ;;  %v4454_v50 = vpop.permute.xlu0 %2739 }
 0x71a   : > { %v4456_v57 = vpop.permute.xlu2 %2871  ;;  %v2745_v8 = vsel %vm732_vm7, %v4446_v11, %v4454_v50  ;;  %v2751_v10 = vsel %vm732_vm7, %v4454_v50, 0.0  ;;  %v3412_v11 = vld [vmem:[%s4656_s2 + $0x108] sm:$0xff] }
 0x721   : > { %v2390_v59 = vpop.permute.xlu0 %2389  ;;  %v3503_v60 = vpop.permute.xlu1 %3502 }
 0x722   : > { %v3505_v61 = vunpack.i.h.bf16 %v3503_v60  ;;  %v3504_v62 = vunpack.i.l.bf16 %v3503_v60  ;;  %3377 = vmatpush.msk.msra.mxu0 %vm3694_vm1, %v2390_v59  ;;  %v2677_v15 = vpop.permute.xlu2 %2676 }
 0x723   : > { %v2679_v28 = vsel %vm664_vm10, %v2675_v47, %v2677_v15  ;;  %v2685_v37 = vsel %vm664_vm10, %v2677_v15, 0.0 }
 0x724   : > { %3379 = vmatpush.msk.msra.mxu0 %vm3694_vm1, %v2386_v9  ;;  %v2394_v1 = vsel %vm278_vm0, %v2390_v59, %v3504_v62  ;;  %v2393_v12 = vsel %vm278_vm0, %v2386_v9, %v3505_v61  ;;  %v3405_v9 = vld [vmem:[%s4656_s2 + $0x100] sm:$0xff] }
 0x725   : > { %3380 = vmatmul.msk.f32.vlgmr.msra.gmra.mxu0 %vm278_vm0, %v3375_v0  ;;  %2440 = vmatpush.msra.mxu1 %v2394_v1 }
 0x726   : > { %3382 = vmatpush.msk.msrb.mxu0 %vm3714_vm5, %v2378_v2 }
 0x727   : > { %2441 = vmatpush.msra.mxu1 %v2393_v12 }
 0x728   : > { %3383 = vmatpush.msk.msrb.mxu0 %vm3714_vm5, %v2377_v13  ;;  %3381 = vmatmul.msk.f32.vlgmr.msra.gmra.mxu1 %vm278_vm0, %v3375_v0 }
 0x729   : > { %3385 = vmatpush.msk.msrb.mxu1 %vm3744_vm8, %v2372_v16  ;;  %v2494_v14 = vpop.permute.xlu0 %2493  ;;  %v2496_v18 = vpop.permute.xlu1 %2495 }
 0x72a   : > { %3396 = vmatpush.msk.msra.mxu0 %vm3714_vm5, %v2571_v41  ;;  %v2504_v19 = vsel %vm477_vm3, 0.0, %v2494_v14  ;;  %v2498_v63 = vsel %vm477_vm3, %v2494_v14, %v2496_v18  ;;  %v2870_v39 = vpop.permute.xlu2 %2869 }
 0x72b   : > { %3386 = vmatpush.msk.msrb.mxu1 %vm3744_vm8, %v2371_v17  ;;  %3389 = vmatpush.msk.msrb.mxu2 %vm3698_vm2, %v2504_v19 }
 0x72c   : > { %3397 = vmatpush.msk.msra.mxu0 %vm3714_vm5, %v2570_v6  ;;  %3392 = vmatpush.msk.msrb.mxu3 %vm3704_vm4, %v2498_v63 }
 0x72d   : > { %3384 = vmatmul.msk.f32.vlgmr.msrb.gmra.mxu0 %vm278_vm0, %v3374_v20  ;;  %3390 = vmatpush.msk.msrb.mxu2 %vm3698_vm2, %v2503_v21 }
 0x72e   : > { %3393 = vmatpush.msk.msrb.mxu3 %vm3704_vm4, %v2497_v24  ;;  %3406 = vmatpush.msk.msrb.mxu0 %vm3698_vm2, %v2679_v28 }
 0x72f   : > { %3391 = vmatmul.msk.f32.vlgmr.msrb.gmra.mxu2 %vm278_vm0, %v3388_v23  ;;  %3394 = vmatmul.msk.f32.vlgmr.msrb.gmra.mxu3 %vm278_vm0, %v3388_v23 }
 0x730   : > { %2642 = vmatpush.msra.mxu2 %v4392_v33  ;;  %2662 = vmatpush.msra.mxu3 %v4406_v35 }
 0x731   : > { %v2742_v26 = vpop.permute.xlu0 %2741  ;;  %v2673_v55 = vpop.permute.xlu1 %2672  ;;  %3387 = vmatmul.msk.f32.vlgmr.msrb.gmra.mxu1 %vm278_vm0, %v3374_v20 }
 0x732   : > { %2643 = vmatpush.msra.mxu2 %v4376_v58  ;;  %2663 = vmatpush.msra.mxu3 %v4384_v54  ;;  %v2678_v29 = vsel %vm664_vm10, %v2671_v27, %v2673_v55  ;;  %v2684_v49 = vsel %vm664_vm10, %v2673_v55, 0.0  ;;  %v2807_v42 = vpop.permute.xlu2 %2806 }
 0x733   : > { %3407 = vmatpush.msk.msrb.mxu0 %vm3698_vm2, %v2678_v29 }
 0x735   : > { %3398 = vmatmul.msk.f32.vlgmr.msra.gmra.mxu0 %vm278_vm0, %v3395_v53 }
 0x737   : > { %3403 = vmatmul.msk.f32.vlgmr.msra.gmra.mxu2 %vm278_vm0, %v3402_v30  ;;  %3404 = vmatmul.msk.f32.vlgmr.msra.gmra.mxu3 %vm278_vm0, %v3402_v30 }
 0x739   : > { %v2563_v58 = vpop.permute.xlu0 %2562  ;;  %v2744_v54 = vpop.permute.xlu1 %2743 }
 0x73a   : > { %v2565_v33 = vsel %vm549_vm9, %v4452_v43, %v2563_v58  ;;  %v2746_v34 = vsel %vm732_vm7, %v2742_v26, %v2744_v54  ;;  %v2752_v35 = vsel %vm732_vm7, %v2744_v54, 0.0  ;;  %v2881_v43 = vsel %vm864_vm12, %v2870_v39, 0.0 }
 0x73b   : > { %3399 = vmatpush.msk.msra.mxu1 %vm3744_vm8, %v2565_v33  ;;  %3413 = vmatpush.msk.msrb.mxu2 %vm3714_vm5, %v2746_v34 }
 0x73c   : > { %3416 = vmatpush.msk.msrb.mxu3 %vm3744_vm8, %v2752_v35 }
 0x73d   : > { %3400 = vmatpush.msk.msra.mxu1 %vm3744_vm8, %v2564_v36  ;;  %3414 = vmatpush.msk.msrb.mxu2 %vm3714_vm5, %v2745_v8 }
 0x73e   : > { %3417 = vmatpush.msk.msrb.mxu3 %vm3744_vm8, %v2751_v10  ;;  %3401 = vmatmul.msk.f32.vlgmr.msra.gmra.mxu1 %vm278_vm0, %v3395_v53  ;;  %v3431_v10 = vld [vmem:[%s4657_s3 + $0x10] sm:$0xff] }
 0x73f   : > { %3408 = vmatmul.msk.f32.vlgmr.msrb.gmra.mxu0 %vm278_vm0, %v3405_v9  ;;  %3409 = vmatpush.msk.msrb.mxu1 %vm3704_vm4, %v2685_v37 }
 0x740   : > { %3415 = vmatmul.msk.f32.vlgmr.msrb.gmra.mxu2 %vm278_vm0, %v3412_v11  ;;  %3418 = vmatmul.msk.f32.vlgmr.msrb.gmra.mxu3 %vm278_vm0, %v3412_v11  ;;  %v1639_v11 = vld [vmem:[%s4658_s4 + $0x8] sm:$0xff] }
 0x741   : > { %3410 = vmatpush.msk.msrb.mxu1 %vm3704_vm4, %v2684_v49  ;;  %v2874_v40 = vpop.permute.xlu0 %2873  ;;  %v2868_v56 = vpop.permute.xlu1 %2867 }
 0x742   : > { %v2876_v27 = vsel %vm864_vm12, %v4456_v57, %v2874_v40  ;;  %v2882_v38 = vsel %vm864_vm12, %v2874_v40, 0.0  ;;  %v2875_v31 = vsel %vm864_vm12, %v2868_v56, %v2870_v39 }
 0x743   : > { %3425 = vmatpush.msk.msra.mxu2 %vm3698_vm2, %v2876_v27  ;;  %3428 = vmatpush.msk.msra.mxu3 %vm3704_vm4, %v2882_v38 }
 0x745   : > { %3426 = vmatpush.msk.msra.mxu2 %vm3698_vm2, %v2875_v31  ;;  %3429 = vmatpush.msk.msra.mxu3 %vm3704_vm4, %v2881_v43  ;;  %v3437_v43 = vld [vmem:[%s4658_s4 + $0x10] sm:$0xff] }
 0x746   : > { %3411 = vmatmul.msk.f32.vlgmr.msrb.gmra.mxu1 %vm278_vm0, %v3405_v9 }
 0x748   : > { %3430 = vmatmul.msk.f32.vlgmr.msra.gmra.mxu3 %vm278_vm0, %v3424_v32  ;;  %3427 = vmatmul.msk.f32.vlgmr.msra.gmra.mxu2 %vm278_vm0, %v3424_v32 }
 0x749   : > { %v3508_v44 = vpop.permute.xlu0 %3507  ;;  %v2811_v47 = vpop.permute.xlu1 %2810 }
 0x74a   : > { %v3510_v50 = vunpack.i.h.bf16 %v3508_v44  ;;  %v3509_v57 = vunpack.i.l.bf16 %v3508_v44  ;;  %3421 = vmatpush.msk.msra.mxu1 %vm800_vm11, %v2811_v47 }
 0x74c   : > { %v2813_v59 = vsel %vm800_vm11, %v3509_v57, %v2811_v47  ;;  %3422 = vmatpush.msk.msra.mxu1 %vm800_vm11, %v2807_v42  ;;  %v2812_v60 = vsel %vm800_vm11, %v3510_v50, %v2807_v42 }
 0x74d   : > { %2839 = vmatpush.msra.mxu0 %v2813_v59 }
 0x74e   : > { %3423 = vmatmul.msk.f32.vlgmr.msra.gmra.mxu1 %vm278_vm0, %v3419_v45 }
 0x74f   : > { %2840 = vmatpush.msra.mxu0 %v2812_v60 }
 0x750   : > { %3420 = vmatmul.msk.f32.vlgmr.msra.gmra.mxu0 %vm278_vm0, %v3419_v45 }
 0x7a2   : > { %v2423_v61 = vpop.f32.mrf.mxu0 }
 0x7a5   : > { %v2443_v62 = vpop.f32.mrf.mxu1 }
 0x7aa   : > { %v2466_v0 = vpop.f32.mrf.mxu0 }
 0x7ab   : > { %v2467_v18 = vadd.f32 %v2466_v0, %v2423_v61 }
 0x7ae   : > { %v2486_v12 = vpop.f32.mrf.mxu1 }
 0x7af   : > { %v2487_v14 = vadd.f32 %v2486_v12, %v2443_v62 }
 0x7b2   : > { %v2531_v1 = vpop.f32.mrf.mxu2  ;;  %v2551_v2 = vpop.f32.mrf.mxu3 }
 0x7b3   : > { %v2598_v13 = vpop.f32.mrf.mxu0  ;;  %v2555_v6 = vadd.f32 %v2551_v2, %v2487_v14  ;;  %v2554_v15 = vadd.f32 %v2531_v1, %v2467_v18 }
 0x7b5   : > { %v2621_v20 = vadd.f32 %v2598_v13, %v2554_v15 }
 0x7ba   : > { %v2665_v16 = vpop.f32.mrf.mxu3  ;;  %v2645_v41 = vpop.f32.mrf.mxu2 }
 0x7bb   : > { %v2618_v17 = vpop.f32.mrf.mxu1  ;;  %v2668_v26 = vadd.f32 %v2645_v41, %v2621_v20 }
 0x7bc   : > { %v2622_v19 = vadd.f32 %v2618_v17, %v2555_v6  ;;  %v2712_v24 = vpop.f32.mrf.mxu0 }
 0x7bd   : > { %v2735_v29 = vadd.f32 %v2712_v24, %v2668_v26 }
 0x7be   : > { %v2669_v21 = vadd.f32 %v2665_v16, %v2622_v19 }
 0x7c3   : > { %v2732_v63 = vpop.f32.mrf.mxu1  ;;  %v2799_v23 = vpop.f32.mrf.mxu3 }
 0x7c4   : > { %v2779_v28 = vpop.f32.mrf.mxu2  ;;  %v2736_v55 = vadd.f32 %v2732_v63, %v2669_v21 }
 0x7c5   : > { %v2802_v58 = vadd.f32 %v2779_v28, %v2735_v29 }
 0x7c6   : > { %v2803_v53 = vadd.f32 %v2799_v23, %v2736_v55 }
 0x7cb   : > { %v2862_v30 = vpop.f32.mrf.mxu1  ;;  %v2929_v33 = vpop.f32.mrf.mxu3 }
 0x7cc   : > { %v2866_v54 = vadd.f32 %v2862_v30, %v2803_v53  ;;  %v2909_v35 = vpop.f32.mrf.mxu2 }
 0x7cd   : > { %v2842_v34 = vpop.f32.mrf.mxu0 }
 0x7ce   : > { %v2865_v36 = vadd.f32 %v2842_v34, %v2802_v58  ;;  %v2933_v8 = vadd.f32 %v2929_v33, %v2866_v54 }
 0x7d0   : > { %v2932_v9 = vadd.f32 %v2909_v35, %v2865_v36  ;;  %2988 = vmatpush.msrb.mxu1 %v2933_v8 }
 0x7d2   : > { %2965 = vmatpush.msrb.mxu0 %v2932_v9  ;;  %2989 = vmatpush.msrb.mxu1 %v4355_v25  ;;  %v1638_v25 = vld [vmem:[%s4658_s4] sm:$0xff] }
 0x7d4   : > { %2966 = vmatpush.msrb.mxu0 %v4352_v22  ;;  %2990 = vmatpush.msrb.mxu1 %v4119_v48  ;;  %v3432_v22 = vld [vmem:[%s4657_s3 + $0x18] sm:$0xff] }
 0x7d6   : > { %2967 = vmatpush.msrb.mxu0 %v4125_v52  ;;  %2991 = vmatpush.msrb.mxu1 %v4116_v46 }
 0x7d7   : > { %3435 = vmatmul.msk.f32.vlgmr.msrb.gmra.mxu1 %vm1585_vm14, %v3431_v10 }
 0x7d8   : > { %3097 = vmatpush.msra.mxu1 %v4119_v48  ;;  %2968 = vmatpush.msrb.mxu0 %v4122_v51 }
 0x7d9   : > { %3433 = vmatmul.msk.f32.vlgmr.msrb.gmra.mxu0 %vm1585_vm14, %v3431_v10 }
 0x7da   : > { %3074 = vmatpush.msra.mxu0 %v4125_v52  ;;  %3098 = vmatpush.msra.mxu1 %v4116_v46 }
 0x7dc   : > { %3075 = vmatpush.msra.mxu0 %v4122_v51 }
 0x7df   : > { %3436 = vmatmul.msk.f32.gmra.mxu1 %vm1585_vm14, %v3432_v22 }
 0x7e1   : > { %3434 = vmatmul.msk.f32.gmra.mxu0 %vm1585_vm14, %v3432_v22 }
 0x7e7   : > { %3445 = vmatmul.msk.f32.vlgmr.msra.gmra.mxu1 %vm278_vm0, %v1638_v25 }
 0x7e9   : > { %3443 = vmatmul.msk.f32.vlgmr.msra.gmra.mxu0 %vm278_vm0, %v1638_v25 }
 0x7ef   : > { %3446 = vmatmul.msk.f32.gmra.mxu1 %vm278_vm0, %v1639_v11 }
 0x7f1   : > { %3444 = vmatmul.msk.f32.gmra.mxu0 %vm278_vm0, %v1639_v11 }
 0x854   : > { %v2993_v37 = vpop.f32.mrf.mxu1 }
 0x855   : > { %v2994_v27 = vadd.f32 %v2993_v37, %v4116_v46  ;;  %v3438_v46 = vld [vmem:[%s4658_s4 + $0x18] sm:$0xff] }
 0x856   : > { %v2970_v39 = vpop.f32.mrf.mxu0 }
 0x857   : > { %v2971_v31 = vadd.f32 %v2970_v39, %v4122_v51 }
 0x85c   : > { %v2996_v49 = vpop.f32.mrf.mxu1 }
 0x85d   : > { %v2997_v40 = vadd.f32 %v2996_v49, %v4119_v48 }
 0x85e   : > { %v2973_v56 = vpop.f32.mrf.mxu0 }
 0x85f   : > { %v2974_v38 = vadd.f32 %v2973_v56, %v4125_v52  ;;  %3045 = vmatpush.msrb.mxu3 %v2997_v40 }
 0x861   : > { %3022 = vmatpush.msrb.mxu2 %v2974_v38  ;;  %3046 = vmatpush.msrb.mxu3 %v2994_v27 }
 0x862   : > { %3441 = vmatmul.msk.f32.vlgmr.msrb.gmra.mxu3 %vm278_vm0, %v3437_v43 }
 0x863   : > { %3023 = vmatpush.msrb.mxu2 %v2971_v31 }
 0x864   : > { %3439 = vmatmul.msk.f32.vlgmr.msrb.gmra.mxu2 %vm278_vm0, %v3437_v43  ;;  %v3100_v48 = vpop.f32.mrf.mxu1 }
 0x866   : > { %v3077_v52 = vpop.f32.mrf.mxu0 }
 0x86a   : > { %3442 = vmatmul.msk.f32.gmra.mxu3 %vm278_vm0, %v3438_v46 }
 0x86c   : > { %3440 = vmatmul.msk.f32.gmra.mxu2 %vm278_vm0, %v3438_v46  ;;  %v3103_v42 = vpop.f32.mrf.mxu1 }
 0x86e   : > { %v3080_v59 = vpop.f32.mrf.mxu0 }
 0x8e5   : > { %v3048_v32 = vpop.f32.mrf.mxu3 }
 0x8e6   : > { %v3101_v44 = vadd.f32 %v3100_v48, %v3048_v32 }
 0x8e7   : > { %v3025_v51 = vpop.f32.mrf.mxu2 }
 0x8e8   : > { %v3078_v47 = vadd.f32 %v3077_v52, %v3025_v51  ;;  %v3107_v50 = vadd.f32 %v3101_v44, %v3579_v7 }
 0x8ea   : > { %v3106_v57 = vadd.f32 %v3078_v47, %v3577_v5  ;;  %3111 = vst [vmem:[%s224_s13 + $0x8] sm:$0xff] %v3107_v50 }
 0x8ec   : > { %3110 = vst [vmem:[%s224_s13] sm:$0xff] %v3106_v57 }
 0x8ed   : > { %v3051_v45 = vpop.f32.mrf.mxu3 }
 0x8ee   : > { %v3104_v60 = vadd.f32 %v3103_v42, %v3051_v45 }
 0x8ef   : > { %v3028_v61 = vpop.f32.mrf.mxu2 }
 0x8f0   : > { %v3081_v62 = vadd.f32 %v3080_v59, %v3028_v61  ;;  %v3109_v0 = vadd.f32 %v3104_v60, %v3575_v4 }
 0x8f2   : > { %v3108_v1 = vadd.f32 %v3081_v62, %v3573_v3  ;;  %3113 = vst [vmem:[%s224_s13 + $0x18] sm:$0xff] %v3109_v0 }
 0x8f4   : > { %3112 = vst [vmem:[%s224_s13 + $0x10] sm:$0xff] %v3108_v1 }
 0x8f5 PF: > { %s15_s18 = sadd.s32 1, %s3517_s18  }
 0x8f6   : > { %p12_p4 = scmp.ge.s32.totalorder %s15_s18, 4  }
 0x8f8   :  { %14 = sbr.rel (!%p12_p4) target bundleno = 1 (0x1), region = 110 }

</bundles_post_ra>
